<compile_context>
chip_gen: v7x
topology: tpu7x:2x2x1
jax: 0.10.0
libtpu: 0.0.40
codegen_flags: <defaults>
</compile_context>

<pallas_src>
import math

import jax
import jax.numpy as jnp
from jax.experimental import pallas as pl
from jax.experimental.pallas import tpu as pltpu

_MAX_TILE_N = 128


def _round_up(x, m):
    return (x + m - 1) // m * m


# ----------------------------------------------------------------------------
# Shared in-kernel LSTM recurrence (fully unrolled, PyTorch gate order i,f,g,o)
# ----------------------------------------------------------------------------
def _lstm_layer(gate_in, whh_t, tn, l, h, mxu_dtype,
                hseq_ref=None, last_idx=None):
    """Unrolled LSTM recurrence for one layer on a (tn, ...) batch tile.

    gate_in(t) -> (tn, 4H): precomputed input projection + bias for step t
    (hoisted out of the serial chain).  Only h @ Whh stays per step.
    hseq_ref: optional (l*tn, H) VMEM scratch; hidden state of step t is stored
    at rows [t*tn, (t+1)*tn) (sublane-aligned, tn % 8 == 0).
    last_idx: optional (tn, 1) int32; returns the hidden state at that step.
    """
    hcur = jnp.zeros((tn, h), jnp.float32)
    c = jnp.zeros((tn, h), jnp.float32)
    last = jnp.zeros((tn, h), jnp.float32)
    for t in range(l):  # L is small & static -> full unroll
        g = gate_in(t) + jnp.dot(hcur.astype(mxu_dtype), whh_t,
                                 preferred_element_type=jnp.float32)
        # Full-lane (tn, 4H) EUP ops; lane-group extracts afterwards.
        sig = jax.nn.sigmoid(g)
        th = jnp.tanh(g)
        i_g = sig[:, 0 * h:1 * h]
        f_g = sig[:, 1 * h:2 * h]
        g_g = th[:, 2 * h:3 * h]
        o_g = sig[:, 3 * h:4 * h]
        c = f_g * c + i_g * g_g
        hcur = o_g * jnp.tanh(c)
        if hseq_ref is not None:
            hseq_ref[t * tn:(t + 1) * tn, :] = hcur   # aligned sublane store
        if last_idx is not None:
            last = jnp.where(last_idx == t, hcur, last)
    return hcur, last


# ----------------------------------------------------------------------------
# Fused encoder kernel: LSTM stack -> last-valid hidden state -> fce linear
# ----------------------------------------------------------------------------
def _make_encoder_kernel(nlayers, tn, l, h, mxu_dtype):
    def kernel(*refs):
        x_ref, idx_ref = refs[0], refs[1]            # (l, tn, D), (tn, 1) int32
        lstm = refs[2:2 + 3 * nlayers]
        fce_w_ref = refs[2 + 3 * nlayers]
        fce_b_ref = refs[3 + 3 * nlayers]
        z_ref = refs[4 + 3 * nlayers]
        hseq_ref = refs[5 + 3 * nlayers] if nlayers > 1 else None

        idx_last = idx_ref[...]                       # (tn, 1) int32
        x = x_ref[...]
        seq = x.reshape(l * tn, x.shape[-1])          # time-major flat slab

        last = None
        for layer in range(nlayers):
            wih_t = lstm[3 * layer][...]              # (Din, 4H), pre-transposed
            whh_t = lstm[3 * layer + 1][...]          # (H, 4H),   pre-transposed
            bias = lstm[3 * layer + 2][...]           # (1, 4H) = b_ih + b_hh
            # Hoisted input projection: ONE matmul for the whole sequence.
            gates = jnp.dot(seq.astype(mxu_dtype), wih_t,
                            preferred_element_type=jnp.float32) + bias
            is_top = layer == nlayers - 1
            _, last = _lstm_layer(
                lambda t, g=gates: g[t * tn:(t + 1) * tn, :],
                whh_t, tn, l, h, mxu_dtype,
                hseq_ref=None if is_top else hseq_ref,
                last_idx=idx_last if is_top else None)
            if not is_top:
                seq = hseq_ref[...]                   # (l*tn, H) time-major

        # fce epilogue fused: z = last_hidden @ W_fce + b_fce
        z_ref[...] = (jnp.dot(last.astype(mxu_dtype), fce_w_ref[...],
                              preferred_element_type=jnp.float32)
                      + fce_b_ref[...])
    return kernel


# ----------------------------------------------------------------------------
# Fused decoder kernel: LSTM stack (x_lat built implicitly) -> fcd epilogue
# ----------------------------------------------------------------------------
def _make_decoder_kernel(nlayers, tn, l, h, nout, mxu_dtype):
    def kernel(*refs):
        dt_ref, z_ref = refs[0], refs[1]              # (l, tn, 1), (tn, nl)
        wz_ref, wdt_ref, whh0_ref, b0_ref = refs[2:6]
        deep = refs[6:6 + 3 * (nlayers - 1)]
        fcd_w_ref = refs[6 + 3 * (nlayers - 1)]
        fcd_b_ref = refs[7 + 3 * (nlayers - 1)]
        out_ref = refs[8 + 3 * (nlayers - 1)]
        hseq_ref = refs[9 + 3 * (nlayers - 1)]        # (l*tn, H) scratch

        z = z_ref[...]                                # eval-mode dropout == identity
        # Hoisted layer-0 input projection; x_lat = [z, dt] is never built:
        # time-invariant z part (one matmul) + rank-1 dt part (hoisted outer
        # product, no per-step lane broadcast inside the serial chain).
        g_z = (jnp.dot(z.astype(mxu_dtype), wz_ref[...],
                       preferred_element_type=jnp.float32)
               + b0_ref[...])                         # (tn, 4H)
        dt_col = dt_ref[...].reshape(l * tn, 1)       # time-major column
        dt_gates = dt_col * wdt_ref[...]              # (l*tn, 4H)

        _lstm_layer(lambda t: g_z + dt_gates[t * tn:(t + 1) * tn, :],
                    whh0_ref[...], tn, l, h, mxu_dtype, hseq_ref=hseq_ref)

        for layer in range(nlayers - 1):
            wih_t = deep[3 * layer][...]
            whh_t = deep[3 * layer + 1][...]
            bias = deep[3 * layer + 2][...]
            seq = hseq_ref[...]                       # previous layer's outputs
            gates = jnp.dot(seq.astype(mxu_dtype), wih_t,
                            preferred_element_type=jnp.float32) + bias
            _lstm_layer(lambda t, g=gates: g[t * tn:(t + 1) * tn, :],
                        whh_t, tn, l, h, mxu_dtype, hseq_ref=hseq_ref)

        # fcd epilogue: ONE matmul on the time-major slab, ONE store.
        pred = (jnp.dot(hseq_ref[...].astype(mxu_dtype), fcd_w_ref[...],
                        preferred_element_type=jnp.float32)
                + fcd_b_ref[...])                     # (l*tn, nout)
        out_ref[...] = pred.reshape(l, tn, nout)
    return kernel


# ----------------------------------------------------------------------------
# Parameter initialization (PyTorch-style uniform ranges, pre-transposed)
# ----------------------------------------------------------------------------
def _init_lstm_params(key, input_size, hidden_size, num_layers, mxu_dtype):
    params = []
    bound = 1.0 / math.sqrt(hidden_size)
    for layer in range(num_layers):
        in_sz = input_size if layer == 0 else hidden_size
        key, k1, k2, k3, k4 = jax.random.split(key, 5)
        w_ih_t = jax.random.uniform(k1, (in_sz, 4 * hidden_size), jnp.float32,
                                    -bound, bound)
        w_hh_t = jax.random.uniform(k2, (hidden_size, 4 * hidden_size),
                                    jnp.float32, -bound, bound)
        b_ih = jax.random.uniform(k3, (4 * hidden_size,), jnp.float32,
                                  -bound, bound)
        b_hh = jax.random.uniform(k4, (4 * hidden_size,), jnp.float32,
                                  -bound, bound)
        params.append((w_ih_t.astype(mxu_dtype), w_hh_t.astype(mxu_dtype),
                       (b_ih + b_hh).reshape(1, -1)))
    return key, params


def _init_linear_params(key, in_features, out_features, mxu_dtype):
    bound = 1.0 / math.sqrt(in_features)
    key, k1, k2 = jax.random.split(key, 3)
    w_t = jax.random.uniform(k1, (in_features, out_features), jnp.float32,
                             -bound, bound)
    b = jax.random.uniform(k2, (out_features,), jnp.float32,
                           -bound, bound).reshape(1, -1)
    return key, (w_t.astype(mxu_dtype), b)


# ----------------------------------------------------------------------------
# LSTMAE (matches the PyTorch module semantics, eval-mode dropout)
# ----------------------------------------------------------------------------
class LSTMAE:
    def __init__(self, nin, nh, nl, nout, nlayers, do, key,
                 mxu_dtype=jnp.float32):
        # mxu_dtype=jnp.bfloat16 enables the native MXU path on v6e/v7x
        # (weights + matmul operands bf16, h/c/elementwise stay f32); the
        # default f32 keeps bit-tight agreement with the f32 reference.
        self.nin, self.nh, self.nl = nin, nh, nl
        self.nout, self.nlayers = nout, nlayers
        self.do = do  # TODO(synk): training-mode dropout (identity in eval mode).
        self.mxu_dtype = mxu_dtype
        key, self.enc_params = _init_lstm_params(key, nin, nh, nlayers, mxu_dtype)
        key, dec_params = _init_lstm_params(key, nl + 1, nh, nlayers, mxu_dtype)
        wih0_t, whh0_t, b0 = dec_params[0]
        # Split the decoder layer-0 input weight host-side: z rows + dt row.
        self.dec0_params = (wih0_t[:nl, :],                       # (nl, 4H)
                            wih0_t[nl:nl + 1, :].astype(jnp.float32),  # (1, 4H)
                            whh0_t, b0)
        self.dec_deep_params = dec_params[1:]
        key, (self.fcd_w, self.fcd_b) = _init_linear_params(key, nh, nout, mxu_dtype)
        key, (self.fce_w, self.fce_b) = _init_linear_params(key, nh, nl, mxu_dtype)

    @staticmethod
    def _tile_n(n):
        return min(_MAX_TILE_N, _round_up(n, 8))

    # -- encoder -------------------------------------------------------------
    def encode(self, x, seq_len):
        n, l, d = x.shape
        tn = self._tile_n(n)
        n_pad = _round_up(n, tn)
        # Host-side time-major transpose + batch pad (cheap XLA HBM ops).
        x_tm = jnp.transpose(x.astype(jnp.float32), (1, 0, 2))    # (L, N, D)
        # Last-valid index per row; mod matches torch's negative indexing for 0.
        last_idx = ((seq_len.astype(jnp.int32) - 1) % l).reshape(n, 1)
        if n_pad != n:
            x_tm = jnp.pad(x_tm, ((0, 0), (0, n_pad - n), (0, 0)))
            last_idx = jnp.pad(last_idx, ((0, n_pad - n), (0, 0)))

        args = [x_tm, last_idx]
        for p in self.enc_params:
            args.extend(p)
        args += [self.fce_w, self.fce_b]

        in_specs = [
            pl.BlockSpec((l, tn, d), lambda i: (0, i, 0)),
            pl.BlockSpec((tn, 1), lambda i: (i, 0)),
        ] + [pl.BlockSpec(a.shape, lambda i: (0, 0)) for a in args[2:]]
        scratch = ([pltpu.VMEM((l * tn, self.nh), jnp.float32)]
                   if self.nlayers > 1 else [])

        z = pl.pallas_call(
            _make_encoder_kernel(self.nlayers, tn, l, self.nh, self.mxu_dtype),
            grid=(n_pad // tn,),
            out_shape=jax.ShapeDtypeStruct((n_pad, self.nl), jnp.float32),
            in_specs=in_specs,
            out_specs=pl.BlockSpec((tn, self.nl), lambda i: (i, 0)),
            scratch_shapes=scratch,
            compiler_params=pltpu.CompilerParams(
                dimension_semantics=("parallel",)),
        )(*args)
        return z[:n]

    # -- decoder -------------------------------------------------------------
    def decode(self, dt, z):
        n, l = dt.shape
        tn = self._tile_n(n)
        n_pad = _round_up(n, tn)
        dt_tm = jnp.transpose(dt.astype(jnp.float32), (1, 0))[:, :, None]  # (L,N,1)
        z = z.astype(jnp.float32)
        if n_pad != n:
            dt_tm = jnp.pad(dt_tm, ((0, 0), (0, n_pad - n), (0, 0)))
            z = jnp.pad(z, ((0, n_pad - n), (0, 0)))

        args = [dt_tm, z, *self.dec0_params]
        for p in self.dec_deep_params:
            args.extend(p)
        args += [self.fcd_w, self.fcd_b]

        in_specs = [
            pl.BlockSpec((l, tn, 1), lambda i: (0, i, 0)),
            pl.BlockSpec((tn, self.nl), lambda i: (i, 0)),
        ] + [pl.BlockSpec(a.shape, lambda i: (0, 0)) for a in args[2:]]

        pred_tm = pl.pallas_call(
            _make_decoder_kernel(self.nlayers, tn, l, self.nh, self.nout,
                                 self.mxu_dtype),
            grid=(n_pad // tn,),
            out_shape=jax.ShapeDtypeStruct((l, n_pad, self.nout), jnp.float32),
            in_specs=in_specs,
            out_specs=pl.BlockSpec((l, tn, self.nout), lambda i: (0, i, 0)),
            scratch_shapes=[pltpu.VMEM((l * tn, self.nh), jnp.float32)],
            compiler_params=pltpu.CompilerParams(
                dimension_semantics=("parallel",)),
        )(*args)

        pred = jnp.transpose(pred_tm, (1, 0, 2))[:n]   # (N, L, nout)
        if self.nout == 1:
            pred = pred[..., 0]                        # torch .squeeze()
        return pred

    # -- full forward --------------------------------------------------------
    def forward(self, x, seq_len):
        z = self.encode(x, seq_len)
        pred = self.decode(x[:, :, 0], z)
        return pred, z


# ----------------------------------------------------------------------------
# Pure-JAX reference (mirrors the PyTorch forward) for a correctness check
# ----------------------------------------------------------------------------
def _reference_forward(model, x, seq_len):
    nh, nl = model.nh, model.nl

    def run_lstm(seq_in, params):
        n, l, _ = seq_in.shape
        out = seq_in
        for (wih_t, whh_t, b) in params:
            wih_t = wih_t.astype(jnp.float32)
            whh_t = whh_t.astype(jnp.float32)
            h = jnp.zeros((n, nh), jnp.float32)
            c = jnp.zeros((n, nh), jnp.float32)
            hs = []
            for t in range(l):
                g = out[:, t, :] @ wih_t + h @ whh_t + b
                i_g = jax.nn.sigmoid(g[:, :nh])
                f_g = jax.nn.sigmoid(g[:, nh:2 * nh])
                g_g = jnp.tanh(g[:, 2 * nh:3 * nh])
                o_g = jax.nn.sigmoid(g[:, 3 * nh:])
                c = f_g * c + i_g * g_g
                h = o_g * jnp.tanh(c)
                hs.append(h)
            out = jnp.stack(hs, axis=1)
        return out

    n, l, _ = x.shape
    enc_out = run_lstm(x, model.enc_params)
    last = enc_out[jnp.arange(n), (seq_len - 1).astype(jnp.int32)]
    z = last @ model.fce_w.astype(jnp.float32) + model.fce_b
    dt = x[:, :, 0]
    wz_t, wdt, whh0_t, b0 = model.dec0_params
    dec_params = ([(jnp.concatenate([wz_t.astype(jnp.float32),
                                     wdt.astype(jnp.float32)], axis=0),
                    whh0_t, b0)]
                  + list(model.dec_deep_params))
    z_b = jnp.broadcast_to(z[:, None, :], (n, l, nl))
    x_lat = jnp.concatenate([z_b, dt[:, :, None]], axis=-1)
    dec_out = run_lstm(x_lat, dec_params)
    pred = dec_out @ model.fcd_w.astype(jnp.float32) + model.fcd_b
    if model.nout == 1:
        pred = pred[..., 0]
    return pred, z


# ----------------------------------------------------------------------------
# Main
# ----------------------------------------------------------------------------
if __name__ == "__main__":
    N, L = 2, 8          # batch, sequence length
    NIN, NH, NL = 4, 32, 3
    NOUT, NLAYERS, DO = 1, 2, 0.0

    key = jax.random.PRNGKey(0)
    key, kx = jax.random.split(key)
    x = jax.random.normal(kx, (N, L, NIN), jnp.float32)
    seq_len = jnp.array([L, 5], jnp.int32)

    model = LSTMAE(NIN, NH, NL, NOUT, NLAYERS, DO, key)

    fwd = jax.jit(model.forward)
    pred, z = fwd(x, seq_len)
    jax.block_until_ready((pred, z))

    assert pred.shape == (N, L), pred.shape
    assert z.shape == (N, NL), z.shape

    pred_want, z_want = _reference_forward(model, x, seq_len)
    assert jnp.allclose(z, z_want, atol=1e-4, rtol=1e-4), \
        float(jnp.max(jnp.abs(z - z_want)))
    assert jnp.allclose(pred, pred_want, atol=1e-4, rtol=1e-4), \
        float(jnp.max(jnp.abs(pred - pred_want)))

    print("KERNEL_OK")
</pallas_src>

<mosaic_0001>
module attributes {stable_mosaic.version = 11 : i64} {
  func.func @kernel(%arg0: i32, %arg1: memref<8x8x4xf32, #tpu.memory_space<vmem>>, %arg2: memref<8x1xi32, #tpu.memory_space<vmem>>, %arg3: memref<4x128xf32, #tpu.memory_space<vmem>>, %arg4: memref<32x128xf32, #tpu.memory_space<vmem>>, %arg5: memref<1x128xf32, #tpu.memory_space<vmem>>, %arg6: memref<32x128xf32, #tpu.memory_space<vmem>>, %arg7: memref<32x128xf32, #tpu.memory_space<vmem>>, %arg8: memref<1x128xf32, #tpu.memory_space<vmem>>, %arg9: memref<32x3xf32, #tpu.memory_space<vmem>>, %arg10: memref<1x3xf32, #tpu.memory_space<vmem>>, %arg11: memref<8x3xf32, #tpu.memory_space<vmem>>, %arg12: memref<64x32xf32, #tpu.memory_space<vmem>>) attributes {dimension_semantics = [#tpu.dimension_semantics<parallel>], iteration_bounds = array<i64: 1>, scalar_prefetch = 0 : i64, scratch_operands = 1 : i64, tpu.core_type = #tpu.core_type<tc>, window_params = [{transform_indices = @transform_0, window_bounds = array<i64: 8, 8, 4>}, {transform_indices = @transform_1, window_bounds = array<i64: 8, 1>}, {pipeline_mode = #tpu.pipeline_mode<synchronous>, transform_indices = @transform_2, window_bounds = array<i64: 4, 128>}, {pipeline_mode = #tpu.pipeline_mode<synchronous>, transform_indices = @transform_3, window_bounds = array<i64: 32, 128>}, {pipeline_mode = #tpu.pipeline_mode<synchronous>, transform_indices = @transform_4, window_bounds = array<i64: 1, 128>}, {pipeline_mode = #tpu.pipeline_mode<synchronous>, transform_indices = @transform_5, window_bounds = array<i64: 32, 128>}, {pipeline_mode = #tpu.pipeline_mode<synchronous>, transform_indices = @transform_6, window_bounds = array<i64: 32, 128>}, {pipeline_mode = #tpu.pipeline_mode<synchronous>, transform_indices = @transform_7, window_bounds = array<i64: 1, 128>}, {pipeline_mode = #tpu.pipeline_mode<synchronous>, transform_indices = @transform_8, window_bounds = array<i64: 32, 3>}, {pipeline_mode = #tpu.pipeline_mode<synchronous>, transform_indices = @transform_9, window_bounds = array<i64: 1, 3>}, {transform_indices = @transform_10, window_bounds = array<i64: 8, 3>}]} {
    %c0 = arith.constant 0 : index
    %c0_0 = arith.constant 0 : index
    %0 = vector.load %arg2[%c0, %c0_0] : memref<8x1xi32, #tpu.memory_space<vmem>>, vector<8x1xi32>
    %c0_1 = arith.constant 0 : index
    %c0_2 = arith.constant 0 : index
    %c0_3 = arith.constant 0 : index
    %1 = vector.load %arg1[%c0_1, %c0_2, %c0_3] : memref<8x8x4xf32, #tpu.memory_space<vmem>>, vector<8x8x4xf32>
    %2 = vector.shape_cast %1 : vector<8x8x4xf32> to vector<64x4xf32>
    %c0_4 = arith.constant 0 : index
    %c0_5 = arith.constant 0 : index
    %3 = vector.load %arg3[%c0_4, %c0_5] : memref<4x128xf32, #tpu.memory_space<vmem>>, vector<4x128xf32>
    %c0_6 = arith.constant 0 : index
    %c0_7 = arith.constant 0 : index
    %4 = vector.load %arg4[%c0_6, %c0_7] : memref<32x128xf32, #tpu.memory_space<vmem>>, vector<32x128xf32>
    %c0_8 = arith.constant 0 : index
    %c0_9 = arith.constant 0 : index
    %5 = vector.load %arg5[%c0_8, %c0_9] : memref<1x128xf32, #tpu.memory_space<vmem>>, vector<1x128xf32>
    %cst = arith.constant dense<0.000000e+00> : vector<64x128xf32>
    %6 = tpu.matmul %2, %3, %cst {dimension_numbers = #tpu.dot_dimension_numbers<[1], [0], [0], [1], [0, 0, 1, 1], [], []>} : vector<64x4xf32>, vector<4x128xf32>, vector<64x128xf32> -> vector<64x128xf32>
    %7 = vector.broadcast %5 : vector<1x128xf32> to vector<64x128xf32>
    %8 = arith.addf %6, %7 : vector<64x128xf32>
    %cst_10 = arith.constant 0.000000e+00 : f32
    %9 = vector.broadcast %cst_10 : f32 to vector<8x32xf32>
    %cst_11 = arith.constant 0.000000e+00 : f32
    %10 = vector.broadcast %cst_11 : f32 to vector<8x32xf32>
    %11 = vector.extract_strided_slice %8 {offsets = [0, 0], sizes = [8, 128], strides = [1, 1]} : vector<64x128xf32> to vector<8x128xf32>
    %cst_12 = arith.constant dense<0.000000e+00> : vector<8x128xf32>
    %12 = tpu.matmul %9, %4, %cst_12 {dimension_numbers = #tpu.dot_dimension_numbers<[1], [0], [0], [1], [0, 0, 1, 1], [], []>} : vector<8x32xf32>, vector<32x128xf32>, vector<8x128xf32> -> vector<8x128xf32>
    %13 = arith.addf %11, %12 : vector<8x128xf32>
    %14 = arith.negf %13 : vector<8x128xf32>
    %15 = math.exp %14 : vector<8x128xf32>
    %cst_13 = arith.constant 1.000000e+00 : f32
    %16 = vector.broadcast %cst_13 : f32 to vector<8x128xf32>
    %17 = arith.addf %16, %15 : vector<8x128xf32>
    %18 = arith.divf %16, %17 : vector<8x128xf32>
    %19 = math.tanh %13 : vector<8x128xf32>
    %20 = vector.extract_strided_slice %18 {offsets = [0, 0], sizes = [8, 32], strides = [1, 1]} : vector<8x128xf32> to vector<8x32xf32>
    %21 = vector.extract_strided_slice %18 {offsets = [0, 32], sizes = [8, 32], strides = [1, 1]} : vector<8x128xf32> to vector<8x32xf32>
    %22 = vector.extract_strided_slice %19 {offsets = [0, 64], sizes = [8, 32], strides = [1, 1]} : vector<8x128xf32> to vector<8x32xf32>
    %23 = vector.extract_strided_slice %18 {offsets = [0, 96], sizes = [8, 32], strides = [1, 1]} : vector<8x128xf32> to vector<8x32xf32>
    %24 = arith.mulf %21, %10 : vector<8x32xf32>
    %25 = arith.mulf %20, %22 : vector<8x32xf32>
    %26 = arith.addf %24, %25 : vector<8x32xf32>
    %27 = math.tanh %26 : vector<8x32xf32>
    %28 = arith.mulf %23, %27 : vector<8x32xf32>
    %c0_14 = arith.constant 0 : index
    %c0_15 = arith.constant 0 : index
    %29 = vector.load %arg12[%c0_14, %c0_15] : memref<64x32xf32, #tpu.memory_space<vmem>>, vector<8x32xf32>
    tpu.vector_store %arg12[%c0_14, %c0_15], %28 {strides = array<i32>} : memref<64x32xf32, #tpu.memory_space<vmem>>, vector<8x32xf32>,
    %30 = vector.extract_strided_slice %8 {offsets = [8, 0], sizes = [8, 128], strides = [1, 1]} : vector<64x128xf32> to vector<8x128xf32>
    %cst_16 = arith.constant dense<0.000000e+00> : vector<8x128xf32>
    %31 = tpu.matmul %28, %4, %cst_16 {dimension_numbers = #tpu.dot_dimension_numbers<[1], [0], [0], [1], [0, 0, 1, 1], [], []>} : vector<8x32xf32>, vector<32x128xf32>, vector<8x128xf32> -> vector<8x128xf32>
    %32 = arith.addf %30, %31 : vector<8x128xf32>
    %33 = arith.negf %32 : vector<8x128xf32>
    %34 = math.exp %33 : vector<8x128xf32>
    %cst_17 = arith.constant 1.000000e+00 : f32
    %35 = vector.broadcast %cst_17 : f32 to vector<8x128xf32>
    %36 = arith.addf %35, %34 : vector<8x128xf32>
    %37 = arith.divf %35, %36 : vector<8x128xf32>
    %38 = math.tanh %32 : vector<8x128xf32>
    %39 = vector.extract_strided_slice %37 {offsets = [0, 0], sizes = [8, 32], strides = [1, 1]} : vector<8x128xf32> to vector<8x32xf32>
    %40 = vector.extract_strided_slice %37 {offsets = [0, 32], sizes = [8, 32], strides = [1, 1]} : vector<8x128xf32> to vector<8x32xf32>
    %41 = vector.extract_strided_slice %38 {offsets = [0, 64], sizes = [8, 32], strides = [1, 1]} : vector<8x128xf32> to vector<8x32xf32>
    %42 = vector.extract_strided_slice %37 {offsets = [0, 96], sizes = [8, 32], strides = [1, 1]} : vector<8x128xf32> to vector<8x32xf32>
    %43 = arith.mulf %40, %26 : vector<8x32xf32>
    %44 = arith.mulf %39, %41 : vector<8x32xf32>
    %45 = arith.addf %43, %44 : vector<8x32xf32>
    %46 = math.tanh %45 : vector<8x32xf32>
    %47 = arith.mulf %42, %46 : vector<8x32xf32>
    %c8 = arith.constant 8 : index
    %c0_18 = arith.constant 0 : index
    %48 = vector.load %arg12[%c8, %c0_18] : memref<64x32xf32, #tpu.memory_space<vmem>>, vector<8x32xf32>
    tpu.vector_store %arg12[%c8, %c0_18], %47 {strides = array<i32>} : memref<64x32xf32, #tpu.memory_space<vmem>>, vector<8x32xf32>,
    %49 = vector.extract_strided_slice %8 {offsets = [16, 0], sizes = [8, 128], strides = [1, 1]} : vector<64x128xf32> to vector<8x128xf32>
    %cst_19 = arith.constant dense<0.000000e+00> : vector<8x128xf32>
    %50 = tpu.matmul %47, %4, %cst_19 {dimension_numbers = #tpu.dot_dimension_numbers<[1], [0], [0], [1], [0, 0, 1, 1], [], []>} : vector<8x32xf32>, vector<32x128xf32>, vector<8x128xf32> -> vector<8x128xf32>
    %51 = arith.addf %49, %50 : vector<8x128xf32>
    %52 = arith.negf %51 : vector<8x128xf32>
    %53 = math.exp %52 : vector<8x128xf32>
    %cst_20 = arith.constant 1.000000e+00 : f32
    %54 = vector.broadcast %cst_20 : f32 to vector<8x128xf32>
    %55 = arith.addf %54, %53 : vector<8x128xf32>
    %56 = arith.divf %54, %55 : vector<8x128xf32>
    %57 = math.tanh %51 : vector<8x128xf32>
    %58 = vector.extract_strided_slice %56 {offsets = [0, 0], sizes = [8, 32], strides = [1, 1]} : vector<8x128xf32> to vector<8x32xf32>
    %59 = vector.extract_strided_slice %56 {offsets = [0, 32], sizes = [8, 32], strides = [1, 1]} : vector<8x128xf32> to vector<8x32xf32>
    %60 = vector.extract_strided_slice %57 {offsets = [0, 64], sizes = [8, 32], strides = [1, 1]} : vector<8x128xf32> to vector<8x32xf32>
    %61 = vector.extract_strided_slice %56 {offsets = [0, 96], sizes = [8, 32], strides = [1, 1]} : vector<8x128xf32> to vector<8x32xf32>
    %62 = arith.mulf %59, %45 : vector<8x32xf32>
    %63 = arith.mulf %58, %60 : vector<8x32xf32>
    %64 = arith.addf %62, %63 : vector<8x32xf32>
    %65 = math.tanh %64 : vector<8x32xf32>
    %66 = arith.mulf %61, %65 : vector<8x32xf32>
    %c16 = arith.constant 16 : index
    %c0_21 = arith.constant 0 : index
    %67 = vector.load %arg12[%c16, %c0_21] : memref<64x32xf32, #tpu.memory_space<vmem>>, vector<8x32xf32>
    tpu.vector_store %arg12[%c16, %c0_21], %66 {strides = array<i32>} : memref<64x32xf32, #tpu.memory_space<vmem>>, vector<8x32xf32>,
    %68 = vector.extract_strided_slice %8 {offsets = [24, 0], sizes = [8, 128], strides = [1, 1]} : vector<64x128xf32> to vector<8x128xf32>
    %cst_22 = arith.constant dense<0.000000e+00> : vector<8x128xf32>
    %69 = tpu.matmul %66, %4, %cst_22 {dimension_numbers = #tpu.dot_dimension_numbers<[1], [0], [0], [1], [0, 0, 1, 1], [], []>} : vector<8x32xf32>, vector<32x128xf32>, vector<8x128xf32> -> vector<8x128xf32>
    %70 = arith.addf %68, %69 : vector<8x128xf32>
    %71 = arith.negf %70 : vector<8x128xf32>
    %72 = math.exp %71 : vector<8x128xf32>
    %cst_23 = arith.constant 1.000000e+00 : f32
    %73 = vector.broadcast %cst_23 : f32 to vector<8x128xf32>
    %74 = arith.addf %73, %72 : vector<8x128xf32>
    %75 = arith.divf %73, %74 : vector<8x128xf32>
    %76 = math.tanh %70 : vector<8x128xf32>
    %77 = vector.extract_strided_slice %75 {offsets = [0, 0], sizes = [8, 32], strides = [1, 1]} : vector<8x128xf32> to vector<8x32xf32>
    %78 = vector.extract_strided_slice %75 {offsets = [0, 32], sizes = [8, 32], strides = [1, 1]} : vector<8x128xf32> to vector<8x32xf32>
    %79 = vector.extract_strided_slice %76 {offsets = [0, 64], sizes = [8, 32], strides = [1, 1]} : vector<8x128xf32> to vector<8x32xf32>
    %80 = vector.extract_strided_slice %75 {offsets = [0, 96], sizes = [8, 32], strides = [1, 1]} : vector<8x128xf32> to vector<8x32xf32>
    %81 = arith.mulf %78, %64 : vector<8x32xf32>
    %82 = arith.mulf %77, %79 : vector<8x32xf32>
    %83 = arith.addf %81, %82 : vector<8x32xf32>
    %84 = math.tanh %83 : vector<8x32xf32>
    %85 = arith.mulf %80, %84 : vector<8x32xf32>
    %c24 = arith.constant 24 : index
    %c0_24 = arith.constant 0 : index
    %86 = vector.load %arg12[%c24, %c0_24] : memref<64x32xf32, #tpu.memory_space<vmem>>, vector<8x32xf32>
    tpu.vector_store %arg12[%c24, %c0_24], %85 {strides = array<i32>} : memref<64x32xf32, #tpu.memory_space<vmem>>, vector<8x32xf32>,
    %87 = vector.extract_strided_slice %8 {offsets = [32, 0], sizes = [8, 128], strides = [1, 1]} : vector<64x128xf32> to vector<8x128xf32>
    %cst_25 = arith.constant dense<0.000000e+00> : vector<8x128xf32>
    %88 = tpu.matmul %85, %4, %cst_25 {dimension_numbers = #tpu.dot_dimension_numbers<[1], [0], [0], [1], [0, 0, 1, 1], [], []>} : vector<8x32xf32>, vector<32x128xf32>, vector<8x128xf32> -> vector<8x128xf32>
    %89 = arith.addf %87, %88 : vector<8x128xf32>
    %90 = arith.negf %89 : vector<8x128xf32>
    %91 = math.exp %90 : vector<8x128xf32>
    %cst_26 = arith.constant 1.000000e+00 : f32
    %92 = vector.broadcast %cst_26 : f32 to vector<8x128xf32>
    %93 = arith.addf %92, %91 : vector<8x128xf32>
    %94 = arith.divf %92, %93 : vector<8x128xf32>
    %95 = math.tanh %89 : vector<8x128xf32>
    %96 = vector.extract_strided_slice %94 {offsets = [0, 0], sizes = [8, 32], strides = [1, 1]} : vector<8x128xf32> to vector<8x32xf32>
    %97 = vector.extract_strided_slice %94 {offsets = [0, 32], sizes = [8, 32], strides = [1, 1]} : vector<8x128xf32> to vector<8x32xf32>
    %98 = vector.extract_strided_slice %95 {offsets = [0, 64], sizes = [8, 32], strides = [1, 1]} : vector<8x128xf32> to vector<8x32xf32>
    %99 = vector.extract_strided_slice %94 {offsets = [0, 96], sizes = [8, 32], strides = [1, 1]} : vector<8x128xf32> to vector<8x32xf32>
    %100 = arith.mulf %97, %83 : vector<8x32xf32>
    %101 = arith.mulf %96, %98 : vector<8x32xf32>
    %102 = arith.addf %100, %101 : vector<8x32xf32>
    %103 = math.tanh %102 : vector<8x32xf32>
    %104 = arith.mulf %99, %103 : vector<8x32xf32>
    %c32 = arith.constant 32 : index
    %c0_27 = arith.constant 0 : index
    %105 = vector.load %arg12[%c32, %c0_27] : memref<64x32xf32, #tpu.memory_space<vmem>>, vector<8x32xf32>
    tpu.vector_store %arg12[%c32, %c0_27], %104 {strides = array<i32>} : memref<64x32xf32, #tpu.memory_space<vmem>>, vector<8x32xf32>,
    %106 = vector.extract_strided_slice %8 {offsets = [40, 0], sizes = [8, 128], strides = [1, 1]} : vector<64x128xf32> to vector<8x128xf32>
    %cst_28 = arith.constant dense<0.000000e+00> : vector<8x128xf32>
    %107 = tpu.matmul %104, %4, %cst_28 {dimension_numbers = #tpu.dot_dimension_numbers<[1], [0], [0], [1], [0, 0, 1, 1], [], []>} : vector<8x32xf32>, vector<32x128xf32>, vector<8x128xf32> -> vector<8x128xf32>
    %108 = arith.addf %106, %107 : vector<8x128xf32>
    %109 = arith.negf %108 : vector<8x128xf32>
    %110 = math.exp %109 : vector<8x128xf32>
    %cst_29 = arith.constant 1.000000e+00 : f32
    %111 = vector.broadcast %cst_29 : f32 to vector<8x128xf32>
    %112 = arith.addf %111, %110 : vector<8x128xf32>
    %113 = arith.divf %111, %112 : vector<8x128xf32>
    %114 = math.tanh %108 : vector<8x128xf32>
    %115 = vector.extract_strided_slice %113 {offsets = [0, 0], sizes = [8, 32], strides = [1, 1]} : vector<8x128xf32> to vector<8x32xf32>
    %116 = vector.extract_strided_slice %113 {offsets = [0, 32], sizes = [8, 32], strides = [1, 1]} : vector<8x128xf32> to vector<8x32xf32>
    %117 = vector.extract_strided_slice %114 {offsets = [0, 64], sizes = [8, 32], strides = [1, 1]} : vector<8x128xf32> to vector<8x32xf32>
    %118 = vector.extract_strided_slice %113 {offsets = [0, 96], sizes = [8, 32], strides = [1, 1]} : vector<8x128xf32> to vector<8x32xf32>
    %119 = arith.mulf %116, %102 : vector<8x32xf32>
    %120 = arith.mulf %115, %117 : vector<8x32xf32>
    %121 = arith.addf %119, %120 : vector<8x32xf32>
    %122 = math.tanh %121 : vector<8x32xf32>
    %123 = arith.mulf %118, %122 : vector<8x32xf32>
    %c40 = arith.constant 40 : index
    %c0_30 = arith.constant 0 : index
    %124 = vector.load %arg12[%c40, %c0_30] : memref<64x32xf32, #tpu.memory_space<vmem>>, vector<8x32xf32>
    tpu.vector_store %arg12[%c40, %c0_30], %123 {strides = array<i32>} : memref<64x32xf32, #tpu.memory_space<vmem>>, vector<8x32xf32>,
    %125 = vector.extract_strided_slice %8 {offsets = [48, 0], sizes = [8, 128], strides = [1, 1]} : vector<64x128xf32> to vector<8x128xf32>
    %cst_31 = arith.constant dense<0.000000e+00> : vector<8x128xf32>
    %126 = tpu.matmul %123, %4, %cst_31 {dimension_numbers = #tpu.dot_dimension_numbers<[1], [0], [0], [1], [0, 0, 1, 1], [], []>} : vector<8x32xf32>, vector<32x128xf32>, vector<8x128xf32> -> vector<8x128xf32>
    %127 = arith.addf %125, %126 : vector<8x128xf32>
    %128 = arith.negf %127 : vector<8x128xf32>
    %129 = math.exp %128 : vector<8x128xf32>
    %cst_32 = arith.constant 1.000000e+00 : f32
    %130 = vector.broadcast %cst_32 : f32 to vector<8x128xf32>
    %131 = arith.addf %130, %129 : vector<8x128xf32>
    %132 = arith.divf %130, %131 : vector<8x128xf32>
    %133 = math.tanh %127 : vector<8x128xf32>
    %134 = vector.extract_strided_slice %132 {offsets = [0, 0], sizes = [8, 32], strides = [1, 1]} : vector<8x128xf32> to vector<8x32xf32>
    %135 = vector.extract_strided_slice %132 {offsets = [0, 32], sizes = [8, 32], strides = [1, 1]} : vector<8x128xf32> to vector<8x32xf32>
    %136 = vector.extract_strided_slice %133 {offsets = [0, 64], sizes = [8, 32], strides = [1, 1]} : vector<8x128xf32> to vector<8x32xf32>
    %137 = vector.extract_strided_slice %132 {offsets = [0, 96], sizes = [8, 32], strides = [1, 1]} : vector<8x128xf32> to vector<8x32xf32>
    %138 = arith.mulf %135, %121 : vector<8x32xf32>
    %139 = arith.mulf %134, %136 : vector<8x32xf32>
    %140 = arith.addf %138, %139 : vector<8x32xf32>
    %141 = math.tanh %140 : vector<8x32xf32>
    %142 = arith.mulf %137, %141 : vector<8x32xf32>
    %c48 = arith.constant 48 : index
    %c0_33 = arith.constant 0 : index
    %143 = vector.load %arg12[%c48, %c0_33] : memref<64x32xf32, #tpu.memory_space<vmem>>, vector<8x32xf32>
    tpu.vector_store %arg12[%c48, %c0_33], %142 {strides = array<i32>} : memref<64x32xf32, #tpu.memory_space<vmem>>, vector<8x32xf32>,
    %144 = vector.extract_strided_slice %8 {offsets = [56, 0], sizes = [8, 128], strides = [1, 1]} : vector<64x128xf32> to vector<8x128xf32>
    %cst_34 = arith.constant dense<0.000000e+00> : vector<8x128xf32>
    %145 = tpu.matmul %142, %4, %cst_34 {dimension_numbers = #tpu.dot_dimension_numbers<[1], [0], [0], [1], [0, 0, 1, 1], [], []>} : vector<8x32xf32>, vector<32x128xf32>, vector<8x128xf32> -> vector<8x128xf32>
    %146 = arith.addf %144, %145 : vector<8x128xf32>
    %147 = arith.negf %146 : vector<8x128xf32>
    %148 = math.exp %147 : vector<8x128xf32>
    %cst_35 = arith.constant 1.000000e+00 : f32
    %149 = vector.broadcast %cst_35 : f32 to vector<8x128xf32>
    %150 = arith.addf %149, %148 : vector<8x128xf32>
    %151 = arith.divf %149, %150 : vector<8x128xf32>
    %152 = math.tanh %146 : vector<8x128xf32>
    %153 = vector.extract_strided_slice %151 {offsets = [0, 0], sizes = [8, 32], strides = [1, 1]} : vector<8x128xf32> to vector<8x32xf32>
    %154 = vector.extract_strided_slice %151 {offsets = [0, 32], sizes = [8, 32], strides = [1, 1]} : vector<8x128xf32> to vector<8x32xf32>
    %155 = vector.extract_strided_slice %152 {offsets = [0, 64], sizes = [8, 32], strides = [1, 1]} : vector<8x128xf32> to vector<8x32xf32>
    %156 = vector.extract_strided_slice %151 {offsets = [0, 96], sizes = [8, 32], strides = [1, 1]} : vector<8x128xf32> to vector<8x32xf32>
    %157 = arith.mulf %154, %140 : vector<8x32xf32>
    %158 = arith.mulf %153, %155 : vector<8x32xf32>
    %159 = arith.addf %157, %158 : vector<8x32xf32>
    %160 = math.tanh %159 : vector<8x32xf32>
    %161 = arith.mulf %156, %160 : vector<8x32xf32>
    %c56 = arith.constant 56 : index
    %c0_36 = arith.constant 0 : index
    %162 = vector.load %arg12[%c56, %c0_36] : memref<64x32xf32, #tpu.memory_space<vmem>>, vector<8x32xf32>
    tpu.vector_store %arg12[%c56, %c0_36], %161 {strides = array<i32>} : memref<64x32xf32, #tpu.memory_space<vmem>>, vector<8x32xf32>,
    %c0_37 = arith.constant 0 : index
    %c0_38 = arith.constant 0 : index
    %163 = vector.load %arg12[%c0_37, %c0_38] : memref<64x32xf32, #tpu.memory_space<vmem>>, vector<64x32xf32>
    %c0_39 = arith.constant 0 : index
    %c0_40 = arith.constant 0 : index
    %164 = vector.load %arg6[%c0_39, %c0_40] : memref<32x128xf32, #tpu.memory_space<vmem>>, vector<32x128xf32>
    %c0_41 = arith.constant 0 : index
    %c0_42 = arith.constant 0 : index
    %165 = vector.load %arg7[%c0_41, %c0_42] : memref<32x128xf32, #tpu.memory_space<vmem>>, vector<32x128xf32>
    %c0_43 = arith.constant 0 : index
    %c0_44 = arith.constant 0 : index
    %166 = vector.load %arg8[%c0_43, %c0_44] : memref<1x128xf32, #tpu.memory_space<vmem>>, vector<1x128xf32>
    %cst_45 = arith.constant dense<0.000000e+00> : vector<64x128xf32>
    %167 = tpu.matmul %163, %164, %cst_45 {dimension_numbers = #tpu.dot_dimension_numbers<[1], [0], [0], [1], [0, 0, 1, 1], [], []>} : vector<64x32xf32>, vector<32x128xf32>, vector<64x128xf32> -> vector<64x128xf32>
    %168 = vector.broadcast %166 : vector<1x128xf32> to vector<64x128xf32>
    %169 = arith.addf %167, %168 : vector<64x128xf32>
    %cst_46 = arith.constant 0.000000e+00 : f32
    %170 = vector.broadcast %cst_46 : f32 to vector<8x32xf32>
    %cst_47 = arith.constant 0.000000e+00 : f32
    %171 = vector.broadcast %cst_47 : f32 to vector<8x32xf32>
    %cst_48 = arith.constant 0.000000e+00 : f32
    %172 = vector.broadcast %cst_48 : f32 to vector<8x32xf32>
    %173 = vector.extract_strided_slice %169 {offsets = [0, 0], sizes = [8, 128], strides = [1, 1]} : vector<64x128xf32> to vector<8x128xf32>
    %cst_49 = arith.constant dense<0.000000e+00> : vector<8x128xf32>
    %174 = tpu.matmul %170, %165, %cst_49 {dimension_numbers = #tpu.dot_dimension_numbers<[1], [0], [0], [1], [0, 0, 1, 1], [], []>} : vector<8x32xf32>, vector<32x128xf32>, vector<8x128xf32> -> vector<8x128xf32>
    %175 = arith.addf %173, %174 : vector<8x128xf32>
    %176 = arith.negf %175 : vector<8x128xf32>
    %177 = math.exp %176 : vector<8x128xf32>
    %cst_50 = arith.constant 1.000000e+00 : f32
    %178 = vector.broadcast %cst_50 : f32 to vector<8x128xf32>
    %179 = arith.addf %178, %177 : vector<8x128xf32>
    %180 = arith.divf %178, %179 : vector<8x128xf32>
    %181 = math.tanh %175 : vector<8x128xf32>
    %182 = vector.extract_strided_slice %180 {offsets = [0, 0], sizes = [8, 32], strides = [1, 1]} : vector<8x128xf32> to vector<8x32xf32>
    %183 = vector.extract_strided_slice %180 {offsets = [0, 32], sizes = [8, 32], strides = [1, 1]} : vector<8x128xf32> to vector<8x32xf32>
    %184 = vector.extract_strided_slice %181 {offsets = [0, 64], sizes = [8, 32], strides = [1, 1]} : vector<8x128xf32> to vector<8x32xf32>
    %185 = vector.extract_strided_slice %180 {offsets = [0, 96], sizes = [8, 32], strides = [1, 1]} : vector<8x128xf32> to vector<8x32xf32>
    %186 = arith.mulf %183, %171 : vector<8x32xf32>
    %187 = arith.mulf %182, %184 : vector<8x32xf32>
    %188 = arith.addf %186, %187 : vector<8x32xf32>
    %189 = math.tanh %188 : vector<8x32xf32>
    %190 = arith.mulf %185, %189 : vector<8x32xf32>
    %c0_i32 = arith.constant 0 : i32
    %191 = vector.broadcast %c0_i32 : i32 to vector<8x1xi32>
    %192 = arith.cmpi eq, %0, %191 : vector<8x1xi32>
    %193 = vector.shape_cast %192 : vector<8x1xi1> to vector<8x1xi1>
    %194 = vector.broadcast %193 : vector<8x1xi1> to vector<8x32xi1>
    %195 = arith.select %194, %190, %172 : vector<8x32xi1>, vector<8x32xf32>
    %196 = vector.extract_strided_slice %169 {offsets = [8, 0], sizes = [8, 128], strides = [1, 1]} : vector<64x128xf32> to vector<8x128xf32>
    %cst_51 = arith.constant dense<0.000000e+00> : vector<8x128xf32>
    %197 = tpu.matmul %190, %165, %cst_51 {dimension_numbers = #tpu.dot_dimension_numbers<[1], [0], [0], [1], [0, 0, 1, 1], [], []>} : vector<8x32xf32>, vector<32x128xf32>, vector<8x128xf32> -> vector<8x128xf32>
    %198 = arith.addf %196, %197 : vector<8x128xf32>
    %199 = arith.negf %198 : vector<8x128xf32>
    %200 = math.exp %199 : vector<8x128xf32>
    %cst_52 = arith.constant 1.000000e+00 : f32
    %201 = vector.broadcast %cst_52 : f32 to vector<8x128xf32>
    %202 = arith.addf %201, %200 : vector<8x128xf32>
    %203 = arith.divf %201, %202 : vector<8x128xf32>
    %204 = math.tanh %198 : vector<8x128xf32>
    %205 = vector.extract_strided_slice %203 {offsets = [0, 0], sizes = [8, 32], strides = [1, 1]} : vector<8x128xf32> to vector<8x32xf32>
    %206 = vector.extract_strided_slice %203 {offsets = [0, 32], sizes = [8, 32], strides = [1, 1]} : vector<8x128xf32> to vector<8x32xf32>
    %207 = vector.extract_strided_slice %204 {offsets = [0, 64], sizes = [8, 32], strides = [1, 1]} : vector<8x128xf32> to vector<8x32xf32>
    %208 = vector.extract_strided_slice %203 {offsets = [0, 96], sizes = [8, 32], strides = [1, 1]} : vector<8x128xf32> to vector<8x32xf32>
    %209 = arith.mulf %206, %188 : vector<8x32xf32>
    %210 = arith.mulf %205, %207 : vector<8x32xf32>
    %211 = arith.addf %209, %210 : vector<8x32xf32>
    %212 = math.tanh %211 : vector<8x32xf32>
    %213 = arith.mulf %208, %212 : vector<8x32xf32>
    %c1_i32 = arith.constant 1 : i32
    %214 = vector.broadcast %c1_i32 : i32 to vector<8x1xi32>
    %215 = arith.cmpi eq, %0, %214 : vector<8x1xi32>
    %216 = vector.shape_cast %215 : vector<8x1xi1> to vector<8x1xi1>
    %217 = vector.broadcast %216 : vector<8x1xi1> to vector<8x32xi1>
    %218 = arith.select %217, %213, %195 : vector<8x32xi1>, vector<8x32xf32>
    %219 = vector.extract_strided_slice %169 {offsets = [16, 0], sizes = [8, 128], strides = [1, 1]} : vector<64x128xf32> to vector<8x128xf32>
    %cst_53 = arith.constant dense<0.000000e+00> : vector<8x128xf32>
    %220 = tpu.matmul %213, %165, %cst_53 {dimension_numbers = #tpu.dot_dimension_numbers<[1], [0], [0], [1], [0, 0, 1, 1], [], []>} : vector<8x32xf32>, vector<32x128xf32>, vector<8x128xf32> -> vector<8x128xf32>
    %221 = arith.addf %219, %220 : vector<8x128xf32>
    %222 = arith.negf %221 : vector<8x128xf32>
    %223 = math.exp %222 : vector<8x128xf32>
    %cst_54 = arith.constant 1.000000e+00 : f32
    %224 = vector.broadcast %cst_54 : f32 to vector<8x128xf32>
    %225 = arith.addf %224, %223 : vector<8x128xf32>
    %226 = arith.divf %224, %225 : vector<8x128xf32>
    %227 = math.tanh %221 : vector<8x128xf32>
    %228 = vector.extract_strided_slice %226 {offsets = [0, 0], sizes = [8, 32], strides = [1, 1]} : vector<8x128xf32> to vector<8x32xf32>
    %229 = vector.extract_strided_slice %226 {offsets = [0, 32], sizes = [8, 32], strides = [1, 1]} : vector<8x128xf32> to vector<8x32xf32>
    %230 = vector.extract_strided_slice %227 {offsets = [0, 64], sizes = [8, 32], strides = [1, 1]} : vector<8x128xf32> to vector<8x32xf32>
    %231 = vector.extract_strided_slice %226 {offsets = [0, 96], sizes = [8, 32], strides = [1, 1]} : vector<8x128xf32> to vector<8x32xf32>
    %232 = arith.mulf %229, %211 : vector<8x32xf32>
    %233 = arith.mulf %228, %230 : vector<8x32xf32>
    %234 = arith.addf %232, %233 : vector<8x32xf32>
    %235 = math.tanh %234 : vector<8x32xf32>
    %236 = arith.mulf %231, %235 : vector<8x32xf32>
    %c2_i32 = arith.constant 2 : i32
    %237 = vector.broadcast %c2_i32 : i32 to vector<8x1xi32>
    %238 = arith.cmpi eq, %0, %237 : vector<8x1xi32>
    %239 = vector.shape_cast %238 : vector<8x1xi1> to vector<8x1xi1>
    %240 = vector.broadcast %239 : vector<8x1xi1> to vector<8x32xi1>
    %241 = arith.select %240, %236, %218 : vector<8x32xi1>, vector<8x32xf32>
    %242 = vector.extract_strided_slice %169 {offsets = [24, 0], sizes = [8, 128], strides = [1, 1]} : vector<64x128xf32> to vector<8x128xf32>
    %cst_55 = arith.constant dense<0.000000e+00> : vector<8x128xf32>
    %243 = tpu.matmul %236, %165, %cst_55 {dimension_numbers = #tpu.dot_dimension_numbers<[1], [0], [0], [1], [0, 0, 1, 1], [], []>} : vector<8x32xf32>, vector<32x128xf32>, vector<8x128xf32> -> vector<8x128xf32>
    %244 = arith.addf %242, %243 : vector<8x128xf32>
    %245 = arith.negf %244 : vector<8x128xf32>
    %246 = math.exp %245 : vector<8x128xf32>
    %cst_56 = arith.constant 1.000000e+00 : f32
    %247 = vector.broadcast %cst_56 : f32 to vector<8x128xf32>
    %248 = arith.addf %247, %246 : vector<8x128xf32>
    %249 = arith.divf %247, %248 : vector<8x128xf32>
    %250 = math.tanh %244 : vector<8x128xf32>
    %251 = vector.extract_strided_slice %249 {offsets = [0, 0], sizes = [8, 32], strides = [1, 1]} : vector<8x128xf32> to vector<8x32xf32>
    %252 = vector.extract_strided_slice %249 {offsets = [0, 32], sizes = [8, 32], strides = [1, 1]} : vector<8x128xf32> to vector<8x32xf32>
    %253 = vector.extract_strided_slice %250 {offsets = [0, 64], sizes = [8, 32], strides = [1, 1]} : vector<8x128xf32> to vector<8x32xf32>
    %254 = vector.extract_strided_slice %249 {offsets = [0, 96], sizes = [8, 32], strides = [1, 1]} : vector<8x128xf32> to vector<8x32xf32>
    %255 = arith.mulf %252, %234 : vector<8x32xf32>
    %256 = arith.mulf %251, %253 : vector<8x32xf32>
    %257 = arith.addf %255, %256 : vector<8x32xf32>
    %258 = math.tanh %257 : vector<8x32xf32>
    %259 = arith.mulf %254, %258 : vector<8x32xf32>
    %c3_i32 = arith.constant 3 : i32
    %260 = vector.broadcast %c3_i32 : i32 to vector<8x1xi32>
    %261 = arith.cmpi eq, %0, %260 : vector<8x1xi32>
    %262 = vector.shape_cast %261 : vector<8x1xi1> to vector<8x1xi1>
    %263 = vector.broadcast %262 : vector<8x1xi1> to vector<8x32xi1>
    %264 = arith.select %263, %259, %241 : vector<8x32xi1>, vector<8x32xf32>
    %265 = vector.extract_strided_slice %169 {offsets = [32, 0], sizes = [8, 128], strides = [1, 1]} : vector<64x128xf32> to vector<8x128xf32>
    %cst_57 = arith.constant dense<0.000000e+00> : vector<8x128xf32>
    %266 = tpu.matmul %259, %165, %cst_57 {dimension_numbers = #tpu.dot_dimension_numbers<[1], [0], [0], [1], [0, 0, 1, 1], [], []>} : vector<8x32xf32>, vector<32x128xf32>, vector<8x128xf32> -> vector<8x128xf32>
    %267 = arith.addf %265, %266 : vector<8x128xf32>
    %268 = arith.negf %267 : vector<8x128xf32>
    %269 = math.exp %268 : vector<8x128xf32>
    %cst_58 = arith.constant 1.000000e+00 : f32
    %270 = vector.broadcast %cst_58 : f32 to vector<8x128xf32>
    %271 = arith.addf %270, %269 : vector<8x128xf32>
    %272 = arith.divf %270, %271 : vector<8x128xf32>
    %273 = math.tanh %267 : vector<8x128xf32>
    %274 = vector.extract_strided_slice %272 {offsets = [0, 0], sizes = [8, 32], strides = [1, 1]} : vector<8x128xf32> to vector<8x32xf32>
    %275 = vector.extract_strided_slice %272 {offsets = [0, 32], sizes = [8, 32], strides = [1, 1]} : vector<8x128xf32> to vector<8x32xf32>
    %276 = vector.extract_strided_slice %273 {offsets = [0, 64], sizes = [8, 32], strides = [1, 1]} : vector<8x128xf32> to vector<8x32xf32>
    %277 = vector.extract_strided_slice %272 {offsets = [0, 96], sizes = [8, 32], strides = [1, 1]} : vector<8x128xf32> to vector<8x32xf32>
    %278 = arith.mulf %275, %257 : vector<8x32xf32>
    %279 = arith.mulf %274, %276 : vector<8x32xf32>
    %280 = arith.addf %278, %279 : vector<8x32xf32>
    %281 = math.tanh %280 : vector<8x32xf32>
    %282 = arith.mulf %277, %281 : vector<8x32xf32>
    %c4_i32 = arith.constant 4 : i32
    %283 = vector.broadcast %c4_i32 : i32 to vector<8x1xi32>
    %284 = arith.cmpi eq, %0, %283 : vector<8x1xi32>
    %285 = vector.shape_cast %284 : vector<8x1xi1> to vector<8x1xi1>
    %286 = vector.broadcast %285 : vector<8x1xi1> to vector<8x32xi1>
    %287 = arith.select %286, %282, %264 : vector<8x32xi1>, vector<8x32xf32>
    %288 = vector.extract_strided_slice %169 {offsets = [40, 0], sizes = [8, 128], strides = [1, 1]} : vector<64x128xf32> to vector<8x128xf32>
    %cst_59 = arith.constant dense<0.000000e+00> : vector<8x128xf32>
    %289 = tpu.matmul %282, %165, %cst_59 {dimension_numbers = #tpu.dot_dimension_numbers<[1], [0], [0], [1], [0, 0, 1, 1], [], []>} : vector<8x32xf32>, vector<32x128xf32>, vector<8x128xf32> -> vector<8x128xf32>
    %290 = arith.addf %288, %289 : vector<8x128xf32>
    %291 = arith.negf %290 : vector<8x128xf32>
    %292 = math.exp %291 : vector<8x128xf32>
    %cst_60 = arith.constant 1.000000e+00 : f32
    %293 = vector.broadcast %cst_60 : f32 to vector<8x128xf32>
    %294 = arith.addf %293, %292 : vector<8x128xf32>
    %295 = arith.divf %293, %294 : vector<8x128xf32>
    %296 = math.tanh %290 : vector<8x128xf32>
    %297 = vector.extract_strided_slice %295 {offsets = [0, 0], sizes = [8, 32], strides = [1, 1]} : vector<8x128xf32> to vector<8x32xf32>
    %298 = vector.extract_strided_slice %295 {offsets = [0, 32], sizes = [8, 32], strides = [1, 1]} : vector<8x128xf32> to vector<8x32xf32>
    %299 = vector.extract_strided_slice %296 {offsets = [0, 64], sizes = [8, 32], strides = [1, 1]} : vector<8x128xf32> to vector<8x32xf32>
    %300 = vector.extract_strided_slice %295 {offsets = [0, 96], sizes = [8, 32], strides = [1, 1]} : vector<8x128xf32> to vector<8x32xf32>
    %301 = arith.mulf %298, %280 : vector<8x32xf32>
    %302 = arith.mulf %297, %299 : vector<8x32xf32>
    %303 = arith.addf %301, %302 : vector<8x32xf32>
    %304 = math.tanh %303 : vector<8x32xf32>
    %305 = arith.mulf %300, %304 : vector<8x32xf32>
    %c5_i32 = arith.constant 5 : i32
    %306 = vector.broadcast %c5_i32 : i32 to vector<8x1xi32>
    %307 = arith.cmpi eq, %0, %306 : vector<8x1xi32>
    %308 = vector.shape_cast %307 : vector<8x1xi1> to vector<8x1xi1>
    %309 = vector.broadcast %308 : vector<8x1xi1> to vector<8x32xi1>
    %310 = arith.select %309, %305, %287 : vector<8x32xi1>, vector<8x32xf32>
    %311 = vector.extract_strided_slice %169 {offsets = [48, 0], sizes = [8, 128], strides = [1, 1]} : vector<64x128xf32> to vector<8x128xf32>
    %cst_61 = arith.constant dense<0.000000e+00> : vector<8x128xf32>
    %312 = tpu.matmul %305, %165, %cst_61 {dimension_numbers = #tpu.dot_dimension_numbers<[1], [0], [0], [1], [0, 0, 1, 1], [], []>} : vector<8x32xf32>, vector<32x128xf32>, vector<8x128xf32> -> vector<8x128xf32>
    %313 = arith.addf %311, %312 : vector<8x128xf32>
    %314 = arith.negf %313 : vector<8x128xf32>
    %315 = math.exp %314 : vector<8x128xf32>
    %cst_62 = arith.constant 1.000000e+00 : f32
    %316 = vector.broadcast %cst_62 : f32 to vector<8x128xf32>
    %317 = arith.addf %316, %315 : vector<8x128xf32>
    %318 = arith.divf %316, %317 : vector<8x128xf32>
    %319 = math.tanh %313 : vector<8x128xf32>
    %320 = vector.extract_strided_slice %318 {offsets = [0, 0], sizes = [8, 32], strides = [1, 1]} : vector<8x128xf32> to vector<8x32xf32>
    %321 = vector.extract_strided_slice %318 {offsets = [0, 32], sizes = [8, 32], strides = [1, 1]} : vector<8x128xf32> to vector<8x32xf32>
    %322 = vector.extract_strided_slice %319 {offsets = [0, 64], sizes = [8, 32], strides = [1, 1]} : vector<8x128xf32> to vector<8x32xf32>
    %323 = vector.extract_strided_slice %318 {offsets = [0, 96], sizes = [8, 32], strides = [1, 1]} : vector<8x128xf32> to vector<8x32xf32>
    %324 = arith.mulf %321, %303 : vector<8x32xf32>
    %325 = arith.mulf %320, %322 : vector<8x32xf32>
    %326 = arith.addf %324, %325 : vector<8x32xf32>
    %327 = math.tanh %326 : vector<8x32xf32>
    %328 = arith.mulf %323, %327 : vector<8x32xf32>
    %c6_i32 = arith.constant 6 : i32
    %329 = vector.broadcast %c6_i32 : i32 to vector<8x1xi32>
    %330 = arith.cmpi eq, %0, %329 : vector<8x1xi32>
    %331 = vector.shape_cast %330 : vector<8x1xi1> to vector<8x1xi1>
    %332 = vector.broadcast %331 : vector<8x1xi1> to vector<8x32xi1>
    %333 = arith.select %332, %328, %310 : vector<8x32xi1>, vector<8x32xf32>
    %334 = vector.extract_strided_slice %169 {offsets = [56, 0], sizes = [8, 128], strides = [1, 1]} : vector<64x128xf32> to vector<8x128xf32>
    %cst_63 = arith.constant dense<0.000000e+00> : vector<8x128xf32>
    %335 = tpu.matmul %328, %165, %cst_63 {dimension_numbers = #tpu.dot_dimension_numbers<[1], [0], [0], [1], [0, 0, 1, 1], [], []>} : vector<8x32xf32>, vector<32x128xf32>, vector<8x128xf32> -> vector<8x128xf32>
    %336 = arith.addf %334, %335 : vector<8x128xf32>
    %337 = arith.negf %336 : vector<8x128xf32>
    %338 = math.exp %337 : vector<8x128xf32>
    %cst_64 = arith.constant 1.000000e+00 : f32
    %339 = vector.broadcast %cst_64 : f32 to vector<8x128xf32>
    %340 = arith.addf %339, %338 : vector<8x128xf32>
    %341 = arith.divf %339, %340 : vector<8x128xf32>
    %342 = math.tanh %336 : vector<8x128xf32>
    %343 = vector.extract_strided_slice %341 {offsets = [0, 0], sizes = [8, 32], strides = [1, 1]} : vector<8x128xf32> to vector<8x32xf32>
    %344 = vector.extract_strided_slice %341 {offsets = [0, 32], sizes = [8, 32], strides = [1, 1]} : vector<8x128xf32> to vector<8x32xf32>
    %345 = vector.extract_strided_slice %342 {offsets = [0, 64], sizes = [8, 32], strides = [1, 1]} : vector<8x128xf32> to vector<8x32xf32>
    %346 = vector.extract_strided_slice %341 {offsets = [0, 96], sizes = [8, 32], strides = [1, 1]} : vector<8x128xf32> to vector<8x32xf32>
    %347 = arith.mulf %344, %326 : vector<8x32xf32>
    %348 = arith.mulf %343, %345 : vector<8x32xf32>
    %349 = arith.addf %347, %348 : vector<8x32xf32>
    %350 = math.tanh %349 : vector<8x32xf32>
    %351 = arith.mulf %346, %350 : vector<8x32xf32>
    %c7_i32 = arith.constant 7 : i32
    %352 = vector.broadcast %c7_i32 : i32 to vector<8x1xi32>
    %353 = arith.cmpi eq, %0, %352 : vector<8x1xi32>
    %354 = vector.shape_cast %353 : vector<8x1xi1> to vector<8x1xi1>
    %355 = vector.broadcast %354 : vector<8x1xi1> to vector<8x32xi1>
    %356 = arith.select %355, %351, %333 : vector<8x32xi1>, vector<8x32xf32>
    %c0_65 = arith.constant 0 : index
    %c0_66 = arith.constant 0 : index
    %357 = vector.load %arg9[%c0_65, %c0_66] : memref<32x3xf32, #tpu.memory_space<vmem>>, vector<32x3xf32>
    %cst_67 = arith.constant dense<0.000000e+00> : vector<8x3xf32>
    %358 = tpu.matmul %356, %357, %cst_67 {dimension_numbers = #tpu.dot_dimension_numbers<[1], [0], [0], [1], [0, 0, 1, 1], [], []>} : vector<8x32xf32>, vector<32x3xf32>, vector<8x3xf32> -> vector<8x3xf32>
    %c0_68 = arith.constant 0 : index
    %c0_69 = arith.constant 0 : index
    %359 = vector.load %arg10[%c0_68, %c0_69] : memref<1x3xf32, #tpu.memory_space<vmem>>, vector<1x3xf32>
    %360 = vector.broadcast %359 : vector<1x3xf32> to vector<8x3xf32>
    %361 = arith.addf %358, %360 : vector<8x3xf32>
    %c0_70 = arith.constant 0 : index
    %c0_71 = arith.constant 0 : index
    %362 = vector.load %arg11[%c0_70, %c0_71] : memref<8x3xf32, #tpu.memory_space<vmem>>, vector<8x3xf32>
    tpu.vector_store %arg11[%c0_70, %c0_71], %361 {strides = array<i32>} : memref<8x3xf32, #tpu.memory_space<vmem>>, vector<8x3xf32>,
    return
  }
  func.func @transform_0(%arg0: i32) -> (i32, i32, i32) {
    %c0_i32 = arith.constant 0 : i32
    %c0_i32_0 = arith.constant 0 : i32
    %c0_i32_1 = arith.constant 0 : i32
    return %c0_i32, %arg0, %c0_i32_0 : i32, i32, i32
  }
  func.func @transform_1(%arg0: i32) -> (i32, i32) {
    %c0_i32 = arith.constant 0 : i32
    %c0_i32_0 = arith.constant 0 : i32
    return %arg0, %c0_i32 : i32, i32
  }
  func.func @transform_2(%arg0: i32) -> (i32, i32) {
    %c0_i32 = arith.constant 0 : i32
    %c0_i32_0 = arith.constant 0 : i32
    %c0_i32_1 = arith.constant 0 : i32
    return %c0_i32, %c0_i32_0 : i32, i32
  }
  func.func @transform_3(%arg0: i32) -> (i32, i32) {
    %c0_i32 = arith.constant 0 : i32
    %c0_i32_0 = arith.constant 0 : i32
    %c0_i32_1 = arith.constant 0 : i32
    return %c0_i32, %c0_i32_0 : i32, i32
  }
  func.func @transform_4(%arg0: i32) -> (i32, i32) {
    %c0_i32 = arith.constant 0 : i32
    %c0_i32_0 = arith.constant 0 : i32
    %c0_i32_1 = arith.constant 0 : i32
    return %c0_i32, %c0_i32_0 : i32, i32
  }
  func.func @transform_5(%arg0: i32) -> (i32, i32) {
    %c0_i32 = arith.constant 0 : i32
    %c0_i32_0 = arith.constant 0 : i32
    %c0_i32_1 = arith.constant 0 : i32
    return %c0_i32, %c0_i32_0 : i32, i32
  }
  func.func @transform_6(%arg0: i32) -> (i32, i32) {
    %c0_i32 = arith.constant 0 : i32
    %c0_i32_0 = arith.constant 0 : i32
    %c0_i32_1 = arith.constant 0 : i32
    return %c0_i32, %c0_i32_0 : i32, i32
  }
  func.func @transform_7(%arg0: i32) -> (i32, i32) {
    %c0_i32 = arith.constant 0 : i32
    %c0_i32_0 = arith.constant 0 : i32
    %c0_i32_1 = arith.constant 0 : i32
    return %c0_i32, %c0_i32_0 : i32, i32
  }
  func.func @transform_8(%arg0: i32) -> (i32, i32) {
    %c0_i32 = arith.constant 0 : i32
    %c0_i32_0 = arith.constant 0 : i32
    %c0_i32_1 = arith.constant 0 : i32
    return %c0_i32, %c0_i32_0 : i32, i32
  }
  func.func @transform_9(%arg0: i32) -> (i32, i32) {
    %c0_i32 = arith.constant 0 : i32
    %c0_i32_0 = arith.constant 0 : i32
    %c0_i32_1 = arith.constant 0 : i32
    return %c0_i32, %c0_i32_0 : i32, i32
  }
  func.func @transform_10(%arg0: i32) -> (i32, i32) {
    %c0_i32 = arith.constant 0 : i32
    %c0_i32_0 = arith.constant 0 : i32
    return %arg0, %c0_i32 : i32, i32
  }
}

module attributes {stable_mosaic.version = 11 : i64} {
  func.func @kernel(%arg0: i32, %arg1: memref<8x8x1xf32, #tpu.memory_space<vmem>>, %arg2: memref<8x3xf32, #tpu.memory_space<vmem>>, %arg3: memref<3x128xf32, #tpu.memory_space<vmem>>, %arg4: memref<1x128xf32, #tpu.memory_space<vmem>>, %arg5: memref<32x128xf32, #tpu.memory_space<vmem>>, %arg6: memref<1x128xf32, #tpu.memory_space<vmem>>, %arg7: memref<32x128xf32, #tpu.memory_space<vmem>>, %arg8: memref<32x128xf32, #tpu.memory_space<vmem>>, %arg9: memref<1x128xf32, #tpu.memory_space<vmem>>, %arg10: memref<32x1xf32, #tpu.memory_space<vmem>>, %arg11: memref<1x1xf32, #tpu.memory_space<vmem>>, %arg12: memref<8x8x1xf32, #tpu.memory_space<vmem>>, %arg13: memref<64x32xf32, #tpu.memory_space<vmem>>) attributes {dimension_semantics = [#tpu.dimension_semantics<parallel>], iteration_bounds = array<i64: 1>, scalar_prefetch = 0 : i64, scratch_operands = 1 : i64, tpu.core_type = #tpu.core_type<tc>, window_params = [{transform_indices = @transform_0, window_bounds = array<i64: 8, 8, 1>}, {transform_indices = @transform_1, window_bounds = array<i64: 8, 3>}, {pipeline_mode = #tpu.pipeline_mode<synchronous>, transform_indices = @transform_2, window_bounds = array<i64: 3, 128>}, {pipeline_mode = #tpu.pipeline_mode<synchronous>, transform_indices = @transform_3, window_bounds = array<i64: 1, 128>}, {pipeline_mode = #tpu.pipeline_mode<synchronous>, transform_indices = @transform_4, window_bounds = array<i64: 32, 128>}, {pipeline_mode = #tpu.pipeline_mode<synchronous>, transform_indices = @transform_5, window_bounds = array<i64: 1, 128>}, {pipeline_mode = #tpu.pipeline_mode<synchronous>, transform_indices = @transform_6, window_bounds = array<i64: 32, 128>}, {pipeline_mode = #tpu.pipeline_mode<synchronous>, transform_indices = @transform_7, window_bounds = array<i64: 32, 128>}, {pipeline_mode = #tpu.pipeline_mode<synchronous>, transform_indices = @transform_8, window_bounds = array<i64: 1, 128>}, {pipeline_mode = #tpu.pipeline_mode<synchronous>, transform_indices = @transform_9, window_bounds = array<i64: 32, 1>}, {pipeline_mode = #tpu.pipeline_mode<synchronous>, transform_indices = @transform_10, window_bounds = array<i64: 1, 1>}, {transform_indices = @transform_11, window_bounds = array<i64: 8, 8, 1>}]} {
    %c0 = arith.constant 0 : index
    %c0_0 = arith.constant 0 : index
    %0 = vector.load %arg2[%c0, %c0_0] : memref<8x3xf32, #tpu.memory_space<vmem>>, vector<8x3xf32>
    %c0_1 = arith.constant 0 : index
    %c0_2 = arith.constant 0 : index
    %1 = vector.load %arg3[%c0_1, %c0_2] : memref<3x128xf32, #tpu.memory_space<vmem>>, vector<3x128xf32>
    %cst = arith.constant dense<0.000000e+00> : vector<8x128xf32>
    %2 = tpu.matmul %0, %1, %cst {dimension_numbers = #tpu.dot_dimension_numbers<[1], [0], [0], [1], [0, 0, 1, 1], [], []>} : vector<8x3xf32>, vector<3x128xf32>, vector<8x128xf32> -> vector<8x128xf32>
    %c0_3 = arith.constant 0 : index
    %c0_4 = arith.constant 0 : index
    %3 = vector.load %arg6[%c0_3, %c0_4] : memref<1x128xf32, #tpu.memory_space<vmem>>, vector<1x128xf32>
    %4 = vector.broadcast %3 : vector<1x128xf32> to vector<8x128xf32>
    %5 = arith.addf %2, %4 : vector<8x128xf32>
    %c0_5 = arith.constant 0 : index
    %c0_6 = arith.constant 0 : index
    %c0_7 = arith.constant 0 : index
    %6 = vector.load %arg1[%c0_5, %c0_6, %c0_7] : memref<8x8x1xf32, #tpu.memory_space<vmem>>, vector<8x8x1xf32>
    %7 = vector.shape_cast %6 : vector<8x8x1xf32> to vector<64x1xf32>
    %c0_8 = arith.constant 0 : index
    %c0_9 = arith.constant 0 : index
    %8 = vector.load %arg4[%c0_8, %c0_9] : memref<1x128xf32, #tpu.memory_space<vmem>>, vector<1x128xf32>
    %9 = vector.broadcast %7 : vector<64x1xf32> to vector<64x128xf32>
    %10 = vector.broadcast %8 : vector<1x128xf32> to vector<64x128xf32>
    %11 = arith.mulf %9, %10 : vector<64x128xf32>
    %c0_10 = arith.constant 0 : index
    %c0_11 = arith.constant 0 : index
    %12 = vector.load %arg5[%c0_10, %c0_11] : memref<32x128xf32, #tpu.memory_space<vmem>>, vector<32x128xf32>
    %cst_12 = arith.constant 0.000000e+00 : f32
    %13 = vector.broadcast %cst_12 : f32 to vector<8x32xf32>
    %cst_13 = arith.constant 0.000000e+00 : f32
    %14 = vector.broadcast %cst_13 : f32 to vector<8x32xf32>
    %15 = vector.extract_strided_slice %11 {offsets = [0, 0], sizes = [8, 128], strides = [1, 1]} : vector<64x128xf32> to vector<8x128xf32>
    %16 = arith.addf %5, %15 : vector<8x128xf32>
    %cst_14 = arith.constant dense<0.000000e+00> : vector<8x128xf32>
    %17 = tpu.matmul %13, %12, %cst_14 {dimension_numbers = #tpu.dot_dimension_numbers<[1], [0], [0], [1], [0, 0, 1, 1], [], []>} : vector<8x32xf32>, vector<32x128xf32>, vector<8x128xf32> -> vector<8x128xf32>
    %18 = arith.addf %16, %17 : vector<8x128xf32>
    %19 = arith.negf %18 : vector<8x128xf32>
    %20 = math.exp %19 : vector<8x128xf32>
    %cst_15 = arith.constant 1.000000e+00 : f32
    %21 = vector.broadcast %cst_15 : f32 to vector<8x128xf32>
    %22 = arith.addf %21, %20 : vector<8x128xf32>
    %23 = arith.divf %21, %22 : vector<8x128xf32>
    %24 = math.tanh %18 : vector<8x128xf32>
    %25 = vector.extract_strided_slice %23 {offsets = [0, 0], sizes = [8, 32], strides = [1, 1]} : vector<8x128xf32> to vector<8x32xf32>
    %26 = vector.extract_strided_slice %23 {offsets = [0, 32], sizes = [8, 32], strides = [1, 1]} : vector<8x128xf32> to vector<8x32xf32>
    %27 = vector.extract_strided_slice %24 {offsets = [0, 64], sizes = [8, 32], strides = [1, 1]} : vector<8x128xf32> to vector<8x32xf32>
    %28 = vector.extract_strided_slice %23 {offsets = [0, 96], sizes = [8, 32], strides = [1, 1]} : vector<8x128xf32> to vector<8x32xf32>
    %29 = arith.mulf %26, %14 : vector<8x32xf32>
    %30 = arith.mulf %25, %27 : vector<8x32xf32>
    %31 = arith.addf %29, %30 : vector<8x32xf32>
    %32 = math.tanh %31 : vector<8x32xf32>
    %33 = arith.mulf %28, %32 : vector<8x32xf32>
    %c0_16 = arith.constant 0 : index
    %c0_17 = arith.constant 0 : index
    %34 = vector.load %arg13[%c0_16, %c0_17] : memref<64x32xf32, #tpu.memory_space<vmem>>, vector<8x32xf32>
    tpu.vector_store %arg13[%c0_16, %c0_17], %33 {strides = array<i32>} : memref<64x32xf32, #tpu.memory_space<vmem>>, vector<8x32xf32>,
    %35 = vector.extract_strided_slice %11 {offsets = [8, 0], sizes = [8, 128], strides = [1, 1]} : vector<64x128xf32> to vector<8x128xf32>
    %36 = arith.addf %5, %35 : vector<8x128xf32>
    %cst_18 = arith.constant dense<0.000000e+00> : vector<8x128xf32>
    %37 = tpu.matmul %33, %12, %cst_18 {dimension_numbers = #tpu.dot_dimension_numbers<[1], [0], [0], [1], [0, 0, 1, 1], [], []>} : vector<8x32xf32>, vector<32x128xf32>, vector<8x128xf32> -> vector<8x128xf32>
    %38 = arith.addf %36, %37 : vector<8x128xf32>
    %39 = arith.negf %38 : vector<8x128xf32>
    %40 = math.exp %39 : vector<8x128xf32>
    %cst_19 = arith.constant 1.000000e+00 : f32
    %41 = vector.broadcast %cst_19 : f32 to vector<8x128xf32>
    %42 = arith.addf %41, %40 : vector<8x128xf32>
    %43 = arith.divf %41, %42 : vector<8x128xf32>
    %44 = math.tanh %38 : vector<8x128xf32>
    %45 = vector.extract_strided_slice %43 {offsets = [0, 0], sizes = [8, 32], strides = [1, 1]} : vector<8x128xf32> to vector<8x32xf32>
    %46 = vector.extract_strided_slice %43 {offsets = [0, 32], sizes = [8, 32], strides = [1, 1]} : vector<8x128xf32> to vector<8x32xf32>
    %47 = vector.extract_strided_slice %44 {offsets = [0, 64], sizes = [8, 32], strides = [1, 1]} : vector<8x128xf32> to vector<8x32xf32>
    %48 = vector.extract_strided_slice %43 {offsets = [0, 96], sizes = [8, 32], strides = [1, 1]} : vector<8x128xf32> to vector<8x32xf32>
    %49 = arith.mulf %46, %31 : vector<8x32xf32>
    %50 = arith.mulf %45, %47 : vector<8x32xf32>
    %51 = arith.addf %49, %50 : vector<8x32xf32>
    %52 = math.tanh %51 : vector<8x32xf32>
    %53 = arith.mulf %48, %52 : vector<8x32xf32>
    %c8 = arith.constant 8 : index
    %c0_20 = arith.constant 0 : index
    %54 = vector.load %arg13[%c8, %c0_20] : memref<64x32xf32, #tpu.memory_space<vmem>>, vector<8x32xf32>
    tpu.vector_store %arg13[%c8, %c0_20], %53 {strides = array<i32>} : memref<64x32xf32, #tpu.memory_space<vmem>>, vector<8x32xf32>,
    %55 = vector.extract_strided_slice %11 {offsets = [16, 0], sizes = [8, 128], strides = [1, 1]} : vector<64x128xf32> to vector<8x128xf32>
    %56 = arith.addf %5, %55 : vector<8x128xf32>
    %cst_21 = arith.constant dense<0.000000e+00> : vector<8x128xf32>
    %57 = tpu.matmul %53, %12, %cst_21 {dimension_numbers = #tpu.dot_dimension_numbers<[1], [0], [0], [1], [0, 0, 1, 1], [], []>} : vector<8x32xf32>, vector<32x128xf32>, vector<8x128xf32> -> vector<8x128xf32>
    %58 = arith.addf %56, %57 : vector<8x128xf32>
    %59 = arith.negf %58 : vector<8x128xf32>
    %60 = math.exp %59 : vector<8x128xf32>
    %cst_22 = arith.constant 1.000000e+00 : f32
    %61 = vector.broadcast %cst_22 : f32 to vector<8x128xf32>
    %62 = arith.addf %61, %60 : vector<8x128xf32>
    %63 = arith.divf %61, %62 : vector<8x128xf32>
    %64 = math.tanh %58 : vector<8x128xf32>
    %65 = vector.extract_strided_slice %63 {offsets = [0, 0], sizes = [8, 32], strides = [1, 1]} : vector<8x128xf32> to vector<8x32xf32>
    %66 = vector.extract_strided_slice %63 {offsets = [0, 32], sizes = [8, 32], strides = [1, 1]} : vector<8x128xf32> to vector<8x32xf32>
    %67 = vector.extract_strided_slice %64 {offsets = [0, 64], sizes = [8, 32], strides = [1, 1]} : vector<8x128xf32> to vector<8x32xf32>
    %68 = vector.extract_strided_slice %63 {offsets = [0, 96], sizes = [8, 32], strides = [1, 1]} : vector<8x128xf32> to vector<8x32xf32>
    %69 = arith.mulf %66, %51 : vector<8x32xf32>
    %70 = arith.mulf %65, %67 : vector<8x32xf32>
    %71 = arith.addf %69, %70 : vector<8x32xf32>
    %72 = math.tanh %71 : vector<8x32xf32>
    %73 = arith.mulf %68, %72 : vector<8x32xf32>
    %c16 = arith.constant 16 : index
    %c0_23 = arith.constant 0 : index
    %74 = vector.load %arg13[%c16, %c0_23] : memref<64x32xf32, #tpu.memory_space<vmem>>, vector<8x32xf32>
    tpu.vector_store %arg13[%c16, %c0_23], %73 {strides = array<i32>} : memref<64x32xf32, #tpu.memory_space<vmem>>, vector<8x32xf32>,
    %75 = vector.extract_strided_slice %11 {offsets = [24, 0], sizes = [8, 128], strides = [1, 1]} : vector<64x128xf32> to vector<8x128xf32>
    %76 = arith.addf %5, %75 : vector<8x128xf32>
    %cst_24 = arith.constant dense<0.000000e+00> : vector<8x128xf32>
    %77 = tpu.matmul %73, %12, %cst_24 {dimension_numbers = #tpu.dot_dimension_numbers<[1], [0], [0], [1], [0, 0, 1, 1], [], []>} : vector<8x32xf32>, vector<32x128xf32>, vector<8x128xf32> -> vector<8x128xf32>
    %78 = arith.addf %76, %77 : vector<8x128xf32>
    %79 = arith.negf %78 : vector<8x128xf32>
    %80 = math.exp %79 : vector<8x128xf32>
    %cst_25 = arith.constant 1.000000e+00 : f32
    %81 = vector.broadcast %cst_25 : f32 to vector<8x128xf32>
    %82 = arith.addf %81, %80 : vector<8x128xf32>
    %83 = arith.divf %81, %82 : vector<8x128xf32>
    %84 = math.tanh %78 : vector<8x128xf32>
    %85 = vector.extract_strided_slice %83 {offsets = [0, 0], sizes = [8, 32], strides = [1, 1]} : vector<8x128xf32> to vector<8x32xf32>
    %86 = vector.extract_strided_slice %83 {offsets = [0, 32], sizes = [8, 32], strides = [1, 1]} : vector<8x128xf32> to vector<8x32xf32>
    %87 = vector.extract_strided_slice %84 {offsets = [0, 64], sizes = [8, 32], strides = [1, 1]} : vector<8x128xf32> to vector<8x32xf32>
    %88 = vector.extract_strided_slice %83 {offsets = [0, 96], sizes = [8, 32], strides = [1, 1]} : vector<8x128xf32> to vector<8x32xf32>
    %89 = arith.mulf %86, %71 : vector<8x32xf32>
    %90 = arith.mulf %85, %87 : vector<8x32xf32>
    %91 = arith.addf %89, %90 : vector<8x32xf32>
    %92 = math.tanh %91 : vector<8x32xf32>
    %93 = arith.mulf %88, %92 : vector<8x32xf32>
    %c24 = arith.constant 24 : index
    %c0_26 = arith.constant 0 : index
    %94 = vector.load %arg13[%c24, %c0_26] : memref<64x32xf32, #tpu.memory_space<vmem>>, vector<8x32xf32>
    tpu.vector_store %arg13[%c24, %c0_26], %93 {strides = array<i32>} : memref<64x32xf32, #tpu.memory_space<vmem>>, vector<8x32xf32>,
    %95 = vector.extract_strided_slice %11 {offsets = [32, 0], sizes = [8, 128], strides = [1, 1]} : vector<64x128xf32> to vector<8x128xf32>
    %96 = arith.addf %5, %95 : vector<8x128xf32>
    %cst_27 = arith.constant dense<0.000000e+00> : vector<8x128xf32>
    %97 = tpu.matmul %93, %12, %cst_27 {dimension_numbers = #tpu.dot_dimension_numbers<[1], [0], [0], [1], [0, 0, 1, 1], [], []>} : vector<8x32xf32>, vector<32x128xf32>, vector<8x128xf32> -> vector<8x128xf32>
    %98 = arith.addf %96, %97 : vector<8x128xf32>
    %99 = arith.negf %98 : vector<8x128xf32>
    %100 = math.exp %99 : vector<8x128xf32>
    %cst_28 = arith.constant 1.000000e+00 : f32
    %101 = vector.broadcast %cst_28 : f32 to vector<8x128xf32>
    %102 = arith.addf %101, %100 : vector<8x128xf32>
    %103 = arith.divf %101, %102 : vector<8x128xf32>
    %104 = math.tanh %98 : vector<8x128xf32>
    %105 = vector.extract_strided_slice %103 {offsets = [0, 0], sizes = [8, 32], strides = [1, 1]} : vector<8x128xf32> to vector<8x32xf32>
    %106 = vector.extract_strided_slice %103 {offsets = [0, 32], sizes = [8, 32], strides = [1, 1]} : vector<8x128xf32> to vector<8x32xf32>
    %107 = vector.extract_strided_slice %104 {offsets = [0, 64], sizes = [8, 32], strides = [1, 1]} : vector<8x128xf32> to vector<8x32xf32>
    %108 = vector.extract_strided_slice %103 {offsets = [0, 96], sizes = [8, 32], strides = [1, 1]} : vector<8x128xf32> to vector<8x32xf32>
    %109 = arith.mulf %106, %91 : vector<8x32xf32>
    %110 = arith.mulf %105, %107 : vector<8x32xf32>
    %111 = arith.addf %109, %110 : vector<8x32xf32>
    %112 = math.tanh %111 : vector<8x32xf32>
    %113 = arith.mulf %108, %112 : vector<8x32xf32>
    %c32 = arith.constant 32 : index
    %c0_29 = arith.constant 0 : index
    %114 = vector.load %arg13[%c32, %c0_29] : memref<64x32xf32, #tpu.memory_space<vmem>>, vector<8x32xf32>
    tpu.vector_store %arg13[%c32, %c0_29], %113 {strides = array<i32>} : memref<64x32xf32, #tpu.memory_space<vmem>>, vector<8x32xf32>,
    %115 = vector.extract_strided_slice %11 {offsets = [40, 0], sizes = [8, 128], strides = [1, 1]} : vector<64x128xf32> to vector<8x128xf32>
    %116 = arith.addf %5, %115 : vector<8x128xf32>
    %cst_30 = arith.constant dense<0.000000e+00> : vector<8x128xf32>
    %117 = tpu.matmul %113, %12, %cst_30 {dimension_numbers = #tpu.dot_dimension_numbers<[1], [0], [0], [1], [0, 0, 1, 1], [], []>} : vector<8x32xf32>, vector<32x128xf32>, vector<8x128xf32> -> vector<8x128xf32>
    %118 = arith.addf %116, %117 : vector<8x128xf32>
    %119 = arith.negf %118 : vector<8x128xf32>
    %120 = math.exp %119 : vector<8x128xf32>
    %cst_31 = arith.constant 1.000000e+00 : f32
    %121 = vector.broadcast %cst_31 : f32 to vector<8x128xf32>
    %122 = arith.addf %121, %120 : vector<8x128xf32>
    %123 = arith.divf %121, %122 : vector<8x128xf32>
    %124 = math.tanh %118 : vector<8x128xf32>
    %125 = vector.extract_strided_slice %123 {offsets = [0, 0], sizes = [8, 32], strides = [1, 1]} : vector<8x128xf32> to vector<8x32xf32>
    %126 = vector.extract_strided_slice %123 {offsets = [0, 32], sizes = [8, 32], strides = [1, 1]} : vector<8x128xf32> to vector<8x32xf32>
    %127 = vector.extract_strided_slice %124 {offsets = [0, 64], sizes = [8, 32], strides = [1, 1]} : vector<8x128xf32> to vector<8x32xf32>
    %128 = vector.extract_strided_slice %123 {offsets = [0, 96], sizes = [8, 32], strides = [1, 1]} : vector<8x128xf32> to vector<8x32xf32>
    %129 = arith.mulf %126, %111 : vector<8x32xf32>
    %130 = arith.mulf %125, %127 : vector<8x32xf32>
    %131 = arith.addf %129, %130 : vector<8x32xf32>
    %132 = math.tanh %131 : vector<8x32xf32>
    %133 = arith.mulf %128, %132 : vector<8x32xf32>
    %c40 = arith.constant 40 : index
    %c0_32 = arith.constant 0 : index
    %134 = vector.load %arg13[%c40, %c0_32] : memref<64x32xf32, #tpu.memory_space<vmem>>, vector<8x32xf32>
    tpu.vector_store %arg13[%c40, %c0_32], %133 {strides = array<i32>} : memref<64x32xf32, #tpu.memory_space<vmem>>, vector<8x32xf32>,
    %135 = vector.extract_strided_slice %11 {offsets = [48, 0], sizes = [8, 128], strides = [1, 1]} : vector<64x128xf32> to vector<8x128xf32>
    %136 = arith.addf %5, %135 : vector<8x128xf32>
    %cst_33 = arith.constant dense<0.000000e+00> : vector<8x128xf32>
    %137 = tpu.matmul %133, %12, %cst_33 {dimension_numbers = #tpu.dot_dimension_numbers<[1], [0], [0], [1], [0, 0, 1, 1], [], []>} : vector<8x32xf32>, vector<32x128xf32>, vector<8x128xf32> -> vector<8x128xf32>
    %138 = arith.addf %136, %137 : vector<8x128xf32>
    %139 = arith.negf %138 : vector<8x128xf32>
    %140 = math.exp %139 : vector<8x128xf32>
    %cst_34 = arith.constant 1.000000e+00 : f32
    %141 = vector.broadcast %cst_34 : f32 to vector<8x128xf32>
    %142 = arith.addf %141, %140 : vector<8x128xf32>
    %143 = arith.divf %141, %142 : vector<8x128xf32>
    %144 = math.tanh %138 : vector<8x128xf32>
    %145 = vector.extract_strided_slice %143 {offsets = [0, 0], sizes = [8, 32], strides = [1, 1]} : vector<8x128xf32> to vector<8x32xf32>
    %146 = vector.extract_strided_slice %143 {offsets = [0, 32], sizes = [8, 32], strides = [1, 1]} : vector<8x128xf32> to vector<8x32xf32>
    %147 = vector.extract_strided_slice %144 {offsets = [0, 64], sizes = [8, 32], strides = [1, 1]} : vector<8x128xf32> to vector<8x32xf32>
    %148 = vector.extract_strided_slice %143 {offsets = [0, 96], sizes = [8, 32], strides = [1, 1]} : vector<8x128xf32> to vector<8x32xf32>
    %149 = arith.mulf %146, %131 : vector<8x32xf32>
    %150 = arith.mulf %145, %147 : vector<8x32xf32>
    %151 = arith.addf %149, %150 : vector<8x32xf32>
    %152 = math.tanh %151 : vector<8x32xf32>
    %153 = arith.mulf %148, %152 : vector<8x32xf32>
    %c48 = arith.constant 48 : index
    %c0_35 = arith.constant 0 : index
    %154 = vector.load %arg13[%c48, %c0_35] : memref<64x32xf32, #tpu.memory_space<vmem>>, vector<8x32xf32>
    tpu.vector_store %arg13[%c48, %c0_35], %153 {strides = array<i32>} : memref<64x32xf32, #tpu.memory_space<vmem>>, vector<8x32xf32>,
    %155 = vector.extract_strided_slice %11 {offsets = [56, 0], sizes = [8, 128], strides = [1, 1]} : vector<64x128xf32> to vector<8x128xf32>
    %156 = arith.addf %5, %155 : vector<8x128xf32>
    %cst_36 = arith.constant dense<0.000000e+00> : vector<8x128xf32>
    %157 = tpu.matmul %153, %12, %cst_36 {dimension_numbers = #tpu.dot_dimension_numbers<[1], [0], [0], [1], [0, 0, 1, 1], [], []>} : vector<8x32xf32>, vector<32x128xf32>, vector<8x128xf32> -> vector<8x128xf32>
    %158 = arith.addf %156, %157 : vector<8x128xf32>
    %159 = arith.negf %158 : vector<8x128xf32>
    %160 = math.exp %159 : vector<8x128xf32>
    %cst_37 = arith.constant 1.000000e+00 : f32
    %161 = vector.broadcast %cst_37 : f32 to vector<8x128xf32>
    %162 = arith.addf %161, %160 : vector<8x128xf32>
    %163 = arith.divf %161, %162 : vector<8x128xf32>
    %164 = math.tanh %158 : vector<8x128xf32>
    %165 = vector.extract_strided_slice %163 {offsets = [0, 0], sizes = [8, 32], strides = [1, 1]} : vector<8x128xf32> to vector<8x32xf32>
    %166 = vector.extract_strided_slice %163 {offsets = [0, 32], sizes = [8, 32], strides = [1, 1]} : vector<8x128xf32> to vector<8x32xf32>
    %167 = vector.extract_strided_slice %164 {offsets = [0, 64], sizes = [8, 32], strides = [1, 1]} : vector<8x128xf32> to vector<8x32xf32>
    %168 = vector.extract_strided_slice %163 {offsets = [0, 96], sizes = [8, 32], strides = [1, 1]} : vector<8x128xf32> to vector<8x32xf32>
    %169 = arith.mulf %166, %151 : vector<8x32xf32>
    %170 = arith.mulf %165, %167 : vector<8x32xf32>
    %171 = arith.addf %169, %170 : vector<8x32xf32>
    %172 = math.tanh %171 : vector<8x32xf32>
    %173 = arith.mulf %168, %172 : vector<8x32xf32>
    %c56 = arith.constant 56 : index
    %c0_38 = arith.constant 0 : index
    %174 = vector.load %arg13[%c56, %c0_38] : memref<64x32xf32, #tpu.memory_space<vmem>>, vector<8x32xf32>
    tpu.vector_store %arg13[%c56, %c0_38], %173 {strides = array<i32>} : memref<64x32xf32, #tpu.memory_space<vmem>>, vector<8x32xf32>,
    %c0_39 = arith.constant 0 : index
    %c0_40 = arith.constant 0 : index
    %175 = vector.load %arg7[%c0_39, %c0_40] : memref<32x128xf32, #tpu.memory_space<vmem>>, vector<32x128xf32>
    %c0_41 = arith.constant 0 : index
    %c0_42 = arith.constant 0 : index
    %176 = vector.load %arg8[%c0_41, %c0_42] : memref<32x128xf32, #tpu.memory_space<vmem>>, vector<32x128xf32>
    %c0_43 = arith.constant 0 : index
    %c0_44 = arith.constant 0 : index
    %177 = vector.load %arg9[%c0_43, %c0_44] : memref<1x128xf32, #tpu.memory_space<vmem>>, vector<1x128xf32>
    %c0_45 = arith.constant 0 : index
    %c0_46 = arith.constant 0 : index
    %178 = vector.load %arg13[%c0_45, %c0_46] : memref<64x32xf32, #tpu.memory_space<vmem>>, vector<64x32xf32>
    %cst_47 = arith.constant dense<0.000000e+00> : vector<64x128xf32>
    %179 = tpu.matmul %178, %175, %cst_47 {dimension_numbers = #tpu.dot_dimension_numbers<[1], [0], [0], [1], [0, 0, 1, 1], [], []>} : vector<64x32xf32>, vector<32x128xf32>, vector<64x128xf32> -> vector<64x128xf32>
    %180 = vector.broadcast %177 : vector<1x128xf32> to vector<64x128xf32>
    %181 = arith.addf %179, %180 : vector<64x128xf32>
    %cst_48 = arith.constant 0.000000e+00 : f32
    %182 = vector.broadcast %cst_48 : f32 to vector<8x32xf32>
    %cst_49 = arith.constant 0.000000e+00 : f32
    %183 = vector.broadcast %cst_49 : f32 to vector<8x32xf32>
    %184 = vector.extract_strided_slice %181 {offsets = [0, 0], sizes = [8, 128], strides = [1, 1]} : vector<64x128xf32> to vector<8x128xf32>
    %cst_50 = arith.constant dense<0.000000e+00> : vector<8x128xf32>
    %185 = tpu.matmul %182, %176, %cst_50 {dimension_numbers = #tpu.dot_dimension_numbers<[1], [0], [0], [1], [0, 0, 1, 1], [], []>} : vector<8x32xf32>, vector<32x128xf32>, vector<8x128xf32> -> vector<8x128xf32>
    %186 = arith.addf %184, %185 : vector<8x128xf32>
    %187 = arith.negf %186 : vector<8x128xf32>
    %188 = math.exp %187 : vector<8x128xf32>
    %cst_51 = arith.constant 1.000000e+00 : f32
    %189 = vector.broadcast %cst_51 : f32 to vector<8x128xf32>
    %190 = arith.addf %189, %188 : vector<8x128xf32>
    %191 = arith.divf %189, %190 : vector<8x128xf32>
    %192 = math.tanh %186 : vector<8x128xf32>
    %193 = vector.extract_strided_slice %191 {offsets = [0, 0], sizes = [8, 32], strides = [1, 1]} : vector<8x128xf32> to vector<8x32xf32>
    %194 = vector.extract_strided_slice %191 {offsets = [0, 32], sizes = [8, 32], strides = [1, 1]} : vector<8x128xf32> to vector<8x32xf32>
    %195 = vector.extract_strided_slice %192 {offsets = [0, 64], sizes = [8, 32], strides = [1, 1]} : vector<8x128xf32> to vector<8x32xf32>
    %196 = vector.extract_strided_slice %191 {offsets = [0, 96], sizes = [8, 32], strides = [1, 1]} : vector<8x128xf32> to vector<8x32xf32>
    %197 = arith.mulf %194, %183 : vector<8x32xf32>
    %198 = arith.mulf %193, %195 : vector<8x32xf32>
    %199 = arith.addf %197, %198 : vector<8x32xf32>
    %200 = math.tanh %199 : vector<8x32xf32>
    %201 = arith.mulf %196, %200 : vector<8x32xf32>
    %c0_52 = arith.constant 0 : index
    %c0_53 = arith.constant 0 : index
    %202 = vector.load %arg13[%c0_52, %c0_53] : memref<64x32xf32, #tpu.memory_space<vmem>>, vector<8x32xf32>
    tpu.vector_store %arg13[%c0_52, %c0_53], %201 {strides = array<i32>} : memref<64x32xf32, #tpu.memory_space<vmem>>, vector<8x32xf32>,
    %203 = vector.extract_strided_slice %181 {offsets = [8, 0], sizes = [8, 128], strides = [1, 1]} : vector<64x128xf32> to vector<8x128xf32>
    %cst_54 = arith.constant dense<0.000000e+00> : vector<8x128xf32>
    %204 = tpu.matmul %201, %176, %cst_54 {dimension_numbers = #tpu.dot_dimension_numbers<[1], [0], [0], [1], [0, 0, 1, 1], [], []>} : vector<8x32xf32>, vector<32x128xf32>, vector<8x128xf32> -> vector<8x128xf32>
    %205 = arith.addf %203, %204 : vector<8x128xf32>
    %206 = arith.negf %205 : vector<8x128xf32>
    %207 = math.exp %206 : vector<8x128xf32>
    %cst_55 = arith.constant 1.000000e+00 : f32
    %208 = vector.broadcast %cst_55 : f32 to vector<8x128xf32>
    %209 = arith.addf %208, %207 : vector<8x128xf32>
    %210 = arith.divf %208, %209 : vector<8x128xf32>
    %211 = math.tanh %205 : vector<8x128xf32>
    %212 = vector.extract_strided_slice %210 {offsets = [0, 0], sizes = [8, 32], strides = [1, 1]} : vector<8x128xf32> to vector<8x32xf32>
    %213 = vector.extract_strided_slice %210 {offsets = [0, 32], sizes = [8, 32], strides = [1, 1]} : vector<8x128xf32> to vector<8x32xf32>
    %214 = vector.extract_strided_slice %211 {offsets = [0, 64], sizes = [8, 32], strides = [1, 1]} : vector<8x128xf32> to vector<8x32xf32>
    %215 = vector.extract_strided_slice %210 {offsets = [0, 96], sizes = [8, 32], strides = [1, 1]} : vector<8x128xf32> to vector<8x32xf32>
    %216 = arith.mulf %213, %199 : vector<8x32xf32>
    %217 = arith.mulf %212, %214 : vector<8x32xf32>
    %218 = arith.addf %216, %217 : vector<8x32xf32>
    %219 = math.tanh %218 : vector<8x32xf32>
    %220 = arith.mulf %215, %219 : vector<8x32xf32>
    %c8_56 = arith.constant 8 : index
    %c0_57 = arith.constant 0 : index
    %221 = vector.load %arg13[%c8_56, %c0_57] : memref<64x32xf32, #tpu.memory_space<vmem>>, vector<8x32xf32>
    tpu.vector_store %arg13[%c8_56, %c0_57], %220 {strides = array<i32>} : memref<64x32xf32, #tpu.memory_space<vmem>>, vector<8x32xf32>,
    %222 = vector.extract_strided_slice %181 {offsets = [16, 0], sizes = [8, 128], strides = [1, 1]} : vector<64x128xf32> to vector<8x128xf32>
    %cst_58 = arith.constant dense<0.000000e+00> : vector<8x128xf32>
    %223 = tpu.matmul %220, %176, %cst_58 {dimension_numbers = #tpu.dot_dimension_numbers<[1], [0], [0], [1], [0, 0, 1, 1], [], []>} : vector<8x32xf32>, vector<32x128xf32>, vector<8x128xf32> -> vector<8x128xf32>
    %224 = arith.addf %222, %223 : vector<8x128xf32>
    %225 = arith.negf %224 : vector<8x128xf32>
    %226 = math.exp %225 : vector<8x128xf32>
    %cst_59 = arith.constant 1.000000e+00 : f32
    %227 = vector.broadcast %cst_59 : f32 to vector<8x128xf32>
    %228 = arith.addf %227, %226 : vector<8x128xf32>
    %229 = arith.divf %227, %228 : vector<8x128xf32>
    %230 = math.tanh %224 : vector<8x128xf32>
    %231 = vector.extract_strided_slice %229 {offsets = [0, 0], sizes = [8, 32], strides = [1, 1]} : vector<8x128xf32> to vector<8x32xf32>
    %232 = vector.extract_strided_slice %229 {offsets = [0, 32], sizes = [8, 32], strides = [1, 1]} : vector<8x128xf32> to vector<8x32xf32>
    %233 = vector.extract_strided_slice %230 {offsets = [0, 64], sizes = [8, 32], strides = [1, 1]} : vector<8x128xf32> to vector<8x32xf32>
    %234 = vector.extract_strided_slice %229 {offsets = [0, 96], sizes = [8, 32], strides = [1, 1]} : vector<8x128xf32> to vector<8x32xf32>
    %235 = arith.mulf %232, %218 : vector<8x32xf32>
    %236 = arith.mulf %231, %233 : vector<8x32xf32>
    %237 = arith.addf %235, %236 : vector<8x32xf32>
    %238 = math.tanh %237 : vector<8x32xf32>
    %239 = arith.mulf %234, %238 : vector<8x32xf32>
    %c16_60 = arith.constant 16 : index
    %c0_61 = arith.constant 0 : index
    %240 = vector.load %arg13[%c16_60, %c0_61] : memref<64x32xf32, #tpu.memory_space<vmem>>, vector<8x32xf32>
    tpu.vector_store %arg13[%c16_60, %c0_61], %239 {strides = array<i32>} : memref<64x32xf32, #tpu.memory_space<vmem>>, vector<8x32xf32>,
    %241 = vector.extract_strided_slice %181 {offsets = [24, 0], sizes = [8, 128], strides = [1, 1]} : vector<64x128xf32> to vector<8x128xf32>
    %cst_62 = arith.constant dense<0.000000e+00> : vector<8x128xf32>
    %242 = tpu.matmul %239, %176, %cst_62 {dimension_numbers = #tpu.dot_dimension_numbers<[1], [0], [0], [1], [0, 0, 1, 1], [], []>} : vector<8x32xf32>, vector<32x128xf32>, vector<8x128xf32> -> vector<8x128xf32>
    %243 = arith.addf %241, %242 : vector<8x128xf32>
    %244 = arith.negf %243 : vector<8x128xf32>
    %245 = math.exp %244 : vector<8x128xf32>
    %cst_63 = arith.constant 1.000000e+00 : f32
    %246 = vector.broadcast %cst_63 : f32 to vector<8x128xf32>
    %247 = arith.addf %246, %245 : vector<8x128xf32>
    %248 = arith.divf %246, %247 : vector<8x128xf32>
    %249 = math.tanh %243 : vector<8x128xf32>
    %250 = vector.extract_strided_slice %248 {offsets = [0, 0], sizes = [8, 32], strides = [1, 1]} : vector<8x128xf32> to vector<8x32xf32>
    %251 = vector.extract_strided_slice %248 {offsets = [0, 32], sizes = [8, 32], strides = [1, 1]} : vector<8x128xf32> to vector<8x32xf32>
    %252 = vector.extract_strided_slice %249 {offsets = [0, 64], sizes = [8, 32], strides = [1, 1]} : vector<8x128xf32> to vector<8x32xf32>
    %253 = vector.extract_strided_slice %248 {offsets = [0, 96], sizes = [8, 32], strides = [1, 1]} : vector<8x128xf32> to vector<8x32xf32>
    %254 = arith.mulf %251, %237 : vector<8x32xf32>
    %255 = arith.mulf %250, %252 : vector<8x32xf32>
    %256 = arith.addf %254, %255 : vector<8x32xf32>
    %257 = math.tanh %256 : vector<8x32xf32>
    %258 = arith.mulf %253, %257 : vector<8x32xf32>
    %c24_64 = arith.constant 24 : index
    %c0_65 = arith.constant 0 : index
    %259 = vector.load %arg13[%c24_64, %c0_65] : memref<64x32xf32, #tpu.memory_space<vmem>>, vector<8x32xf32>
    tpu.vector_store %arg13[%c24_64, %c0_65], %258 {strides = array<i32>} : memref<64x32xf32, #tpu.memory_space<vmem>>, vector<8x32xf32>,
    %260 = vector.extract_strided_slice %181 {offsets = [32, 0], sizes = [8, 128], strides = [1, 1]} : vector<64x128xf32> to vector<8x128xf32>
    %cst_66 = arith.constant dense<0.000000e+00> : vector<8x128xf32>
    %261 = tpu.matmul %258, %176, %cst_66 {dimension_numbers = #tpu.dot_dimension_numbers<[1], [0], [0], [1], [0, 0, 1, 1], [], []>} : vector<8x32xf32>, vector<32x128xf32>, vector<8x128xf32> -> vector<8x128xf32>
    %262 = arith.addf %260, %261 : vector<8x128xf32>
    %263 = arith.negf %262 : vector<8x128xf32>
    %264 = math.exp %263 : vector<8x128xf32>
    %cst_67 = arith.constant 1.000000e+00 : f32
    %265 = vector.broadcast %cst_67 : f32 to vector<8x128xf32>
    %266 = arith.addf %265, %264 : vector<8x128xf32>
    %267 = arith.divf %265, %266 : vector<8x128xf32>
    %268 = math.tanh %262 : vector<8x128xf32>
    %269 = vector.extract_strided_slice %267 {offsets = [0, 0], sizes = [8, 32], strides = [1, 1]} : vector<8x128xf32> to vector<8x32xf32>
    %270 = vector.extract_strided_slice %267 {offsets = [0, 32], sizes = [8, 32], strides = [1, 1]} : vector<8x128xf32> to vector<8x32xf32>
    %271 = vector.extract_strided_slice %268 {offsets = [0, 64], sizes = [8, 32], strides = [1, 1]} : vector<8x128xf32> to vector<8x32xf32>
    %272 = vector.extract_strided_slice %267 {offsets = [0, 96], sizes = [8, 32], strides = [1, 1]} : vector<8x128xf32> to vector<8x32xf32>
    %273 = arith.mulf %270, %256 : vector<8x32xf32>
    %274 = arith.mulf %269, %271 : vector<8x32xf32>
    %275 = arith.addf %273, %274 : vector<8x32xf32>
    %276 = math.tanh %275 : vector<8x32xf32>
    %277 = arith.mulf %272, %276 : vector<8x32xf32>
    %c32_68 = arith.constant 32 : index
    %c0_69 = arith.constant 0 : index
    %278 = vector.load %arg13[%c32_68, %c0_69] : memref<64x32xf32, #tpu.memory_space<vmem>>, vector<8x32xf32>
    tpu.vector_store %arg13[%c32_68, %c0_69], %277 {strides = array<i32>} : memref<64x32xf32, #tpu.memory_space<vmem>>, vector<8x32xf32>,
    %279 = vector.extract_strided_slice %181 {offsets = [40, 0], sizes = [8, 128], strides = [1, 1]} : vector<64x128xf32> to vector<8x128xf32>
    %cst_70 = arith.constant dense<0.000000e+00> : vector<8x128xf32>
    %280 = tpu.matmul %277, %176, %cst_70 {dimension_numbers = #tpu.dot_dimension_numbers<[1], [0], [0], [1], [0, 0, 1, 1], [], []>} : vector<8x32xf32>, vector<32x128xf32>, vector<8x128xf32> -> vector<8x128xf32>
    %281 = arith.addf %279, %280 : vector<8x128xf32>
    %282 = arith.negf %281 : vector<8x128xf32>
    %283 = math.exp %282 : vector<8x128xf32>
    %cst_71 = arith.constant 1.000000e+00 : f32
    %284 = vector.broadcast %cst_71 : f32 to vector<8x128xf32>
    %285 = arith.addf %284, %283 : vector<8x128xf32>
    %286 = arith.divf %284, %285 : vector<8x128xf32>
    %287 = math.tanh %281 : vector<8x128xf32>
    %288 = vector.extract_strided_slice %286 {offsets = [0, 0], sizes = [8, 32], strides = [1, 1]} : vector<8x128xf32> to vector<8x32xf32>
    %289 = vector.extract_strided_slice %286 {offsets = [0, 32], sizes = [8, 32], strides = [1, 1]} : vector<8x128xf32> to vector<8x32xf32>
    %290 = vector.extract_strided_slice %287 {offsets = [0, 64], sizes = [8, 32], strides = [1, 1]} : vector<8x128xf32> to vector<8x32xf32>
    %291 = vector.extract_strided_slice %286 {offsets = [0, 96], sizes = [8, 32], strides = [1, 1]} : vector<8x128xf32> to vector<8x32xf32>
    %292 = arith.mulf %289, %275 : vector<8x32xf32>
    %293 = arith.mulf %288, %290 : vector<8x32xf32>
    %294 = arith.addf %292, %293 : vector<8x32xf32>
    %295 = math.tanh %294 : vector<8x32xf32>
    %296 = arith.mulf %291, %295 : vector<8x32xf32>
    %c40_72 = arith.constant 40 : index
    %c0_73 = arith.constant 0 : index
    %297 = vector.load %arg13[%c40_72, %c0_73] : memref<64x32xf32, #tpu.memory_space<vmem>>, vector<8x32xf32>
    tpu.vector_store %arg13[%c40_72, %c0_73], %296 {strides = array<i32>} : memref<64x32xf32, #tpu.memory_space<vmem>>, vector<8x32xf32>,
    %298 = vector.extract_strided_slice %181 {offsets = [48, 0], sizes = [8, 128], strides = [1, 1]} : vector<64x128xf32> to vector<8x128xf32>
    %cst_74 = arith.constant dense<0.000000e+00> : vector<8x128xf32>
    %299 = tpu.matmul %296, %176, %cst_74 {dimension_numbers = #tpu.dot_dimension_numbers<[1], [0], [0], [1], [0, 0, 1, 1], [], []>} : vector<8x32xf32>, vector<32x128xf32>, vector<8x128xf32> -> vector<8x128xf32>
    %300 = arith.addf %298, %299 : vector<8x128xf32>
    %301 = arith.negf %300 : vector<8x128xf32>
    %302 = math.exp %301 : vector<8x128xf32>
    %cst_75 = arith.constant 1.000000e+00 : f32
    %303 = vector.broadcast %cst_75 : f32 to vector<8x128xf32>
    %304 = arith.addf %303, %302 : vector<8x128xf32>
    %305 = arith.divf %303, %304 : vector<8x128xf32>
    %306 = math.tanh %300 : vector<8x128xf32>
    %307 = vector.extract_strided_slice %305 {offsets = [0, 0], sizes = [8, 32], strides = [1, 1]} : vector<8x128xf32> to vector<8x32xf32>
    %308 = vector.extract_strided_slice %305 {offsets = [0, 32], sizes = [8, 32], strides = [1, 1]} : vector<8x128xf32> to vector<8x32xf32>
    %309 = vector.extract_strided_slice %306 {offsets = [0, 64], sizes = [8, 32], strides = [1, 1]} : vector<8x128xf32> to vector<8x32xf32>
    %310 = vector.extract_strided_slice %305 {offsets = [0, 96], sizes = [8, 32], strides = [1, 1]} : vector<8x128xf32> to vector<8x32xf32>
    %311 = arith.mulf %308, %294 : vector<8x32xf32>
    %312 = arith.mulf %307, %309 : vector<8x32xf32>
    %313 = arith.addf %311, %312 : vector<8x32xf32>
    %314 = math.tanh %313 : vector<8x32xf32>
    %315 = arith.mulf %310, %314 : vector<8x32xf32>
    %c48_76 = arith.constant 48 : index
    %c0_77 = arith.constant 0 : index
    %316 = vector.load %arg13[%c48_76, %c0_77] : memref<64x32xf32, #tpu.memory_space<vmem>>, vector<8x32xf32>
    tpu.vector_store %arg13[%c48_76, %c0_77], %315 {strides = array<i32>} : memref<64x32xf32, #tpu.memory_space<vmem>>, vector<8x32xf32>,
    %317 = vector.extract_strided_slice %181 {offsets = [56, 0], sizes = [8, 128], strides = [1, 1]} : vector<64x128xf32> to vector<8x128xf32>
    %cst_78 = arith.constant dense<0.000000e+00> : vector<8x128xf32>
    %318 = tpu.matmul %315, %176, %cst_78 {dimension_numbers = #tpu.dot_dimension_numbers<[1], [0], [0], [1], [0, 0, 1, 1], [], []>} : vector<8x32xf32>, vector<32x128xf32>, vector<8x128xf32> -> vector<8x128xf32>
    %319 = arith.addf %317, %318 : vector<8x128xf32>
    %320 = arith.negf %319 : vector<8x128xf32>
    %321 = math.exp %320 : vector<8x128xf32>
    %cst_79 = arith.constant 1.000000e+00 : f32
    %322 = vector.broadcast %cst_79 : f32 to vector<8x128xf32>
    %323 = arith.addf %322, %321 : vector<8x128xf32>
    %324 = arith.divf %322, %323 : vector<8x128xf32>
    %325 = math.tanh %319 : vector<8x128xf32>
    %326 = vector.extract_strided_slice %324 {offsets = [0, 0], sizes = [8, 32], strides = [1, 1]} : vector<8x128xf32> to vector<8x32xf32>
    %327 = vector.extract_strided_slice %324 {offsets = [0, 32], sizes = [8, 32], strides = [1, 1]} : vector<8x128xf32> to vector<8x32xf32>
    %328 = vector.extract_strided_slice %325 {offsets = [0, 64], sizes = [8, 32], strides = [1, 1]} : vector<8x128xf32> to vector<8x32xf32>
    %329 = vector.extract_strided_slice %324 {offsets = [0, 96], sizes = [8, 32], strides = [1, 1]} : vector<8x128xf32> to vector<8x32xf32>
    %330 = arith.mulf %327, %313 : vector<8x32xf32>
    %331 = arith.mulf %326, %328 : vector<8x32xf32>
    %332 = arith.addf %330, %331 : vector<8x32xf32>
    %333 = math.tanh %332 : vector<8x32xf32>
    %334 = arith.mulf %329, %333 : vector<8x32xf32>
    %c56_80 = arith.constant 56 : index
    %c0_81 = arith.constant 0 : index
    %335 = vector.load %arg13[%c56_80, %c0_81] : memref<64x32xf32, #tpu.memory_space<vmem>>, vector<8x32xf32>
    tpu.vector_store %arg13[%c56_80, %c0_81], %334 {strides = array<i32>} : memref<64x32xf32, #tpu.memory_space<vmem>>, vector<8x32xf32>,
    %c0_82 = arith.constant 0 : index
    %c0_83 = arith.constant 0 : index
    %336 = vector.load %arg13[%c0_82, %c0_83] : memref<64x32xf32, #tpu.memory_space<vmem>>, vector<64x32xf32>
    %c0_84 = arith.constant 0 : index
    %c0_85 = arith.constant 0 : index
    %337 = vector.load %arg10[%c0_84, %c0_85] : memref<32x1xf32, #tpu.memory_space<vmem>>, vector<32x1xf32>
    %cst_86 = arith.constant dense<0.000000e+00> : vector<64x1xf32>
    %338 = tpu.matmul %336, %337, %cst_86 {dimension_numbers = #tpu.dot_dimension_numbers<[1], [0], [0], [1], [0, 0, 1, 1], [], []>} : vector<64x32xf32>, vector<32x1xf32>, vector<64x1xf32> -> vector<64x1xf32>
    %c0_87 = arith.constant 0 : index
    %c0_88 = arith.constant 0 : index
    %339 = vector.load %arg11[%c0_87, %c0_88] : memref<1x1xf32, #tpu.memory_space<vmem>>, vector<1x1xf32>
    %340 = vector.broadcast %339 : vector<1x1xf32> to vector<64x1xf32>
    %341 = arith.addf %338, %340 : vector<64x1xf32>
    %342 = vector.shape_cast %341 : vector<64x1xf32> to vector<8x8x1xf32>
    %c0_89 = arith.constant 0 : index
    %c0_90 = arith.constant 0 : index
    %c0_91 = arith.constant 0 : index
    %343 = vector.load %arg12[%c0_89, %c0_90, %c0_91] : memref<8x8x1xf32, #tpu.memory_space<vmem>>, vector<8x8x1xf32>
    tpu.vector_store %arg12[%c0_89, %c0_90, %c0_91], %342 {strides = array<i32>} : memref<8x8x1xf32, #tpu.memory_space<vmem>>, vector<8x8x1xf32>,
    return
  }
  func.func @transform_0(%arg0: i32) -> (i32, i32, i32) {
    %c0_i32 = arith.constant 0 : i32
    %c0_i32_0 = arith.constant 0 : i32
    %c0_i32_1 = arith.constant 0 : i32
    return %c0_i32, %arg0, %c0_i32_0 : i32, i32, i32
  }
  func.func @transform_1(%arg0: i32) -> (i32, i32) {
    %c0_i32 = arith.constant 0 : i32
    %c0_i32_0 = arith.constant 0 : i32
    return %arg0, %c0_i32 : i32, i32
  }
  func.func @transform_2(%arg0: i32) -> (i32, i32) {
    %c0_i32 = arith.constant 0 : i32
    %c0_i32_0 = arith.constant 0 : i32
    %c0_i32_1 = arith.constant 0 : i32
    return %c0_i32, %c0_i32_0 : i32, i32
  }
  func.func @transform_3(%arg0: i32) -> (i32, i32) {
    %c0_i32 = arith.constant 0 : i32
    %c0_i32_0 = arith.constant 0 : i32
    %c0_i32_1 = arith.constant 0 : i32
    return %c0_i32, %c0_i32_0 : i32, i32
  }
  func.func @transform_4(%arg0: i32) -> (i32, i32) {
    %c0_i32 = arith.constant 0 : i32
    %c0_i32_0 = arith.constant 0 : i32
    %c0_i32_1 = arith.constant 0 : i32
    return %c0_i32, %c0_i32_0 : i32, i32
  }
  func.func @transform_5(%arg0: i32) -> (i32, i32) {
    %c0_i32 = arith.constant 0 : i32
    %c0_i32_0 = arith.constant 0 : i32
    %c0_i32_1 = arith.constant 0 : i32
    return %c0_i32, %c0_i32_0 : i32, i32
  }
  func.func @transform_6(%arg0: i32) -> (i32, i32) {
    %c0_i32 = arith.constant 0 : i32
    %c0_i32_0 = arith.constant 0 : i32
    %c0_i32_1 = arith.constant 0 : i32
    return %c0_i32, %c0_i32_0 : i32, i32
  }
  func.func @transform_7(%arg0: i32) -> (i32, i32) {
    %c0_i32 = arith.constant 0 : i32
    %c0_i32_0 = arith.constant 0 : i32
    %c0_i32_1 = arith.constant 0 : i32
    return %c0_i32, %c0_i32_0 : i32, i32
  }
  func.func @transform_8(%arg0: i32) -> (i32, i32) {
    %c0_i32 = arith.constant 0 : i32
    %c0_i32_0 = arith.constant 0 : i32
    %c0_i32_1 = arith.constant 0 : i32
    return %c0_i32, %c0_i32_0 : i32, i32
  }
  func.func @transform_9(%arg0: i32) -> (i32, i32) {
    %c0_i32 = arith.constant 0 : i32
    %c0_i32_0 = arith.constant 0 : i32
    %c0_i32_1 = arith.constant 0 : i32
    return %c0_i32, %c0_i32_0 : i32, i32
  }
  func.func @transform_10(%arg0: i32) -> (i32, i32) {
    %c0_i32 = arith.constant 0 : i32
    %c0_i32_0 = arith.constant 0 : i32
    %c0_i32_1 = arith.constant 0 : i32
    return %c0_i32, %c0_i32_0 : i32, i32
  }
  func.func @transform_11(%arg0: i32) -> (i32, i32, i32) {
    %c0_i32 = arith.constant 0 : i32
    %c0_i32_0 = arith.constant 0 : i32
    %c0_i32_1 = arith.constant 0 : i32
    return %c0_i32, %arg0, %c0_i32_0 : i32, i32, i32
  }
}

</mosaic_0001>

<bundles_post_ra>
// kernel: forward.2
= control target key start
LH: loop header
LB: loop body
LE: loop exit
PB: predicated region body
PF: predicated region fallthrough
CT: control target
= control target key end

     0   :  { %vm81_vm0 = vcmask 1043456   ;;  %vm56_vm1 = vcmask 31744   ;;  %v2727_v0 = vmov 0.0|0.0   ;;  %vm2728_vm2 = vmmov 0   ;;  %s2730_s27 = smov 64   ;;  %s3178_s3 = inlined_call_operand.vmem [shape: f32[32,128], index: 3, kind: input, shape index: {}]   ;;  %s3179_s2 = inlined_call_operand.vmem [shape: f32[4,128], index: 2, kind: input, shape index: {}]   ;;  %s3180_s0 = inlined_call_operand.vmem [shape: f32[8,8,4], index: 0, kind: input, shape index: {}]   ;;  %s3181_s4 = inlined_call_operand.vmem [shape: f32[1,128], index: 4, kind: input, shape index: {}]   ;;  %s3182_s5 = inlined_call_operand.vmem [shape: f32[32,128], index: 5, kind: input, shape index: {}]   ;;  %s3183_s6 = inlined_call_operand.vmem [shape: f32[32,128], index: 6, kind: input, shape index: {}]   ;;  %s3184_s7 = inlined_call_operand.vmem [shape: f32[1,128], index: 7, kind: input, shape index: {}]   ;;  %s3185_s1 = inlined_call_operand.vmem [shape: s32[8,1], index: 1, kind: input, shape index: {}]   ;;  %s3186_s8 = inlined_call_operand.vmem [shape: f32[32,3], index: 8, kind: input, shape index: {}]   ;;  %s3187_s9 = inlined_call_operand.vmem [shape: f32[1,3], index: 9, kind: input, shape index: {}]   ;;  %s3188_s10 = inlined_call_operand.vmem [shape: f32[8,3], index: 10, kind: output, shape index: {}]  }
   0x1   :  { %2481 = vmatprep.subr.bf16.mxu1 %v2727_v0  ;;  %v45_v1 = vld [vmem:[%s3178_s3] sm:$0xff]  ;;  %v46_v2 = vld [vmem:[%s3178_s3 + $0x8] sm:$0xff]  ;;  %v47_v7 = vld [vmem:[%s3178_s3 + $0x10] sm:$0xff]  ;;  %v2729_v8 = vmov 0.0   ;;  %vm190_vm3 = vcmask 261120  }
   0x2   :  { %v44_v3 = vld [vmem:[%s3179_s2] sm:$0xf]  ;;  %v2798_v4 = vpack.c.bf16 %v46_v2, %v45_v1  ;;  %v37_v6 = vld [vmem:[%s3180_s0 + $0x8] sm:$0xff]  ;;  %2282 = vmatprep.mubr.msk.f32.mxu1 %vm2728_vm2, %v2729_v8  ;;  %v48_v9 = vld [vmem:[%s3178_s3 + $0x18] sm:$0xff] }
   0x3   :  { %2260 = vmatprep.subr.msk.mxu0 %vm81_vm0, %v44_v3  ;;  %v36_v5 = vld [vmem:[%s3180_s0] sm:$0xff]  ;;  %v2819_v10 = vpack.c.bf16 %v48_v9, %v47_v7  ;;  %v38_v46 = vld [vmem:[%s3180_s0 + $0x10] sm:$0xff]  ;;  %v39_v47 = vld [vmem:[%s3180_s0 + $0x18] sm:$0xff] }
   0x4   :  { %2261 = vmatpush3.msk.msra.mxu0 %vm81_vm0, %v44_v3  ;;  %2262 = vmatprep.mubr.msk.f32.mxu0 %vm56_vm1, %v36_v5  ;;  %v2839_v12 = vld [vmem:[%s3181_s4] ss:$0 sm:$0xff]  ;;  %s2731_s4 = smov 32   ;;  %v41_v49 = vld [vmem:[%s3180_s0 + $0x28] sm:$0xff]  ;;  %v42_v50 = vld [vmem:[%s3180_s0 + $0x30] sm:$0xff] }
   0x5   :  { %2483 = vmatpush3.bf16.msra.mxu1 %v2798_v4  ;;  %2263 = vmatmul.mubr.msk.f32.vlgmr.msra.gmra.mrb[0].mxu0 %vm56_vm1, %v37_v6  ;;  %v40_v48 = vld [vmem:[%s3180_s0 + $0x20] sm:$0xff]  ;;  %v43_v51 = vld [vmem:[%s3180_s0 + $0x38] sm:$0xff] }
   0x6   :  { %2484 = vmatprep.subr.bf16.mxu1 %v2727_v0  ;;  %2493 = vmatprep.subr.bf16.mxu0 %v2727_v0 }
   0x7   :  { %2495 = vmatpush3.bf16.msra.mxu0 %v2798_v4  ;;  %2265 = vmatprep.mubr.msk.f32.mxu0 %vm56_vm1, %v38_v46 }
   0x8   :  { %2496 = vmatprep.subr.bf16.mxu0 %v2727_v0 }
   0x9   :  { %2486 = vmatpush3.bf16.msra.mxu1 %v2819_v10  ;;  %2266 = vmatmul.mubr.msk.f32.gmra.mrb[2].mxu0 %vm56_vm1, %v39_v47 }
   0xa   :  { %2487 = vmatprep.subr.bf16.mxu1 %v2727_v0  ;;  %2268 = vmatprep.mubr.msk.f32.mxu0 %vm56_vm1, %v40_v48 }
   0xb   :  { %2498 = vmatpush3.bf16.msra.mxu0 %v2819_v10 }
   0xc   :  { %2283 = vmatmul.mubr.f32.vlgmr.msra.gmra.mrb[0].mxu1 %v2729_v8  ;;  %2505 = vmatprep.subr.bf16.mxu0 %v2727_v0 }
   0xd   :  { %2489 = vmatpush3.bf16.msra.mxu1 %v2798_v4  ;;  %2293 = vmatprep.mubr.msk.f32.mxu1 %vm2728_vm2, %v2729_v8 }
   0xe   :  { %2490 = vmatprep.subr.bf16.mxu1 %v2727_v0  ;;  %2269 = vmatmul.mubr.msk.f32.gmra.mrb[4].mxu0 %vm56_vm1, %v41_v49 }
   0xf   :  { %2271 = vmatprep.mubr.msk.f32.mxu0 %vm56_vm1, %v42_v50 }
  0x11   :  { %2492 = vmatpush3.bf16.msra.mxu1 %v2819_v10 }
  0x12   :  { %2499 = vmatprep.subr.bf16.mxu1 %v2727_v0  ;;  %2272 = vmatmul.mubr.msk.f32.gmra.mrb[6].mxu0 %vm56_vm1, %v43_v51 }
  0x13   :  { %2304 = vmatprep.mubr.msk.f32.mxu0 %vm2728_vm2, %v2729_v8 }
  0xd8   :  { %v2264_v11 = vpop.f32.mrb[0].mxu0 }
  0xd9   :  { %v151_v13 = vpop.f32.mrb[1].mxu0  ;;  %v157_v32 = vadd.f32 %v2264_v11, %v2839_v12 }
  0xda   :  { %v152_v14 = vadd.f32 %v2839_v12, %v151_v13 }
  0xdc   :  { %v2267_v55 = vpop.f32.mrb[2].mxu0 }
  0xdd   :  { %v161_v56 = vpop.f32.mrb[3].mxu0 }
  0xde   :  { %v162_v62 = vadd.f32 %v2839_v12, %v161_v56 }
  0xdf   :  { %v260_v15 = vpop.f32.mrb[0].mxu1 }
  0xe0   :  { %v264_v16 = vadd.f32 %v260_v15, %v152_v14  ;;  %v2284_v17 = vpop.f32.mrb[1].mxu1 }
  0xe1   :  { %v2885_v57 = vpop.f32.mrb[4].mxu0 }
  0xe2   :  { %2599 = vtanh.f32 %v264_v16  ;;  %v2113_v19 = vmul.f32 -1.442695, %v264_v16  ;;  %v2887_v58 = vpop.f32.mrb[5].mxu0 }
  0xe4   :  { %2601 = vpow2.f32 %v2113_v19 }
  0xe5   :  { %v2889_v59 = vpop.f32.mrb[6].mxu0 }
  0xe6   :  { %v2891_v60 = vpop.f32.mrb[7].mxu0 }
  0xec   :  { %v2600_v18 = vpop.eup %2599 }
  0xed   :  { %274 = vrot.lane.b32.xlu0 %v2600_v18, %s2730_s27 }
  0xee   :  { %v2602_v20 = vpop.eup %2601 }
  0xef   :  { %v268_v21 = vadd.f32 1.0, %v2602_v20 }
  0xf1   :  { %2603 = vrcp.f32 %v268_v21  ;;  %v167_v21 = vadd.f32 %v2267_v55, %v2839_v12 }
  0xfb   :  { %v2604_v22 = vpop.eup %2603 }
  0xfc   :  { %v272_v25 = vmul.f32 0.0, %v2604_v22 }
 0x15f   :  { %v275_v23 = vpop.permute.xlu0 %274 }
 0x160   :  { %v277_v24 = vmul.f32 %v2604_v22, %v275_v23 }
 0x162   :  { %279 = vrot.lane.b32.xlu0 %v277_v24, %s2731_s4 }
 0x1d4   :  { %v280_v26 = vpop.permute.xlu0 %279 }
 0x1d5   :  { %v282_v27 = vadd.f32 %v280_v26, %v272_v25 }
 0x1d7   :  { %2605 = vtanh.f32 %v282_v27 }
 0x1e1   :  { %v2606_v28 = vpop.eup %2605 }
 0x1e2   :  { %285 = vrot.lane.b32.xlu1 %v2606_v28, %s2730_s27 }
 0x254   :  { %v286_v29 = vpop.permute.xlu1 %285 }
 0x255   :  { %v288_v30 = vmul.f32 %v2604_v22, %v286_v29 }
 0x257   :  { %290 = vrot.lane.b32.xlu1 %v288_v30, %s2731_s4 }
 0x2c9   :  { %v291_v31 = vpop.permute.xlu1 %290 }
 0x2ca   :  { %293 = vst.msk [vmem:[#allocation2] sm:$0xff] %vm190_vm3, %v291_v31  ;;  %2294 = vmatmul.mubr.msk.f32.vlgmr.msra.gmra.mrb[2].mxu1 %vm190_vm3, %v291_v31 }
 0x2cb   :  { %2501 = vmatpush3.bf16.msra.mxu1 %v2798_v4  ;;  %2315 = vmatprep.mubr.msk.f32.mxu1 %vm2728_vm2, %v2729_v8 }
 0x2cc   :  { %2502 = vmatprep.subr.bf16.mxu1 %v2727_v0 }
 0x2cf   :  { %2504 = vmatpush3.bf16.msra.mxu1 %v2819_v10 }
 0x2d0   :  { %2511 = vmatprep.subr.bf16.mxu1 %v2727_v0 }
 0x39d   :  { %v362_v33 = vpop.f32.mrb[2].mxu1 }
 0x39e   :  { %v366_v34 = vadd.f32 %v362_v33, %v157_v32  ;;  %v2295_v35 = vpop.f32.mrb[3].mxu1 }
 0x3a0   :  { %2607 = vtanh.f32 %v366_v34  ;;  %v2115_v37 = vmul.f32 -1.442695, %v366_v34 }
 0x3a2   :  { %2609 = vpow2.f32 %v2115_v37 }
 0x3aa   :  { %v2608_v36 = vpop.eup %2607 }
 0x3ab   :  { %376 = vrot.lane.b32.xlu0 %v2608_v36, %s2730_s27 }
 0x3ac   :  { %v2610_v38 = vpop.eup %2609 }
 0x3ad   :  { %v370_v39 = vadd.f32 1.0, %v2610_v38 }
 0x3af   :  { %2611 = vrcp.f32 %v370_v39  ;;  %v172_v39 = vadd.f32 %v2839_v12, %v2887_v58  ;;  %v177_v58 = vadd.f32 %v2885_v57, %v2839_v12 }
 0x3b9   :  { %v2612_v40 = vpop.eup %2611 }
 0x3ba   :  { %v374_v43 = vmul.f32 %v2612_v40, %v282_v27 }
 0x41d   :  { %v377_v41 = vpop.permute.xlu0 %376 }
 0x41e   :  { %v379_v42 = vmul.f32 %v2612_v40, %v377_v41 }
 0x420   :  { %381 = vrot.lane.b32.xlu1 %v379_v42, %s2731_s4 }
 0x492   :  { %v382_v44 = vpop.permute.xlu1 %381 }
 0x493   :  { %v384_v45 = vadd.f32 %v382_v44, %v374_v43 }
 0x495   :  { %2613 = vtanh.f32 %v384_v45 }
 0x49f   :  { %v2614_v52 = vpop.eup %2613 }
 0x4a0   :  { %387 = vrot.lane.b32.xlu0 %v2614_v52, %s2730_s27 }
 0x512   :  { %v388_v53 = vpop.permute.xlu0 %387 }
 0x513   :  { %v390_v54 = vmul.f32 %v2612_v40, %v388_v53 }
 0x515   :  { %392 = vrot.lane.b32.xlu1 %v390_v54, %s2731_s4 }
 0x587   :  { %v393_v61 = vpop.permute.xlu1 %392 }
 0x588   :  { %395 = vst.msk [vmem:[#allocation2 + $0x8] sm:$0xff] %vm190_vm3, %v393_v61  ;;  %2305 = vmatmul.mubr.msk.f32.vlgmr.msra.gmra.mrb[8].mxu0 %vm190_vm3, %v393_v61 }
 0x589   :  { %2507 = vmatpush3.bf16.msra.mxu0 %v2798_v4  ;;  %2326 = vmatprep.mubr.msk.f32.mxu0 %vm2728_vm2, %v2729_v8 }
 0x58a   :  { %2508 = vmatprep.subr.bf16.mxu0 %v2727_v0 }
 0x58d   :  { %2510 = vmatpush3.bf16.msra.mxu0 %v2819_v10 }
 0x58e   :  { %2517 = vmatprep.subr.bf16.mxu0 %v2727_v0 }
 0x65b   :  { %v464_v63 = vpop.f32.mrb[8].mxu0 }
 0x65c   :  { %v468_v1 = vadd.f32 %v464_v63, %v162_v62  ;;  %v2306_v2 = vpop.f32.mrb[9].mxu0 }
 0x65e   :  { %2615 = vtanh.f32 %v468_v1  ;;  %v2117_v5 = vmul.f32 -1.442695, %v468_v1 }
 0x660   :  { %2617 = vpow2.f32 %v2117_v5 }
 0x668   :  { %v2616_v3 = vpop.eup %2615 }
 0x669   :  { %478 = vrot.lane.b32.xlu0 %v2616_v3, %s2730_s27 }
 0x66a   :  { %v2618_v6 = vpop.eup %2617 }
 0x66b   :  { %v472_v7 = vadd.f32 1.0, %v2618_v6 }
 0x66d   :  { %2619 = vrcp.f32 %v472_v7 }
 0x677   :  { %v2620_v9 = vpop.eup %2619 }
 0x678   :  { %v476_v14 = vmul.f32 %v2620_v9, %v384_v45 }
 0x6db   :  { %v479_v11 = vpop.permute.xlu0 %478 }
 0x6dc   :  { %v481_v13 = vmul.f32 %v2620_v9, %v479_v11  ;;  %v1016_v11 = vld [vmem:[%s3182_s5] sm:$0xff] }
 0x6de   :  { %483 = vrot.lane.b32.xlu1 %v481_v13, %s2731_s4  ;;  %v1017_v13 = vld [vmem:[%s3182_s5 + $0x8] sm:$0xff] }
 0x750   :  { %v484_v15 = vpop.permute.xlu1 %483 }
 0x751   :  { %v486_v16 = vadd.f32 %v484_v15, %v476_v14  ;;  %v2529_v14 = vpack.c.bf16 %v1017_v13, %v1016_v11 }
 0x753   :  { %2621 = vtanh.f32 %v486_v16 }
 0x75d   :  { %v2622_v17 = vpop.eup %2621 }
 0x75e   :  { %489 = vrot.lane.b32.xlu0 %v2622_v17, %s2730_s27 }
 0x7d0   :  { %v490_v18 = vpop.permute.xlu0 %489 }
 0x7d1   :  { %v492_v19 = vmul.f32 %v2620_v9, %v490_v18  ;;  %v1018_v18 = vld [vmem:[%s3182_s5 + $0x10] sm:$0xff] }
 0x7d3   :  { %494 = vrot.lane.b32.xlu1 %v492_v19, %s2731_s4  ;;  %v1019_v19 = vld [vmem:[%s3182_s5 + $0x18] sm:$0xff] }
 0x845   :  { %v495_v20 = vpop.permute.xlu1 %494 }
 0x846   :  { %497 = vst.msk [vmem:[#allocation2 + $0x10] sm:$0xff] %vm190_vm3, %v495_v20  ;;  %2316 = vmatmul.mubr.msk.f32.vlgmr.msra.gmra.mrb[4].mxu1 %vm190_vm3, %v495_v20  ;;  %v2533_v20 = vpack.c.bf16 %v1019_v19, %v1018_v18 }
 0x847   :  { %2513 = vmatpush3.bf16.msra.mxu1 %v2798_v4  ;;  %2337 = vmatprep.mubr.msk.f32.mxu1 %vm2728_vm2, %v2729_v8 }
 0x848   :  { %2514 = vmatprep.subr.bf16.mxu1 %v2727_v0 }
 0x84b   :  { %2516 = vmatpush3.bf16.msra.mxu1 %v2819_v10 }
 0x84c   :  { %2523 = vmatprep.subr.bf16.mxu1 %v2727_v0 }
 0x919   :  { %v566_v22 = vpop.f32.mrb[4].mxu1 }
 0x91a   :  { %v570_v23 = vadd.f32 %v566_v22, %v167_v21  ;;  %v2317_v24 = vpop.f32.mrb[5].mxu1  ;;  %v1008_v22 = vld [vmem:[#allocation2] sm:$0xff] }
 0x91b   :  { %v1010_v24 = vld [vmem:[#allocation2 + $0x10] sm:$0xff] }
 0x91c   :  { %2623 = vtanh.f32 %v570_v23  ;;  %v2119_v26 = vmul.f32 -1.442695, %v570_v23  ;;  %v1009_v23 = vld [vmem:[#allocation2 + $0x8] sm:$0xff] }
 0x91e   :  { %2625 = vpow2.f32 %v2119_v26 }
 0x926   :  { %v2624_v25 = vpop.eup %2623 }
 0x927   :  { %580 = vrot.lane.b32.xlu0 %v2624_v25, %s2730_s27 }
 0x928   :  { %v2626_v27 = vpop.eup %2625 }
 0x929   :  { %v574_v28 = vadd.f32 1.0, %v2626_v27 }
 0x92b   :  { %2627 = vrcp.f32 %v574_v28  ;;  %v182_v28 = vadd.f32 %v2839_v12, %v2891_v60 }
 0x935   :  { %v2628_v29 = vpop.eup %2627 }
 0x936   :  { %v578_v32 = vmul.f32 %v2628_v29, %v486_v16 }
 0x999   :  { %v581_v30 = vpop.permute.xlu0 %580 }
 0x99a   :  { %v583_v31 = vmul.f32 %v2628_v29, %v581_v30 }
 0x99c   :  { %585 = vrot.lane.b32.xlu1 %v583_v31, %s2731_s4 }
 0xa0e   :  { %v586_v33 = vpop.permute.xlu1 %585 }
 0xa0f   :  { %v588_v34 = vadd.f32 %v586_v33, %v578_v32 }
 0xa11   :  { %2629 = vtanh.f32 %v588_v34 }
 0xa1b   :  { %v2630_v35 = vpop.eup %2629 }
 0xa1c   :  { %591 = vrot.lane.b32.xlu0 %v2630_v35, %s2730_s27 }
 0xa8e   :  { %v592_v36 = vpop.permute.xlu0 %591 }
 0xa8f   :  { %v594_v37 = vmul.f32 %v2628_v29, %v592_v36 }
 0xa91   :  { %596 = vrot.lane.b32.xlu1 %v594_v37, %s2731_s4 }
 0xb03   :  { %v597_v38 = vpop.permute.xlu1 %596 }
 0xb04   :  { %599 = vst.msk [vmem:[#allocation2 + $0x18] sm:$0xff] %vm190_vm3, %v597_v38  ;;  %2327 = vmatmul.mubr.msk.f32.vlgmr.msra.gmra.mrb[10].mxu0 %vm190_vm3, %v597_v38 }
 0xb05   :  { %2519 = vmatpush3.bf16.msra.mxu0 %v2798_v4  ;;  %2348 = vmatprep.mubr.msk.f32.mxu0 %vm2728_vm2, %v2729_v8 }
 0xb06   :  { %2520 = vmatprep.subr.bf16.mxu0 %v2727_v0 }
 0xb09   :  { %2522 = vmatpush3.bf16.msra.mxu0 %v2819_v10 }
 0xb0a   :  { %2530 = vmatprep.subr.bf16.mxu0 %v2529_v14 }
 0xb0b   :  { %v1011_v25 = vld [vmem:[#allocation2 + $0x18] sm:$0xff] }
 0xbd7   :  { %v668_v40 = vpop.f32.mrb[10].mxu0 }
 0xbd8   :  { %v672_v41 = vadd.f32 %v668_v40, %v172_v39  ;;  %v2328_v42 = vpop.f32.mrb[11].mxu0 }
 0xbda   :  { %2631 = vtanh.f32 %v672_v41  ;;  %v2121_v44 = vmul.f32 -1.442695, %v672_v41 }
 0xbdc   :  { %2633 = vpow2.f32 %v2121_v44 }
 0xbe4   :  { %v2632_v43 = vpop.eup %2631 }
 0xbe5   :  { %682 = vrot.lane.b32.xlu0 %v2632_v43, %s2730_s27 }
 0xbe6   :  { %v2634_v45 = vpop.eup %2633 }
 0xbe7   :  { %v676_v46 = vadd.f32 1.0, %v2634_v45 }
 0xbe9   :  { %2635 = vrcp.f32 %v676_v46 }
 0xbf3   :  { %v2636_v47 = vpop.eup %2635 }
 0xbf4   :  { %v680_v50 = vmul.f32 %v2636_v47, %v588_v34 }
 0xc57   :  { %v683_v48 = vpop.permute.xlu0 %682 }
 0xc58   :  { %v685_v49 = vmul.f32 %v2636_v47, %v683_v48  ;;  %v1020_v48 = vld [vmem:[%s3183_s6] sm:$0xff] }
 0xc5a   :  { %687 = vrot.lane.b32.xlu1 %v685_v49, %s2731_s4  ;;  %v1021_v49 = vld [vmem:[%s3183_s6 + $0x8] sm:$0xff] }
 0xccc   :  { %v688_v51 = vpop.permute.xlu1 %687 }
 0xccd   :  { %v690_v52 = vadd.f32 %v688_v51, %v680_v50  ;;  %v2991_v50 = vpack.c.bf16 %v1021_v49, %v1020_v48  ;;  %v1022_v51 = vld [vmem:[%s3183_s6 + $0x10] sm:$0xff] }
 0xccf   :  { %2637 = vtanh.f32 %v690_v52 }
 0xcd9   :  { %v2638_v53 = vpop.eup %2637 }
 0xcda   :  { %693 = vrot.lane.b32.xlu0 %v2638_v53, %s2730_s27 }
 0xd4c   :  { %v694_v54 = vpop.permute.xlu0 %693 }
 0xd4d   :  { %v696_v55 = vmul.f32 %v2636_v47, %v694_v54 }
 0xd4f   :  { %698 = vrot.lane.b32.xlu1 %v696_v55, %s2731_s4 }
 0xdc1   :  { %v699_v56 = vpop.permute.xlu1 %698 }
 0xdc2   :  { %701 = vst.msk [vmem:[#allocation2 + $0x20] sm:$0xff] %vm190_vm3, %v699_v56  ;;  %2338 = vmatmul.mubr.msk.f32.vlgmr.msra.gmra.mrb[6].mxu1 %vm190_vm3, %v699_v56 }
 0xdc3   :  { %2525 = vmatpush3.bf16.msra.mxu1 %v2798_v4  ;;  %2359 = vmatprep.mubr.msk.f32.mxu1 %vm2728_vm2, %v2729_v8 }
 0xdc4   :  { %2526 = vmatprep.subr.bf16.mxu1 %v2727_v0 }
 0xdc7   :  { %2528 = vmatpush3.bf16.msra.mxu1 %v2819_v10 }
 0xdc8   :  { %2537 = vmatprep.subr.bf16.mxu1 %v2727_v0 }
 0xdc9   :  { %v1012_v26 = vld [vmem:[#allocation2 + $0x20] sm:$0xff] }
 0xe95   :  { %v770_v61 = vpop.f32.mrb[6].mxu1 }
 0xe96   :  { %v774_v62 = vadd.f32 %v770_v61, %v177_v58  ;;  %v2339_v63 = vpop.f32.mrb[7].mxu1  ;;  %v187_v61 = vadd.f32 %v2889_v59, %v2839_v12 }
 0xe98   :  { %2639 = vtanh.f32 %v774_v62  ;;  %v2123_v4 = vmul.f32 -1.442695, %v774_v62 }
 0xe9a   :  { %2641 = vpow2.f32 %v2123_v4  ;;  %v3027_v4 = vld [vmem:[%s3184_s7] ss:$0 sm:$0xff] }
 0xea2   :  { %v2640_v1 = vpop.eup %2639 }
 0xea3   :  { %784 = vrot.lane.b32.xlu0 %v2640_v1, %s2730_s27 }
 0xea4   :  { %v2642_v2 = vpop.eup %2641 }
 0xea5   :  { %v778_v3 = vadd.f32 1.0, %v2642_v2 }
 0xea7   :  { %2643 = vrcp.f32 %v778_v3 }
 0xeb1   :  { %v2644_v5 = vpop.eup %2643 }
 0xeb2   :  { %v782_v7 = vmul.f32 %v2644_v5, %v690_v52  ;;  %v1023_v52 = vld [vmem:[%s3183_s6 + $0x18] sm:$0xff] }
 0xeb3   :  { %v3001_v53 = vpack.c.bf16 %v1023_v52, %v1022_v51 }
 0xf15   :  { %v785_v6 = vpop.permute.xlu0 %784 }
 0xf16   :  { %v787_v10 = vmul.f32 %v2644_v5, %v785_v6 }
 0xf18   :  { %789 = vrot.lane.b32.xlu1 %v787_v10, %s2731_s4 }
 0xf8a   :  { %v790_v9 = vpop.permute.xlu1 %789 }
 0xf8b   :  { %v792_v57 = vadd.f32 %v790_v9, %v782_v7 }
 0xf8d   :  { %2645 = vtanh.f32 %v792_v57 }
 0xf97   :  { %v2646_v15 = vpop.eup %2645 }
 0xf98   :  { %795 = vrot.lane.b32.xlu0 %v2646_v15, %s2730_s27 }
0x100a   :  { %v796_v16 = vpop.permute.xlu0 %795 }
0x100b   :  { %v798_v17 = vmul.f32 %v2644_v5, %v796_v16 }
0x100d   :  { %800 = vrot.lane.b32.xlu1 %v798_v17, %s2731_s4 }
0x107f   :  { %v801_v21 = vpop.permute.xlu1 %800 }
0x1080   :  { %803 = vst.msk [vmem:[#allocation2 + $0x28] sm:$0xff] %vm190_vm3, %v801_v21  ;;  %2349 = vmatmul.mubr.msk.f32.vlgmr.msra.gmra.mrb[12].mxu0 %vm190_vm3, %v801_v21 }
0x1081   :  { %2532 = vmatpush3.bf16.msra.mxu0 %v2529_v14  ;;  %2370 = vmatprep.mubr.msk.f32.mxu0 %vm190_vm3, %v1008_v22 }
0x1082   :  { %2534 = vmatprep.subr.bf16.mxu0 %v2533_v20 }
0x1085   :  { %2536 = vmatpush3.bf16.msra.mxu0 %v2533_v20 }
0x1086   :  { %2549 = vmatprep.subr.bf16.mxu0 %v2727_v0 }
0x1087   :  { %v1013_v27 = vld [vmem:[#allocation2 + $0x28] sm:$0xff] }
0x1088   :  { %2371 = vmatmul.mubr.msk.f32.vlgmr.msra.gmra.mrb[14].mxu0 %vm190_vm3, %v1009_v23 }
0x1089   :  { %2373 = vmatprep.mubr.msk.f32.mxu0 %vm190_vm3, %v1010_v24  ;;  %2551 = vmatpush3.bf16.msra.mxu0 %v2991_v50 }
0x108a   :  { %2552 = vmatprep.subr.bf16.mxu0 %v2727_v0 }
0x108c   :  { %2374 = vmatmul.mubr.msk.f32.gmra.mrb[16].mxu0 %vm190_vm3, %v1011_v25 }
0x108d   :  { %2376 = vmatprep.mubr.msk.f32.mxu0 %vm190_vm3, %v1012_v26  ;;  %2554 = vmatpush3.bf16.msra.mxu0 %v3001_v53 }
0x108e   :  { %2561 = vmatprep.subr.bf16.mxu0 %v2727_v0 }
0x1090   :  { %2377 = vmatmul.mubr.msk.f32.gmra.mrb[18].mxu0 %vm190_vm3, %v1013_v27 }
0x1153   :  { %v872_v29 = vpop.f32.mrb[12].mxu0 }
0x1154   :  { %v876_v30 = vadd.f32 %v872_v29, %v182_v28  ;;  %v2350_v31 = vpop.f32.mrb[13].mxu0 }
0x1156   :  { %2647 = vtanh.f32 %v876_v30  ;;  %v2125_v39 = vmul.f32 -1.442695, %v876_v30 }
0x1158   :  { %2649 = vpow2.f32 %v2125_v39 }
0x115b   :  { %v2969_v32 = vpop.f32.mrb[14].mxu0 }
0x115c   :  { %v1121_v33 = vpop.f32.mrb[15].mxu0 }
0x115d   :  { %v1122_v2 = vadd.f32 %v3027_v4, %v1121_v33 }
0x115f   :  { %v2971_v34 = vpop.f32.mrb[16].mxu0 }
0x1160   :  { %v2648_v35 = vpop.eup %2647  ;;  %v2973_v36 = vpop.f32.mrb[17].mxu0 }
0x1161   :  { %886 = vrot.lane.b32.xlu0 %v2648_v35, %s2730_s27  ;;  %v1127_v35 = vadd.f32 %v2969_v32, %v3027_v4 }
0x1162   :  { %v2650_v60 = vpop.eup %2649 }
0x1163   :  { %v2976_v37 = vpop.f32.mrb[18].mxu0  ;;  %v880_v40 = vadd.f32 1.0, %v2650_v60 }
0x1164   :  { %v2978_v38 = vpop.f32.mrb[19].mxu0 }
0x1165   :  { %2651 = vrcp.f32 %v880_v40 }
0x116f   :  { %v2652_v41 = vpop.eup %2651 }
0x1170   :  { %v884_v44 = vmul.f32 %v2652_v41, %v792_v57 }
0x11d3   :  { %v887_v42 = vpop.permute.xlu0 %886 }
0x11d4   :  { %v889_v43 = vmul.f32 %v2652_v41, %v887_v42 }
0x11d6   :  { %891 = vrot.lane.b32.xlu1 %v889_v43, %s2731_s4 }
0x1248   :  { %v892_v45 = vpop.permute.xlu1 %891 }
0x1249   :  { %v2981_v46 = vadd.f32 %v892_v45, %v884_v44 }
0x124b   :  { %2653 = vtanh.f32 %v2981_v46 }
0x1255   :  { %v2654_v47 = vpop.eup %2653 }
0x1256   :  { %897 = vrot.lane.b32.xlu0 %v2654_v47, %s2730_s27 }
0x12c8   :  { %v898_v54 = vpop.permute.xlu0 %897 }
0x12c9   :  { %v900_v55 = vmul.f32 %v2652_v41, %v898_v54 }
0x12cb   :  { %902 = vrot.lane.b32.xlu1 %v900_v55, %s2731_s4 }
0x133d   :  { %v903_v56 = vpop.permute.xlu1 %902 }
0x133e   :  { %905 = vst.msk [vmem:[#allocation2 + $0x30] sm:$0xff] %vm190_vm3, %v903_v56  ;;  %2360 = vmatmul.mubr.msk.f32.vlgmr.msra.gmra.mrb[8].mxu1 %vm190_vm3, %v903_v56 }
0x133f   :  { %2539 = vmatpush3.bf16.msra.mxu1 %v2991_v50  ;;  %2390 = vmatprep.mubr.msk.f32.mxu1 %vm2728_vm2, %v2729_v8 }
0x1340   :  { %2540 = vmatprep.subr.bf16.mxu1 %v2727_v0 }
0x1343   :  { %2542 = vmatpush3.bf16.msra.mxu1 %v3001_v53 }
0x1344   :  { %2543 = vmatprep.subr.bf16.mxu1 %v2727_v0 }
0x1345   :  { %v1014_v58 = vld [vmem:[#allocation2 + $0x30] sm:$0xff] }
0x1346   :  { %2391 = vmatmul.mubr.f32.vlgmr.msra.gmra.mrb[10].mxu1 %v2729_v8  ;;  %2379 = vmatprep.mubr.msk.f32.mxu0 %vm190_vm3, %v1014_v58 }
0x1347   :  { %2545 = vmatpush3.bf16.msra.mxu1 %v2991_v50  ;;  %2401 = vmatprep.mubr.msk.f32.mxu1 %vm2728_vm2, %v2729_v8 }
0x1348   :  { %2546 = vmatprep.subr.bf16.mxu1 %v2727_v0 }
0x134b   :  { %2548 = vmatpush3.bf16.msra.mxu1 %v3001_v53 }
0x134c   :  { %2555 = vmatprep.subr.bf16.mxu1 %v2727_v0 }
0x1411   :  { %v974_v62 = vpop.f32.mrb[8].mxu1 }
0x1412   :  { %v978_v63 = vadd.f32 %v974_v62, %v187_v61  ;;  %v2361_v1 = vpop.f32.mrb[9].mxu1 }
0x1414   :  { %v2127_v18 = vmul.f32 -1.442695, %v978_v63 }
0x1419   :  { %v1226_v3 = vpop.f32.mrb[10].mxu1 }
0x141a   :  { %v1230_v5 = vadd.f32 %v1226_v3, %v1122_v2  ;;  %v2392_v6 = vpop.f32.mrb[11].mxu1 }
0x141c   :  { %2655 = vtanh.f32 %v1230_v5  ;;  %v2137_v7 = vmul.f32 -1.442695, %v1230_v5 }
0x141e   :  { %2657 = vpow2.f32 %v2137_v7 }
0x1426   :  { %v2656_v10 = vpop.eup %2655 }
0x1427   :  { %1240 = vrot.lane.b32.xlu0 %v2656_v10, %s2730_s27 }
0x1428   :  { %v2658_v12 = vpop.eup %2657 }
0x1429   :  { %v1234_v59 = vadd.f32 1.0, %v2658_v12 }
0x142b   :  { %2659 = vrcp.f32 %v1234_v59 }
0x1435   :  { %v2660_v9 = vpop.eup %2659 }
0x1436   :  { %v1238_v13 = vmul.f32 0.0, %v2660_v9 }
0x1499   :  { %v1241_v57 = vpop.permute.xlu0 %1240 }
0x149a   :  { %v1243_v11 = vmul.f32 %v2660_v9, %v1241_v57 }
0x149c   :  { %1245 = vrot.lane.b32.xlu1 %v1243_v11, %s2731_s4 }
0x150e   :  { %v1246_v14 = vpop.permute.xlu1 %1245 }
0x150f   :  { %v1248_v15 = vadd.f32 %v1246_v14, %v1238_v13 }
0x1511   :  { %2661 = vtanh.f32 %v1248_v15 }
0x1512   :  { %2663 = vtanh.f32 %v978_v63  ;;  %v1132_v63 = vadd.f32 %v3027_v4, %v2973_v36 }
0x1513   :  { %2665 = vpow2.f32 %v2127_v18 }
0x151b   :  { %v2662_v16 = vpop.eup %2661 }
0x151c   :  { %1251 = vrot.lane.b32.xlu0 %v2662_v16, %s2730_s27  ;;  %v2664_v17 = vpop.eup %2663 }
0x151d   :  { %v2666_v19 = vpop.eup %2665 }
0x151e   :  { %v982_v20 = vadd.f32 1.0, %v2666_v19 }
0x1520   :  { %988 = vrot.lane.b32.xlu0 %v2664_v17, %s2730_s27  ;;  %2667 = vrcp.f32 %v982_v20  ;;  %v1137_v17 = vadd.f32 %v2971_v34, %v3027_v4 }
0x152a   :  { %v2668_v23 = vpop.eup %2667 }
0x152b   :  { %v986_v27 = vmul.f32 %v2668_v23, %v2981_v46 }
0x158e   :  { %v1252_v21 = vpop.permute.xlu0 %1251 }
0x158f   :  { %v3034_v22 = vmul.f32 %v2660_v9, %v1252_v21 }
0x1591   :  { %1263 = vrot.lane.b32.xlu1 %v3034_v22, %s2731_s4 }
0x1592   :  { %v989_v24 = vpop.permute.xlu0 %988 }
0x1593   :  { %v991_v25 = vmul.f32 %v2668_v23, %v989_v24 }
0x1595   :  { %993 = vrot.lane.b32.xlu0 %v991_v25, %s2731_s4 }
0x1603   :  { %v1264_v26 = vpop.permute.xlu1 %1263 }
0x1604   :  { %2402 = vmatmul.mubr.msk.f32.vlgmr.msra.gmra.mrb[12].mxu1 %vm190_vm3, %v1264_v26 }
0x1605   :  { %2557 = vmatpush3.bf16.msra.mxu1 %v2991_v50  ;;  %2423 = vmatprep.mubr.msk.f32.mxu1 %vm2728_vm2, %v2729_v8 }
0x1606   :  { %2558 = vmatprep.subr.bf16.mxu1 %v2727_v0 }
0x1607   :  { %v994_v28 = vpop.permute.xlu0 %993 }
0x1608   :  { %v996_v29 = vadd.f32 %v994_v28, %v986_v27 }
0x1609   :  { %2560 = vmatpush3.bf16.msra.mxu1 %v3001_v53 }
0x160a   :  { %2669 = vtanh.f32 %v996_v29  ;;  %2567 = vmatprep.subr.bf16.mxu1 %v2727_v0 }
0x1614   :  { %v2670_v30 = vpop.eup %2669 }
0x1615   :  { %999 = vrot.lane.b32.xlu0 %v2670_v30, %s2730_s27 }
0x1687   :  { %v1000_v31 = vpop.permute.xlu0 %999 }
0x1688   :  { %v1002_v33 = vmul.f32 %v2668_v23, %v1000_v31 }
0x168a   :  { %1004 = vrot.lane.b32.xlu0 %v1002_v33, %s2731_s4 }
0x16d7   :  { %v1333_v39 = vpop.f32.mrb[12].mxu1 }
0x16d8   :  { %v1337_v60 = vadd.f32 %v1333_v39, %v1127_v35  ;;  %v2403_v40 = vpop.f32.mrb[13].mxu1 }
0x16da   :  { %2671 = vtanh.f32 %v1337_v60  ;;  %v2139_v44 = vmul.f32 -1.442695, %v1337_v60  ;;  %v1142_v60 = vadd.f32 %v3027_v4, %v2978_v38 }
0x16dc   :  { %2673 = vpow2.f32 %v2139_v44 }
0x16e4   :  { %v2672_v41 = vpop.eup %2671 }
0x16e5   :  { %1347 = vrot.lane.b32.xlu1 %v2672_v41, %s2730_s27 }
0x16e6   :  { %v2674_v45 = vpop.eup %2673 }
0x16e7   :  { %v1341_v32 = vadd.f32 1.0, %v2674_v45 }
0x16e9   :  { %2675 = vrcp.f32 %v1341_v32 }
0x16f3   :  { %v2676_v46 = vpop.eup %2675 }
0x16f4   :  { %v1345_v49 = vmul.f32 %v2676_v46, %v1248_v15 }
0x16fc   :  { %v1005_v42 = vpop.permute.xlu0 %1004 }
0x16fd   :  { %1007 = vst.msk [vmem:[#allocation2 + $0x38] sm:$0xff] %vm190_vm3, %v1005_v42 }
0x1704   :  { %v1015_v43 = vld [vmem:[#allocation2 + $0x38] sm:$0xff] }
0x1705   :  { %2380 = vmatmul.mubr.msk.f32.gmra.mrb[20].mxu0 %vm190_vm3, %v1015_v43 }
0x1706   :  { %2412 = vmatprep.mubr.msk.f32.mxu0 %vm2728_vm2, %v2729_v8 }
0x1757   :  { %v1348_v47 = vpop.permute.xlu1 %1347 }
0x1758   :  { %v1350_v48 = vmul.f32 %v2676_v46, %v1348_v47 }
0x175a   :  { %1352 = vrot.lane.b32.xlu1 %v1350_v48, %s2731_s4 }
0x17cc   :  { %v1353_v51 = vpop.permute.xlu1 %1352 }
0x17cd   :  { %v1355_v52 = vadd.f32 %v1353_v51, %v1345_v49 }
0x17cf   :  { %2677 = vtanh.f32 %v1355_v52 }
0x17d8   :  { %v3057_v54 = vpop.f32.mrb[20].mxu0 }
0x17d9   :  { %v2678_v55 = vpop.eup %2677  ;;  %v3059_v56 = vpop.f32.mrb[21].mxu0 }
0x17da   :  { %1358 = vrot.lane.b32.xlu1 %v2678_v55, %s2730_s27 }
0x184c   :  { %v1359_v58 = vpop.permute.xlu1 %1358 }
0x184d   :  { %v3062_v61 = vmul.f32 %v2676_v46, %v1359_v58 }
0x184f   :  { %1370 = vrot.lane.b32.xlu1 %v3062_v61, %s2731_s4 }
0x18c1   :  { %v1371_v62 = vpop.permute.xlu1 %1370 }
0x18c2   :  { %2413 = vmatmul.mubr.msk.f32.vlgmr.msra.gmra.mrb[22].mxu0 %vm190_vm3, %v1371_v62 }
0x18c3   :  { %2563 = vmatpush3.bf16.msra.mxu0 %v2991_v50  ;;  %2434 = vmatprep.mubr.msk.f32.mxu0 %vm2728_vm2, %v2729_v8 }
0x18c4   :  { %2564 = vmatprep.subr.bf16.mxu0 %v2727_v0 }
0x18c7   :  { %2566 = vmatpush3.bf16.msra.mxu0 %v3001_v53 }
0x18c8   :  { %2573 = vmatprep.subr.bf16.mxu0 %v2727_v0 }
0x1995   :  { %v1440_v1 = vpop.f32.mrb[22].mxu0 }
0x1996   :  { %v1444_v2 = vadd.f32 %v1440_v1, %v1132_v63  ;;  %v2414_v3 = vpop.f32.mrb[23].mxu0  ;;  %v1147_v63 = vadd.f32 %v2976_v37, %v3027_v4 }
0x1998   :  { %2679 = vtanh.f32 %v1444_v2  ;;  %v2141_v6 = vmul.f32 -1.442695, %v1444_v2 }
0x199a   :  { %2681 = vpow2.f32 %v2141_v6 }
0x19a2   :  { %v2680_v5 = vpop.eup %2679 }
0x19a3   :  { %1454 = vrot.lane.b32.xlu0 %v2680_v5, %s2730_s27 }
0x19a4   :  { %v2682_v10 = vpop.eup %2681 }
0x19a5   :  { %v1448_v7 = vadd.f32 1.0, %v2682_v10 }
0x19a7   :  { %2683 = vrcp.f32 %v1448_v7 }
0x19b1   :  { %v2684_v12 = vpop.eup %2683 }
0x19b2   :  { %v1452_v57 = vmul.f32 %v2684_v12, %v1355_v52 }
0x1a15   :  { %v1455_v59 = vpop.permute.xlu0 %1454 }
0x1a16   :  { %v1457_v9 = vmul.f32 %v2684_v12, %v1455_v59 }
0x1a18   :  { %1459 = vrot.lane.b32.xlu1 %v1457_v9, %s2731_s4 }
0x1a8a   :  { %v1460_v11 = vpop.permute.xlu1 %1459 }
0x1a8b   :  { %v1462_v36 = vadd.f32 %v1460_v11, %v1452_v57 }
0x1a8d   :  { %2685 = vtanh.f32 %v1462_v36 }
0x1a97   :  { %v2686_v13 = vpop.eup %2685 }
0x1a98   :  { %1465 = vrot.lane.b32.xlu0 %v2686_v13, %s2730_s27 }
0x1b0a   :  { %v1466_v14 = vpop.permute.xlu0 %1465 }
0x1b0b   :  { %v3078_v15 = vmul.f32 %v2684_v12, %v1466_v14  ;;  %v1152_v14 = vadd.f32 %v3027_v4, %v3059_v56 }
0x1b0d   :  { %1477 = vrot.lane.b32.xlu1 %v3078_v15, %s2731_s4 }
0x1b7f   :  { %v1478_v16 = vpop.permute.xlu1 %1477 }
0x1b80   :  { %2424 = vmatmul.mubr.msk.f32.vlgmr.msra.gmra.mrb[14].mxu1 %vm190_vm3, %v1478_v16 }
0x1b81   :  { %2569 = vmatpush3.bf16.msra.mxu1 %v2991_v50  ;;  %2445 = vmatprep.mubr.msk.f32.mxu1 %vm2728_vm2, %v2729_v8 }
0x1b82   :  { %2570 = vmatprep.subr.bf16.mxu1 %v2727_v0 }
0x1b85   :  { %2572 = vmatpush3.bf16.msra.mxu1 %v3001_v53 }
0x1b86   :  { %2579 = vmatprep.subr.bf16.mxu1 %v2727_v0 }
0x1c53   :  { %v1547_v18 = vpop.f32.mrb[14].mxu1 }
0x1c54   :  { %v1551_v19 = vadd.f32 %v1547_v18, %v1137_v17  ;;  %v2425_v20 = vpop.f32.mrb[15].mxu1 }
0x1c56   :  { %2687 = vtanh.f32 %v1551_v19  ;;  %v2143_v23 = vmul.f32 -1.442695, %v1551_v19 }
0x1c58   :  { %2689 = vpow2.f32 %v2143_v23 }
0x1c60   :  { %v2688_v21 = vpop.eup %2687 }
0x1c61   :  { %1561 = vrot.lane.b32.xlu0 %v2688_v21, %s2730_s27 }
0x1c62   :  { %v2690_v24 = vpop.eup %2689 }
0x1c63   :  { %v1555_v25 = vadd.f32 1.0, %v2690_v24 }
0x1c65   :  { %2691 = vrcp.f32 %v1555_v25 }
0x1c6f   :  { %v2692_v26 = vpop.eup %2691 }
0x1c70   :  { %v1559_v29 = vmul.f32 %v2692_v26, %v1462_v36 }
0x1cd3   :  { %v1562_v27 = vpop.permute.xlu0 %1561 }
0x1cd4   :  { %v1564_v28 = vmul.f32 %v2692_v26, %v1562_v27 }
0x1cd6   :  { %1566 = vrot.lane.b32.xlu1 %v1564_v28, %s2731_s4 }
0x1d48   :  { %v1567_v30 = vpop.permute.xlu1 %1566 }
0x1d49   :  { %v1569_v34 = vadd.f32 %v1567_v30, %v1559_v29 }
0x1d4b   :  { %2693 = vtanh.f32 %v1569_v34 }
0x1d55   :  { %v2694_v31 = vpop.eup %2693 }
0x1d56   :  { %1572 = vrot.lane.b32.xlu0 %v2694_v31, %s2730_s27  ;;  %v2732_v31 = vmov 0  }
0x1d57   :  { %2597 = vset.pattern.permute.xlu0 %v2732_v31  ;;  %2598 = vset.pattern.permute.xlu1 %v2732_v31 }
0x1dc8   :  { %v1573_v33 = vpop.permute.xlu0 %1572 }
0x1dc9   :  { %v3094_v35 = vmul.f32 %v2692_v26, %v1573_v33  ;;  %v1157_v33 = vadd.f32 %v3057_v54, %v3027_v4 }
0x1dcb   :  { %1584 = vrot.lane.b32.xlu1 %v3094_v35, %s2731_s4 }
0x1e3d   :  { %v1585_v39 = vpop.permute.xlu1 %1584 }
0x1e3e   :  { %2435 = vmatmul.mubr.msk.f32.vlgmr.msra.gmra.mrb[24].mxu0 %vm190_vm3, %v1585_v39 }
0x1e3f   :  { %2575 = vmatpush3.bf16.msra.mxu0 %v2991_v50  ;;  %2456 = vmatprep.mubr.msk.f32.mxu0 %vm2728_vm2, %v2729_v8 }
0x1e40   :  { %2576 = vmatprep.subr.bf16.mxu0 %v2727_v0 }
0x1e43   :  { %2578 = vmatpush3.bf16.msra.mxu0 %v3001_v53 }
0x1e44   :  { %2585 = vmatprep.subr.bf16.mxu0 %v2727_v0 }
0x1f11   :  { %v1654_v40 = vpop.f32.mrb[24].mxu0 }
0x1f12   :  { %v1658_v41 = vadd.f32 %v1654_v40, %v1142_v60  ;;  %v2436_v42 = vpop.f32.mrb[25].mxu0 }
0x1f14   :  { %2695 = vtanh.f32 %v1658_v41  ;;  %v2145_v44 = vmul.f32 -1.442695, %v1658_v41  ;;  %v35_v41 = vld [vmem:[%s3185_s1] sm:$0xff] }
0x1f15   :  { %vm1255_vm4 = vcmp.eq.s32.totalorder %v35_v41, 0  ;;  %vm1576_vm5 = vcmp.eq.s32.totalorder %v35_v41, 3  ;;  %vm1790_vm6 = vcmp.eq.s32.totalorder %v35_v41, 5  ;;  %vm2004_vm7 = vcmp.eq.s32.totalorder %v35_v41, 7 }
0x1f16   :  { %2697 = vpow2.f32 %v2145_v44  ;;  %v1577_v44 = vsel %vm1576_vm5, 1, %v2732_v31  ;;  %v2005_v4 = vsel %vm2004_vm7, 1, %v2732_v31  ;;  %vm1362_vm8 = vcmp.eq.s32.totalorder %v35_v41, 1 }
0x1f17   :  { %vm1469_vm9 = vcmp.eq.s32.totalorder %v35_v41, 2  ;;  %vm1683_vm10 = vcmp.eq.s32.totalorder %v35_v41, 4  ;;  %vm1897_vm11 = vcmp.eq.s32.totalorder %v35_v41, 6  ;;  %vm2097_vm5 = vcmask 23552  }
0x1f1e   :  { %v2696_v43 = vpop.eup %2695 }
0x1f1f   :  { %1668 = vrot.lane.b32.xlu0 %v2696_v43, %s2730_s27  ;;  %v1256_v43 = vsel %vm1255_vm4, 1, %v2732_v31 }
0x1f20   :  { %v2698_v45 = vpop.eup %2697 }
0x1f21   :  { %v1662_v32 = vadd.f32 1.0, %v2698_v45  ;;  %v1791_v45 = vsel %vm1790_vm6, 1, %v2732_v31 }
0x1f23   :  { %2699 = vrcp.f32 %v1662_v32 }
0x1f2d   :  { %v2700_v46 = vpop.eup %2699 }
0x1f2e   :  { %v1666_v49 = vmul.f32 %v2700_v46, %v1569_v34 }
0x1f91   :  { %v1669_v47 = vpop.permute.xlu0 %1668 }
0x1f92   :  { %v1671_v48 = vmul.f32 %v2700_v46, %v1669_v47 }
0x1f94   :  { %1673 = vrot.lane.b32.xlu1 %v1671_v48, %s2731_s4 }
0x2006   :  { %v1674_v51 = vpop.permute.xlu1 %1673 }
0x2007   :  { %v1676_v38 = vadd.f32 %v1674_v51, %v1666_v49  ;;  %v1363_v51 = vsel %vm1362_vm8, 1, %v2732_v31 }
0x2009   :  { %2701 = vtanh.f32 %v1676_v38 }
0x2013   :  { %v2702_v52 = vpop.eup %2701 }
0x2014   :  { %1679 = vrot.lane.b32.xlu0 %v2702_v52, %s2730_s27  ;;  %v1684_v52 = vsel %vm1683_vm10, 1, %v2732_v31 }
0x2086   :  { %v1680_v55 = vpop.permute.xlu0 %1679 }
0x2087   :  { %v3110_v58 = vmul.f32 %v2700_v46, %v1680_v55  ;;  %v1898_v55 = vsel %vm1897_vm11, 1, %v2732_v31 }
0x2089   :  { %1691 = vrot.lane.b32.xlu1 %v3110_v58, %s2731_s4 }
0x20fb   :  { %v1692_v62 = vpop.permute.xlu1 %1691 }
0x20fc   :  { %2446 = vmatmul.mubr.msk.f32.vlgmr.msra.gmra.mrb[16].mxu1 %vm190_vm3, %v1692_v62 }
0x20fd   :  { %2581 = vmatpush3.bf16.msra.mxu1 %v2991_v50  ;;  %2467 = vmatprep.mubr.msk.f32.mxu1 %vm2728_vm2, %v2729_v8 }
0x20fe   :  { %2582 = vmatprep.subr.bf16.mxu1 %v2727_v0 }
0x2101   :  { %2584 = vmatpush3.bf16.msra.mxu1 %v3001_v53 }
0x21cf   :  { %v1761_v1 = vpop.f32.mrb[16].mxu1 }
0x21d0   :  { %v1765_v2 = vadd.f32 %v1761_v1, %v1147_v63  ;;  %v2447_v3 = vpop.f32.mrb[17].mxu1 }
0x21d1   :  { %v2012_v3 = vld [vmem:[%s3186_s8 + $0x8] sm:$0xff] }
0x21d2   :  { %2703 = vtanh.f32 %v1765_v2  ;;  %v2147_v6 = vmul.f32 -1.442695, %v1765_v2  ;;  %v2011_v2 = vld [vmem:[%s3186_s8] sm:$0xff] }
0x21d4   :  { %2705 = vpow2.f32 %v2147_v6  ;;  %v2586_v6 = vpack.c.bf16 %v2012_v3, %v2011_v2 }
0x21dc   :  { %v2704_v5 = vpop.eup %2703 }
0x21dd   :  { %1775 = vrot.lane.b32.xlu0 %v2704_v5, %s2730_s27  ;;  %v2013_v5 = vld [vmem:[%s3186_s8 + $0x10] sm:$0xff] }
0x21de   :  { %v2706_v50 = vpop.eup %2705 }
0x21df   :  { %v1769_v10 = vadd.f32 1.0, %v2706_v50  ;;  %v2014_v50 = vld [vmem:[%s3186_s8 + $0x18] sm:$0xff] }
0x21e1   :  { %2707 = vrcp.f32 %v1769_v10  ;;  %v2589_v10 = vpack.c.bf16 %v2014_v50, %v2013_v5 }
0x21eb   :  { %v2708_v7 = vpop.eup %2707 }
0x21ec   :  { %v1773_v53 = vmul.f32 %v2708_v7, %v1676_v38  ;;  %v1470_v38 = vsel %vm1469_vm9, 1, %v2732_v31 }
0x224f   :  { %v1776_v12 = vpop.permute.xlu0 %1775 }
0x2250   :  { %v1778_v59 = vmul.f32 %v2708_v7, %v1776_v12 }
0x2252   :  { %1780 = vrot.lane.b32.xlu1 %v1778_v59, %s2731_s4 }
0x22c4   :  { %v1781_v9 = vpop.permute.xlu1 %1780 }
0x22c5   :  { %v1783_v37 = vadd.f32 %v1781_v9, %v1773_v53 }
0x22c7   :  { %2709 = vtanh.f32 %v1783_v37 }
0x22d1   :  { %v2710_v57 = vpop.eup %2709 }
0x22d2   :  { %1786 = vrot.lane.b32.xlu0 %v2710_v57, %s2730_s27 }
0x2344   :  { %v1787_v11 = vpop.permute.xlu0 %1786 }
0x2345   :  { %v3125_v36 = vmul.f32 %v2708_v7, %v1787_v11 }
0x2347   :  { %1798 = vrot.lane.b32.xlu1 %v3125_v36, %s2731_s4 }
0x23b9   :  { %v1799_v13 = vpop.permute.xlu1 %1798 }
0x23ba   :  { %2457 = vmatmul.mubr.msk.f32.vlgmr.msra.gmra.mrb[26].mxu0 %vm190_vm3, %v1799_v13 }
0x23bb   :  { %2478 = vmatprep.mubr.msk.f32.mxu0 %vm2728_vm2, %v2729_v8  ;;  %2587 = vmatpush3.bf16.msra.mxu0 %v2586_v6 }
0x23bc   :  { %2588 = vmatprep.subr.bf16.mxu0 %v2727_v0 }
0x23bf   :  { %2590 = vmatpush3.bf16.msra.mxu0 %v2589_v10 }
0x248d   :  { %v1868_v16 = vpop.f32.mrb[26].mxu0 }
0x248e   :  { %v1872_v17 = vadd.f32 %v1868_v16, %v1152_v14  ;;  %v2458_v18 = vpop.f32.mrb[27].mxu0 }
0x2490   :  { %2711 = vtanh.f32 %v1872_v17  ;;  %v2149_v20 = vmul.f32 -1.442695, %v1872_v17 }
0x2492   :  { %2713 = vpow2.f32 %v2149_v20 }
0x249a   :  { %v2712_v19 = vpop.eup %2711 }
0x249b   :  { %1882 = vrot.lane.b32.xlu0 %v2712_v19, %s2730_s27 }
0x249c   :  { %v2714_v21 = vpop.eup %2713 }
0x249d   :  { %v1876_v23 = vadd.f32 1.0, %v2714_v21 }
0x249f   :  { %2715 = vrcp.f32 %v1876_v23 }
0x24a9   :  { %v2716_v24 = vpop.eup %2715 }
0x24aa   :  { %v1880_v8 = vmul.f32 %v2716_v24, %v1783_v37 }
0x250d   :  { %v1883_v25 = vpop.permute.xlu0 %1882 }
0x250e   :  { %v1885_v26 = vmul.f32 %v2716_v24, %v1883_v25 }
0x2510   :  { %1887 = vrot.lane.b32.xlu1 %v1885_v26, %s2731_s4 }
0x2582   :  { %v1888_v27 = vpop.permute.xlu1 %1887 }
0x2583   :  { %v1890_v56 = vadd.f32 %v1888_v27, %v1880_v8 }
0x2585   :  { %2717 = vtanh.f32 %v1890_v56 }
0x258f   :  { %v2718_v28 = vpop.eup %2717 }
0x2590   :  { %1893 = vrot.lane.b32.xlu0 %v2718_v28, %s2730_s27 }
0x2602   :  { %v1894_v29 = vpop.permute.xlu0 %1893 }
0x2603   :  { %v3137_v30 = vmul.f32 %v2716_v24, %v1894_v29 }
0x2605   :  { %1905 = vrot.lane.b32.xlu1 %v3137_v30, %s2731_s4 }
0x2677   :  { %v1906_v34 = vpop.permute.xlu1 %1905 }
0x2678   :  { %2468 = vmatmul.mubr.msk.f32.vlgmr.msra.gmra.mrb[18].mxu1 %vm190_vm3, %v1906_v34 }
0x274b   :  { %v1975_v39 = vpop.f32.mrb[18].mxu1 }
0x274c   :  { %v1979_v60 = vadd.f32 %v1975_v39, %v1157_v33  ;;  %v2469_v40 = vpop.f32.mrb[19].mxu1 }
0x274e   :  { %2719 = vtanh.f32 %v1979_v60  ;;  %v2151_v54 = vmul.f32 -1.442695, %v1979_v60 }
0x2750   :  { %2721 = vpow2.f32 %v2151_v54 }
0x2758   :  { %v2720_v42 = vpop.eup %2719 }
0x2759   :  { %1989 = vrot.lane.b32.xlu0 %v2720_v42, %s2730_s27 }
0x275a   :  { %v2722_v32 = vpop.eup %2721 }
0x275b   :  { %v1983_v46 = vadd.f32 1.0, %v2722_v32 }
0x275d   :  { %1258 = vperm.xlu0 %2597, %v1256_v43   ;;  %2723 = vrcp.f32 %v1983_v46 }
0x2761   :  { %1579 = vperm.xlu0 %2597, %v1577_v44  }
0x2765   :  { %1793 = vperm.xlu0 %2597, %v1791_v45  }
0x2767   :  { %v2724_v47 = vpop.eup %2723 }
0x2768   :  { %v1987_v62 = vmul.f32 %v2724_v47, %v1890_v56 }
0x2769   :  { %2007 = vperm.xlu0 %2597, %v2005_v4  }
0x27cb   :  { %v1990_v48 = vpop.permute.xlu0 %1989 }
0x27cc   :  { %v1992_v49 = vmul.f32 %v2724_v47, %v1990_v48 }
0x27ce   :  { %1994 = vrot.lane.b32.xlu1 %v1992_v49, %s2731_s4 }
0x27d2   :  { %1365 = vperm.xlu1 %2598, %v1363_v51  }
0x27d6   :  { %1472 = vperm.xlu1 %2598, %v1470_v38  }
0x27da   :  { %1686 = vperm.xlu1 %2598, %v1684_v52  }
0x27dc   :  { %v1259_v53 = vpop.permute.xlu0 %1258 }
0x27dd   :  { %vm1260_vm12 = vcmp.eq.s32.totalorder %v1259_v53, 1 }
0x27de   :  { %1900 = vperm.xlu1 %2598, %v1898_v55   ;;  %v1261_v57 = vsel %vm1260_vm12, %v3034_v22, 0.0 }
0x27e0   :  { %v1580_v9 = vpop.permute.xlu0 %1579 }
0x27e1   :  { %vm1581_vm15 = vcmp.eq.s32.totalorder %v1580_v9, 1 }
0x27e4   :  { %v1794_v0 = vpop.permute.xlu0 %1793 }
0x27e5   :  { %vm1795_vm1 = vcmp.eq.s32.totalorder %v1794_v0, 1 }
0x27e8   :  { %v2008_v18 = vpop.permute.xlu0 %2007 }
0x27e9   :  { %vm2009_vm4 = vcmp.eq.s32.totalorder %v2008_v18, 1 }
0x2840   :  { %v1995_v63 = vpop.permute.xlu1 %1994 }
0x2841   :  { %v1997_v1 = vadd.f32 %v1995_v63, %v1987_v62 }
0x2843   :  { %2725 = vtanh.f32 %v1997_v1 }
0x284d   :  { %v2726_v7 = vpop.eup %2725 }
0x284e   :  { %2000 = vrot.lane.b32.xlu1 %v2726_v7, %s2730_s27 }
0x2851   :  { %v1366_v12 = vpop.permute.xlu1 %1365 }
0x2852   :  { %vm1367_vm13 = vcmp.eq.s32.totalorder %v1366_v12, 1 }
0x2853   :  { %v1368_v11 = vsel %vm1367_vm13, %v3062_v61, %v1261_v57 }
0x2855   :  { %v1473_v59 = vpop.permute.xlu1 %1472 }
0x2856   :  { %vm1474_vm14 = vcmp.eq.s32.totalorder %v1473_v59, 1 }
0x2857   :  { %v1475_v13 = vsel %vm1474_vm14, %v3078_v15, %v1368_v11 }
0x2858   :  { %v1582_v16 = vsel %vm1581_vm15, %v3094_v35, %v1475_v13  ;;  %v2152_v35 = vld [vmem:[%s3187_s9] ss:$0 sm:$0xff] }
0x2859   :  { %v1687_v37 = vpop.permute.xlu1 %1686 }
0x285a   :  { %vm1688_vm0 = vcmp.eq.s32.totalorder %v1687_v37, 1 }
0x285b   :  { %v1689_v17 = vsel %vm1688_vm0, %v3110_v58, %v1582_v16 }
0x285c   :  { %v1796_v20 = vsel %vm1795_vm1, %v3125_v36, %v1689_v17 }
0x285d   :  { %v1901_v14 = vpop.permute.xlu1 %1900 }
0x285e   :  { %vm1902_vm2 = vcmp.eq.s32.totalorder %v1901_v14, 1 }
0x285f   :  { %v1903_v22 = vsel %vm1902_vm2, %v3137_v30, %v1796_v20 }
0x28c0   :  { %v2001_v19 = vpop.permute.xlu1 %2000 }
0x28c1   :  { %v2003_v21 = vmul.f32 %v2724_v47, %v2001_v19 }
0x28c3   :  { %v2010_v61 = vsel %vm2009_vm4, %v2003_v21, %v1903_v22 }
0x28c4   :  { %2023 = vrot.lane.b32.xlu0 %v2010_v61, %s2731_s4 }
0x2936   :  { %v2024_v15 = vpop.permute.xlu0 %2023 }
0x2937   :  { %2479 = vmatmul.mubr.msk.f32.vlgmr.msra.gmra.mrb[28].mxu0 %vm190_vm3, %v2024_v15 }
0x2a0a   :  { %v2093_v58 = vpop.f32.mrb[28].mxu0 }
0x2a0b   :  { %v2094_v23 = vadd.f32 %v2152_v35, %v2093_v58  ;;  %v2480_v24 = vpop.f32.mrb[29].mxu0 }
0x2a0d   :  { %2098 = vst.msk [vmem:[%s3188_s10] sm:$0xff] %vm2097_vm5, %v2094_v23 }

// kernel: forward.3
= control target key start
LH: loop header
LB: loop body
LE: loop exit
PB: predicated region body
PF: predicated region fallthrough
CT: control target
= control target key end

     0   :  { %vm53_vm0 = vcmask 1042432   ;;  %vm49_vm1 = vcmask 23552   ;;  %v2774_v0 = vmov 0.0   ;;  %vm2775_vm2 = vmmov 0   ;;  %s2778_s13 = smov 64   ;;  %s3255_s2 = inlined_call_operand.vmem [shape: f32[3,128], index: 2, kind: input, shape index: {}]   ;;  %s3256_s1 = inlined_call_operand.vmem [shape: f32[8,3], index: 1, kind: input, shape index: {}]   ;;  %s3257_s4 = inlined_call_operand.vmem [shape: f32[32,128], index: 4, kind: input, shape index: {}]   ;;  %s3258_s0 = inlined_call_operand.vmem [shape: f32[8,8,1], index: 0, kind: input, shape index: {}]   ;;  %s3259_s5 = inlined_call_operand.vmem [shape: f32[1,128], index: 5, kind: input, shape index: {}]   ;;  %s3260_s3 = inlined_call_operand.vmem [shape: f32[1,128], index: 3, kind: input, shape index: {}]   ;;  %s3261_s6 = inlined_call_operand.vmem [shape: f32[32,128], index: 6, kind: input, shape index: {}]   ;;  %s3262_s7 = inlined_call_operand.vmem [shape: f32[32,128], index: 7, kind: input, shape index: {}]   ;;  %s3263_s8 = inlined_call_operand.vmem [shape: f32[1,128], index: 8, kind: input, shape index: {}]   ;;  %s3264_s9 = inlined_call_operand.vmem [shape: f32[32,1], index: 9, kind: input, shape index: {}]   ;;  %s3265_s10 = inlined_call_operand.<no memory space> [shape: f32[1,1], index: 10, kind: input, shape index: {}]   ;;  %s3266_s11 = inlined_call_operand.vmem [shape: f32[8,8,1], index: 11, kind: output, shape index: {}]  }
   0x1   :  { %2305 = vmatprep.subr.mxu0 %v2774_v0  ;;  %v41_v1 = vld [vmem:[%s3255_s2] sm:$0x7]  ;;  %2307 = vmatprep.mubr.msk.f32.mxu0 %vm2775_vm2, %v2774_v0  ;;  %v191_v4 = vld [vmem:[%s3257_s4 + $0x8] sm:$0xff]  ;;  %v192_v5 = vld [vmem:[%s3257_s4 + $0x10] sm:$0xff]  ;;  %v2776_v7 = vmov 0   ;;  %v2777_v8 = vmov 0.0|0.0  }
   0x2   :  { %v40_v2 = vld [vmem:[%s3256_s1] sm:$0xff]  ;;  %2306 = vmatpush3.msk.msra.mxu0 %vm53_vm0, %v41_v1  ;;  %v193_v6 = vld [vmem:[%s3257_s4 + $0x18] sm:$0xff]  ;;  %2644 = vset.pattern.permute.xlu0 %v2776_v7  ;;  %v128_v34 = vld [vmem:[%s3258_s0 + $0x8] sm:$0xff]  ;;  %vm195_vm3 = vcmask 261120   ;;  %vm2134_vm4 = vcmask 7168  }
   0x3   :  { %v190_v3 = vld [vmem:[%s3257_s4] sm:$0xff]  ;;  %2308 = vmatmul.mubr.msk.f32.vlgmr.msra.gmra.mrb[0].mxu0 %vm49_vm1, %v40_v2  ;;  %2526 = vmatprep.subr.bf16.mxu0 %v2777_v8  ;;  %v2871_v11 = vpack.c.bf16 %v193_v6, %v192_v5  ;;  %v129_v55 = vld [vmem:[%s3258_s0 + $0x10] sm:$0xff] }
   0x4   :  { %v2863_v9 = vpack.c.bf16 %v191_v4, %v190_v3  ;;  %v127_v10 = vld [vmem:[%s3258_s0] sm:$0xff]  ;;  %2318 = vmatprep.mubr.msk.f32.mxu0 %vm2775_vm2, %v2774_v0  ;;  %2645 = vset.pattern.permute.xlu1 %v2776_v7 }
   0x5   :  { %138 = vperm.xlu0 %2644, %v127_v10   ;;  %2538 = vmatprep.subr.bf16.mxu1 %v2777_v8  ;;  %v2147_v13 = vld [vmem:[%s3259_s5] ss:$0 sm:$0xff] }
   0x6   :  { %2528 = vmatpush3.bf16.msra.mxu0 %v2863_v9  ;;  %2540 = vmatpush3.bf16.msra.mxu1 %v2863_v9  ;;  %v2896_v15 = vld [vmem:[%s3260_s3] ss:$0 sm:$0xff]  ;;  %s2779_s3 = smov 32  }
   0x7   :  { %2529 = vmatprep.subr.bf16.mxu0 %v2777_v8  ;;  %2340 = vmatprep.mubr.msk.f32.mxu1 %vm2775_vm2, %v2774_v0 }
   0x8   :  { %2541 = vmatprep.subr.bf16.mxu1 %v2777_v8 }
   0xa   :  { %2531 = vmatpush3.bf16.msra.mxu0 %v2871_v11  ;;  %2543 = vmatpush3.bf16.msra.mxu1 %v2871_v11 }
   0xb   :  { %2532 = vmatprep.subr.bf16.mxu0 %v2777_v8  ;;  %2550 = vmatprep.subr.bf16.mxu1 %v2777_v8 }
   0xd   :  { %2319 = vmatmul.mubr.f32.vlgmr.msra.gmra.mrb[2].mxu0 %v2774_v0 }
   0xe   :  { %2534 = vmatpush3.bf16.msra.mxu0 %v2863_v9  ;;  %2329 = vmatprep.mubr.msk.f32.mxu0 %vm2775_vm2, %v2774_v0 }
   0xf   :  { %2535 = vmatprep.subr.bf16.mxu0 %v2777_v8 }
  0x12   :  { %2537 = vmatpush3.bf16.msra.mxu0 %v2871_v11 }
  0x13   :  { %2544 = vmatprep.subr.bf16.mxu0 %v2777_v8 }
  0x84   :  { %v139_v16 = vpop.permute.xlu0 %138 }
  0x85   :  { %v182_v18 = vmul.f32 %v2896_v15, %v139_v16 }
  0xd6   :  { %v123_v12 = vpop.f32.mrb[0].mxu0 }
  0xd7   :  { %v2309_v14 = vpop.f32.mrb[1].mxu0  ;;  %v2898_v17 = vadd.f32 %v2147_v13, %v123_v12 }
  0xd9   :  { %v194_v19 = vadd.f32 %v182_v18, %v2898_v17  ;;  %v130_v18 = vld [vmem:[%s3258_s0 + $0x18] sm:$0xff] }
  0xe0   :  { %v265_v20 = vpop.f32.mrb[2].mxu0 }
  0xe1   :  { %v269_v21 = vadd.f32 %v265_v20, %v194_v19  ;;  %v2320_v22 = vpop.f32.mrb[3].mxu0 }
  0xe3   :  { %2646 = vtanh.f32 %v269_v21  ;;  %v2151_v24 = vmul.f32 -1.442695, %v269_v21 }
  0xe5   :  { %2648 = vpow2.f32 %v2151_v24 }
  0xed   :  { %v2647_v23 = vpop.eup %2646 }
  0xee   :  { %279 = vrot.lane.b32.xlu0 %v2647_v23, %s2778_s13 }
  0xef   :  { %v2649_v25 = vpop.eup %2648 }
  0xf0   :  { %v273_v26 = vadd.f32 1.0, %v2649_v25 }
  0xf2   :  { %2650 = vrcp.f32 %v273_v26 }
  0xfc   :  { %v2651_v27 = vpop.eup %2650 }
  0xfd   :  { %v277_v30 = vmul.f32 0.0, %v2651_v27 }
 0x160   :  { %v280_v28 = vpop.permute.xlu0 %279 }
 0x161   :  { %v282_v29 = vmul.f32 %v2651_v27, %v280_v28 }
 0x163   :  { %284 = vrot.lane.b32.xlu1 %v282_v29, %s2779_s3 }
 0x1d5   :  { %v285_v31 = vpop.permute.xlu1 %284 }
 0x1d6   :  { %v287_v32 = vadd.f32 %v285_v31, %v277_v30 }
 0x1d8   :  { %2652 = vtanh.f32 %v287_v32 }
 0x1e2   :  { %v2653_v33 = vpop.eup %2652 }
 0x1e3   :  { %290 = vrot.lane.b32.xlu1 %v2653_v33, %s2778_s13 }
 0x1e7   :  { %143 = vperm.xlu1 %2645, %v128_v34  }
 0x255   :  { %v291_v35 = vpop.permute.xlu1 %290 }
 0x256   :  { %v293_v36 = vmul.f32 %v2651_v27, %v291_v35 }
 0x258   :  { %295 = vrot.lane.b32.xlu0 %v293_v36, %s2779_s3 }
 0x266   :  { %v144_v38 = vpop.permute.xlu1 %143 }
 0x267   :  { %v183_v39 = vmul.f32 %v2896_v15, %v144_v38 }
 0x269   :  { %v299_v40 = vadd.f32 %v183_v39, %v2898_v17  ;;  %v131_v39 = vld [vmem:[%s3258_s0 + $0x20] sm:$0xff] }
 0x2ca   :  { %v296_v37 = vpop.permute.xlu0 %295 }
 0x2cb   :  { %298 = vst.msk [vmem:[#allocation2] sm:$0xff] %vm195_vm3, %v296_v37  ;;  %2330 = vmatmul.mubr.msk.f32.vlgmr.msra.gmra.mrb[4].mxu0 %vm195_vm3, %v296_v37 }
 0x2cc   :  { %2546 = vmatpush3.bf16.msra.mxu0 %v2863_v9  ;;  %2351 = vmatprep.mubr.msk.f32.mxu0 %vm2775_vm2, %v2774_v0 }
 0x2cd   :  { %2547 = vmatprep.subr.bf16.mxu0 %v2777_v8 }
 0x2d0   :  { %2549 = vmatpush3.bf16.msra.mxu0 %v2871_v11 }
 0x2d1   :  { %2556 = vmatprep.subr.bf16.mxu0 %v2777_v8 }
 0x39e   :  { %v368_v41 = vpop.f32.mrb[4].mxu0 }
 0x39f   :  { %v372_v42 = vadd.f32 %v368_v41, %v299_v40  ;;  %v2331_v43 = vpop.f32.mrb[5].mxu0 }
 0x3a1   :  { %2654 = vtanh.f32 %v372_v42  ;;  %v2153_v45 = vmul.f32 -1.442695, %v372_v42 }
 0x3a3   :  { %2656 = vpow2.f32 %v2153_v45 }
 0x3ab   :  { %v2655_v44 = vpop.eup %2654 }
 0x3ac   :  { %382 = vrot.lane.b32.xlu0 %v2655_v44, %s2778_s13 }
 0x3ad   :  { %v2657_v46 = vpop.eup %2656 }
 0x3ae   :  { %v376_v47 = vadd.f32 1.0, %v2657_v46 }
 0x3b0   :  { %2658 = vrcp.f32 %v376_v47 }
 0x3ba   :  { %v2659_v48 = vpop.eup %2658 }
 0x3bb   :  { %v380_v51 = vmul.f32 %v2659_v48, %v287_v32 }
 0x41e   :  { %v383_v49 = vpop.permute.xlu0 %382 }
 0x41f   :  { %v385_v50 = vmul.f32 %v2659_v48, %v383_v49 }
 0x421   :  { %387 = vrot.lane.b32.xlu1 %v385_v50, %s2779_s3 }
 0x493   :  { %v388_v52 = vpop.permute.xlu1 %387 }
 0x494   :  { %v390_v53 = vadd.f32 %v388_v52, %v380_v51 }
 0x496   :  { %2660 = vtanh.f32 %v390_v53 }
 0x4a0   :  { %v2661_v54 = vpop.eup %2660 }
 0x4a1   :  { %393 = vrot.lane.b32.xlu0 %v2661_v54, %s2778_s13 }
 0x4a5   :  { %148 = vperm.xlu0 %2644, %v129_v55  }
 0x513   :  { %v394_v56 = vpop.permute.xlu0 %393 }
 0x514   :  { %v396_v57 = vmul.f32 %v2659_v48, %v394_v56 }
 0x516   :  { %398 = vrot.lane.b32.xlu1 %v396_v57, %s2779_s3 }
 0x524   :  { %v149_v59 = vpop.permute.xlu0 %148 }
 0x525   :  { %v184_v60 = vmul.f32 %v2896_v15, %v149_v59 }
 0x527   :  { %v402_v61 = vadd.f32 %v184_v60, %v2898_v17  ;;  %v132_v60 = vld [vmem:[%s3258_s0 + $0x28] sm:$0xff] }
 0x588   :  { %v399_v58 = vpop.permute.xlu1 %398 }
 0x589   :  { %401 = vst.msk [vmem:[#allocation2 + $0x8] sm:$0xff] %vm195_vm3, %v399_v58  ;;  %2341 = vmatmul.mubr.msk.f32.vlgmr.msra.gmra.mrb[0].mxu1 %vm195_vm3, %v399_v58 }
 0x58a   :  { %2552 = vmatpush3.bf16.msra.mxu1 %v2863_v9  ;;  %2362 = vmatprep.mubr.msk.f32.mxu1 %vm2775_vm2, %v2774_v0 }
 0x58b   :  { %2553 = vmatprep.subr.bf16.mxu1 %v2777_v8 }
 0x58e   :  { %2555 = vmatpush3.bf16.msra.mxu1 %v2871_v11 }
 0x58f   :  { %2562 = vmatprep.subr.bf16.mxu1 %v2777_v8 }
 0x65c   :  { %v471_v62 = vpop.f32.mrb[0].mxu1 }
 0x65d   :  { %v475_v63 = vadd.f32 %v471_v62, %v402_v61  ;;  %v2342_v1 = vpop.f32.mrb[1].mxu1 }
 0x65f   :  { %2662 = vtanh.f32 %v475_v63  ;;  %v2155_v3 = vmul.f32 -1.442695, %v475_v63 }
 0x661   :  { %2664 = vpow2.f32 %v2155_v3 }
 0x669   :  { %v2663_v2 = vpop.eup %2662 }
 0x66a   :  { %485 = vrot.lane.b32.xlu1 %v2663_v2, %s2778_s13 }
 0x66b   :  { %v2665_v4 = vpop.eup %2664 }
 0x66c   :  { %v479_v5 = vadd.f32 1.0, %v2665_v4 }
 0x66e   :  { %2666 = vrcp.f32 %v479_v5 }
 0x678   :  { %v2667_v6 = vpop.eup %2666 }
 0x679   :  { %v483_v12 = vmul.f32 %v2667_v6, %v390_v53 }
 0x6dc   :  { %v486_v7 = vpop.permute.xlu1 %485 }
 0x6dd   :  { %v488_v10 = vmul.f32 %v2667_v6, %v486_v7 }
 0x6df   :  { %490 = vrot.lane.b32.xlu0 %v488_v10, %s2779_s3 }
 0x751   :  { %v491_v13 = vpop.permute.xlu0 %490 }
 0x752   :  { %v493_v14 = vadd.f32 %v491_v13, %v483_v12 }
 0x754   :  { %2668 = vtanh.f32 %v493_v14 }
 0x75e   :  { %v2669_v16 = vpop.eup %2668 }
 0x75f   :  { %496 = vrot.lane.b32.xlu1 %v2669_v16, %s2778_s13 }
 0x763   :  { %153 = vperm.xlu1 %2645, %v130_v18  }
 0x7d1   :  { %v497_v19 = vpop.permute.xlu1 %496 }
 0x7d2   :  { %v499_v20 = vmul.f32 %v2667_v6, %v497_v19 }
 0x7d4   :  { %501 = vrot.lane.b32.xlu0 %v499_v20, %s2779_s3 }
 0x7e2   :  { %v154_v22 = vpop.permute.xlu1 %153 }
 0x7e3   :  { %v185_v23 = vmul.f32 %v2896_v15, %v154_v22  ;;  %v1020_v22 = vld [vmem:[%s3261_s6] sm:$0xff] }
 0x7e5   :  { %v505_v24 = vadd.f32 %v185_v23, %v2898_v17  ;;  %v1021_v23 = vld [vmem:[%s3261_s6 + $0x8] sm:$0xff] }
 0x846   :  { %v502_v21 = vpop.permute.xlu0 %501 }
 0x847   :  { %504 = vst.msk [vmem:[#allocation2 + $0x10] sm:$0xff] %vm195_vm3, %v502_v21  ;;  %2352 = vmatmul.mubr.msk.f32.vlgmr.msra.gmra.mrb[6].mxu0 %vm195_vm3, %v502_v21  ;;  %v133_v21 = vld [vmem:[%s3258_s0 + $0x30] sm:$0xff] }
 0x848   :  { %2558 = vmatpush3.bf16.msra.mxu0 %v2863_v9  ;;  %2373 = vmatprep.mubr.msk.f32.mxu0 %vm2775_vm2, %v2774_v0 }
 0x849   :  { %2559 = vmatprep.subr.bf16.mxu0 %v2777_v8 }
 0x84c   :  { %2561 = vmatpush3.bf16.msra.mxu0 %v2871_v11 }
 0x84d   :  { %2568 = vmatprep.subr.bf16.mxu0 %v2777_v8 }
 0x91a   :  { %v574_v25 = vpop.f32.mrb[6].mxu0 }
 0x91b   :  { %v578_v26 = vadd.f32 %v574_v25, %v505_v24  ;;  %v2353_v27 = vpop.f32.mrb[7].mxu0  ;;  %v2574_v24 = vpack.c.bf16 %v1021_v23, %v1020_v22 }
 0x91c   :  { %v1022_v27 = vld [vmem:[%s3261_s6 + $0x10] sm:$0xff] }
 0x91d   :  { %2670 = vtanh.f32 %v578_v26  ;;  %v2157_v29 = vmul.f32 -1.442695, %v578_v26 }
 0x91f   :  { %2672 = vpow2.f32 %v2157_v29 }
 0x927   :  { %v2671_v28 = vpop.eup %2670 }
 0x928   :  { %588 = vrot.lane.b32.xlu0 %v2671_v28, %s2778_s13  ;;  %v1023_v28 = vld [vmem:[%s3261_s6 + $0x18] sm:$0xff] }
 0x929   :  { %v2673_v30 = vpop.eup %2672  ;;  %v2578_v29 = vpack.c.bf16 %v1023_v28, %v1022_v27  ;;  %v134_v28 = vld [vmem:[%s3258_s0 + $0x38] sm:$0xff] }
 0x92a   :  { %v582_v31 = vadd.f32 1.0, %v2673_v30 }
 0x92c   :  { %2674 = vrcp.f32 %v582_v31  ;;  %v1029_v31 = vld [vmem:[#allocation2] sm:$0xff] }
 0x936   :  { %v2675_v32 = vpop.eup %2674 }
 0x937   :  { %v586_v35 = vmul.f32 %v2675_v32, %v493_v14 }
 0x99a   :  { %v589_v33 = vpop.permute.xlu0 %588 }
 0x99b   :  { %v591_v34 = vmul.f32 %v2675_v32, %v589_v33  ;;  %v1031_v33 = vld [vmem:[#allocation2 + $0x10] sm:$0xff] }
 0x99d   :  { %593 = vrot.lane.b32.xlu1 %v591_v34, %s2779_s3 }
 0xa0f   :  { %v594_v36 = vpop.permute.xlu1 %593 }
 0xa10   :  { %v596_v37 = vadd.f32 %v594_v36, %v586_v35 }
 0xa12   :  { %2676 = vtanh.f32 %v596_v37 }
 0xa1c   :  { %v2677_v38 = vpop.eup %2676 }
 0xa1d   :  { %599 = vrot.lane.b32.xlu0 %v2677_v38, %s2778_s13 }
 0xa21   :  { %158 = vperm.xlu0 %2644, %v131_v39  }
 0xa8f   :  { %v600_v40 = vpop.permute.xlu0 %599 }
 0xa90   :  { %v602_v41 = vmul.f32 %v2675_v32, %v600_v40  ;;  %v1030_v32 = vld [vmem:[#allocation2 + $0x8] sm:$0xff] }
 0xa92   :  { %604 = vrot.lane.b32.xlu1 %v602_v41, %s2779_s3 }
 0xaa0   :  { %v159_v43 = vpop.permute.xlu0 %158 }
 0xaa1   :  { %v186_v44 = vmul.f32 %v2896_v15, %v159_v43 }
 0xaa3   :  { %v608_v45 = vadd.f32 %v186_v44, %v2898_v17 }
 0xb04   :  { %v605_v42 = vpop.permute.xlu1 %604 }
 0xb05   :  { %607 = vst.msk [vmem:[#allocation2 + $0x18] sm:$0xff] %vm195_vm3, %v605_v42  ;;  %2363 = vmatmul.mubr.msk.f32.vlgmr.msra.gmra.mrb[2].mxu1 %vm195_vm3, %v605_v42 }
 0xb06   :  { %2564 = vmatpush3.bf16.msra.mxu1 %v2863_v9  ;;  %2384 = vmatprep.mubr.msk.f32.mxu1 %vm2775_vm2, %v2774_v0 }
 0xb07   :  { %2565 = vmatprep.subr.bf16.mxu1 %v2777_v8 }
 0xb0a   :  { %2567 = vmatpush3.bf16.msra.mxu1 %v2871_v11 }
 0xb0b   :  { %2575 = vmatprep.subr.bf16.mxu1 %v2574_v24 }
 0xb0c   :  { %v1032_v34 = vld [vmem:[#allocation2 + $0x18] sm:$0xff] }
 0xbd8   :  { %v677_v46 = vpop.f32.mrb[2].mxu1 }
 0xbd9   :  { %v681_v47 = vadd.f32 %v677_v46, %v608_v45  ;;  %v2364_v48 = vpop.f32.mrb[3].mxu1 }
 0xbdb   :  { %2678 = vtanh.f32 %v681_v47  ;;  %v2159_v50 = vmul.f32 -1.442695, %v681_v47 }
 0xbdd   :  { %2680 = vpow2.f32 %v2159_v50 }
 0xbe5   :  { %v2679_v49 = vpop.eup %2678 }
 0xbe6   :  { %691 = vrot.lane.b32.xlu1 %v2679_v49, %s2778_s13 }
 0xbe7   :  { %v2681_v51 = vpop.eup %2680 }
 0xbe8   :  { %v685_v52 = vadd.f32 1.0, %v2681_v51 }
 0xbea   :  { %2682 = vrcp.f32 %v685_v52 }
 0xbf4   :  { %v2683_v53 = vpop.eup %2682 }
 0xbf5   :  { %v689_v56 = vmul.f32 %v2683_v53, %v596_v37 }
 0xc58   :  { %v692_v54 = vpop.permute.xlu1 %691 }
 0xc59   :  { %v694_v55 = vmul.f32 %v2683_v53, %v692_v54 }
 0xc5b   :  { %696 = vrot.lane.b32.xlu0 %v694_v55, %s2779_s3 }
 0xccd   :  { %v697_v57 = vpop.permute.xlu0 %696 }
 0xcce   :  { %v699_v58 = vadd.f32 %v697_v57, %v689_v56 }
 0xcd0   :  { %2684 = vtanh.f32 %v699_v58 }
 0xcda   :  { %v2685_v59 = vpop.eup %2684 }
 0xcdb   :  { %702 = vrot.lane.b32.xlu1 %v2685_v59, %s2778_s13 }
 0xcdf   :  { %163 = vperm.xlu1 %2645, %v132_v60   ;;  %v1024_v60 = vld [vmem:[%s3262_s7] sm:$0xff] }
 0xd4d   :  { %v703_v61 = vpop.permute.xlu1 %702 }
 0xd4e   :  { %v705_v62 = vmul.f32 %v2683_v53, %v703_v61  ;;  %v1025_v61 = vld [vmem:[%s3262_s7 + $0x8] sm:$0xff] }
 0xd50   :  { %707 = vrot.lane.b32.xlu0 %v705_v62, %s2779_s3  ;;  %v3038_v62 = vpack.c.bf16 %v1025_v61, %v1024_v60 }
 0xd5e   :  { %v164_v1 = vpop.permute.xlu1 %163 }
 0xd5f   :  { %v187_v2 = vmul.f32 %v2896_v15, %v164_v1  ;;  %v1027_v1 = vld [vmem:[%s3262_s7 + $0x18] sm:$0xff] }
 0xd61   :  { %v711_v3 = vadd.f32 %v187_v2, %v2898_v17 }
 0xdc2   :  { %v708_v63 = vpop.permute.xlu0 %707 }
 0xdc3   :  { %710 = vst.msk [vmem:[#allocation2 + $0x20] sm:$0xff] %vm195_vm3, %v708_v63  ;;  %2374 = vmatmul.mubr.msk.f32.vlgmr.msra.gmra.mrb[8].mxu0 %vm195_vm3, %v708_v63  ;;  %v1026_v63 = vld [vmem:[%s3262_s7 + $0x10] sm:$0xff] }
 0xdc4   :  { %2570 = vmatpush3.bf16.msra.mxu0 %v2863_v9  ;;  %2395 = vmatprep.mubr.msk.f32.mxu0 %vm2775_vm2, %v2774_v0  ;;  %v3048_v2 = vpack.c.bf16 %v1027_v1, %v1026_v63 }
 0xdc5   :  { %2571 = vmatprep.subr.bf16.mxu0 %v2777_v8 }
 0xdc8   :  { %2573 = vmatpush3.bf16.msra.mxu0 %v2871_v11 }
 0xdc9   :  { %2582 = vmatprep.subr.bf16.mxu0 %v2777_v8 }
 0xdca   :  { %v1033_v35 = vld [vmem:[#allocation2 + $0x20] sm:$0xff] }
 0xe96   :  { %v780_v4 = vpop.f32.mrb[8].mxu0 }
 0xe97   :  { %v784_v5 = vadd.f32 %v780_v4, %v711_v3  ;;  %v2375_v6 = vpop.f32.mrb[9].mxu0 }
 0xe99   :  { %2686 = vtanh.f32 %v784_v5  ;;  %v2161_v9 = vmul.f32 -1.442695, %v784_v5 }
 0xe9b   :  { %2688 = vpow2.f32 %v2161_v9 }
 0xea3   :  { %v2687_v7 = vpop.eup %2686 }
 0xea4   :  { %794 = vrot.lane.b32.xlu0 %v2687_v7, %s2778_s13 }
 0xea5   :  { %v2689_v10 = vpop.eup %2688 }
 0xea6   :  { %v788_v12 = vadd.f32 1.0, %v2689_v10  ;;  %v3072_v10 = vld [vmem:[%s3263_s8] ss:$0 sm:$0xff] }
 0xea8   :  { %2690 = vrcp.f32 %v788_v12 }
 0xeb2   :  { %v2691_v11 = vpop.eup %2690 }
 0xeb3   :  { %v792_v16 = vmul.f32 %v2691_v11, %v699_v58 }
 0xf16   :  { %v795_v13 = vpop.permute.xlu0 %794 }
 0xf17   :  { %v797_v14 = vmul.f32 %v2691_v11, %v795_v13 }
 0xf19   :  { %799 = vrot.lane.b32.xlu1 %v797_v14, %s2779_s3 }
 0xf8b   :  { %v800_v18 = vpop.permute.xlu1 %799 }
 0xf8c   :  { %v802_v19 = vadd.f32 %v800_v18, %v792_v16 }
 0xf8e   :  { %2692 = vtanh.f32 %v802_v19 }
 0xf98   :  { %v2693_v20 = vpop.eup %2692 }
 0xf99   :  { %805 = vrot.lane.b32.xlu0 %v2693_v20, %s2778_s13 }
 0xf9d   :  { %168 = vperm.xlu0 %2644, %v133_v21  }
0x100b   :  { %v806_v25 = vpop.permute.xlu0 %805 }
0x100c   :  { %v808_v26 = vmul.f32 %v2691_v11, %v806_v25 }
0x100e   :  { %810 = vrot.lane.b32.xlu1 %v808_v26, %s2779_s3 }
0x101c   :  { %v169_v37 = vpop.permute.xlu0 %168 }
0x101d   :  { %v188_v38 = vmul.f32 %v2896_v15, %v169_v37 }
0x101f   :  { %v814_v39 = vadd.f32 %v188_v38, %v2898_v17 }
0x1080   :  { %v811_v30 = vpop.permute.xlu1 %810 }
0x1081   :  { %813 = vst.msk [vmem:[#allocation2 + $0x28] sm:$0xff] %vm195_vm3, %v811_v30  ;;  %2385 = vmatmul.mubr.msk.f32.vlgmr.msra.gmra.mrb[4].mxu1 %vm195_vm3, %v811_v30 }
0x1082   :  { %2577 = vmatpush3.bf16.msra.mxu1 %v2574_v24  ;;  %2406 = vmatprep.mubr.msk.f32.mxu1 %vm195_vm3, %v1029_v31 }
0x1083   :  { %2579 = vmatprep.subr.bf16.mxu1 %v2578_v29 }
0x1086   :  { %2581 = vmatpush3.bf16.msra.mxu1 %v2578_v29 }
0x1087   :  { %2594 = vmatprep.subr.bf16.mxu1 %v2777_v8 }
0x1088   :  { %v1034_v36 = vld [vmem:[#allocation2 + $0x28] sm:$0xff] }
0x1089   :  { %2407 = vmatmul.mubr.msk.f32.vlgmr.msra.gmra.mrb[6].mxu1 %vm195_vm3, %v1030_v32 }
0x108a   :  { %2409 = vmatprep.mubr.msk.f32.mxu1 %vm195_vm3, %v1031_v33  ;;  %2596 = vmatpush3.bf16.msra.mxu1 %v3038_v62 }
0x108b   :  { %2597 = vmatprep.subr.bf16.mxu1 %v2777_v8 }
0x108d   :  { %2410 = vmatmul.mubr.msk.f32.gmra.mrb[8].mxu1 %vm195_vm3, %v1032_v34 }
0x108e   :  { %2412 = vmatprep.mubr.msk.f32.mxu1 %vm195_vm3, %v1033_v35  ;;  %2599 = vmatpush3.bf16.msra.mxu1 %v3048_v2 }
0x108f   :  { %2606 = vmatprep.subr.bf16.mxu1 %v2777_v8 }
0x1091   :  { %2413 = vmatmul.mubr.msk.f32.gmra.mrb[10].mxu1 %vm195_vm3, %v1034_v36 }
0x1154   :  { %v883_v40 = vpop.f32.mrb[4].mxu1 }
0x1155   :  { %v887_v41 = vadd.f32 %v883_v40, %v814_v39  ;;  %v2386_v42 = vpop.f32.mrb[5].mxu1 }
0x1157   :  { %2694 = vtanh.f32 %v887_v41  ;;  %v2163_v50 = vmul.f32 -1.442695, %v887_v41 }
0x1159   :  { %2696 = vpow2.f32 %v2163_v50 }
0x115c   :  { %v3016_v43 = vpop.f32.mrb[6].mxu1 }
0x115d   :  { %v1133_v44 = vpop.f32.mrb[7].mxu1  ;;  %v1139_v50 = vadd.f32 %v3016_v43, %v3072_v10 }
0x115e   :  { %v1134_v12 = vadd.f32 %v3072_v10, %v1133_v44 }
0x1160   :  { %v3018_v45 = vpop.f32.mrb[8].mxu1 }
0x1161   :  { %v2695_v46 = vpop.eup %2694  ;;  %v3020_v47 = vpop.f32.mrb[9].mxu1 }
0x1162   :  { %897 = vrot.lane.b32.xlu1 %v2695_v46, %s2778_s13 }
0x1163   :  { %v2697_v51 = vpop.eup %2696 }
0x1164   :  { %v3023_v48 = vpop.f32.mrb[10].mxu1  ;;  %v891_v52 = vadd.f32 1.0, %v2697_v51 }
0x1165   :  { %v3025_v49 = vpop.f32.mrb[11].mxu1 }
0x1166   :  { %2698 = vrcp.f32 %v891_v52 }
0x1170   :  { %v2699_v53 = vpop.eup %2698 }
0x1171   :  { %v895_v56 = vmul.f32 %v2699_v53, %v802_v19 }
0x11d4   :  { %v898_v54 = vpop.permute.xlu1 %897 }
0x11d5   :  { %v900_v55 = vmul.f32 %v2699_v53, %v898_v54 }
0x11d7   :  { %902 = vrot.lane.b32.xlu0 %v900_v55, %s2779_s3 }
0x1249   :  { %v903_v57 = vpop.permute.xlu0 %902 }
0x124a   :  { %v3028_v58 = vadd.f32 %v903_v57, %v895_v56 }
0x124c   :  { %2700 = vtanh.f32 %v3028_v58 }
0x1256   :  { %v2701_v59 = vpop.eup %2700 }
0x1257   :  { %908 = vrot.lane.b32.xlu1 %v2701_v59, %s2778_s13 }
0x12c9   :  { %v909_v3 = vpop.permute.xlu1 %908 }
0x12ca   :  { %v911_v4 = vmul.f32 %v2699_v53, %v909_v3 }
0x12cc   :  { %913 = vrot.lane.b32.xlu0 %v911_v4, %s2779_s3 }
0x133e   :  { %v914_v5 = vpop.permute.xlu0 %913 }
0x133f   :  { %916 = vst.msk [vmem:[#allocation2 + $0x30] sm:$0xff] %vm195_vm3, %v914_v5  ;;  %2396 = vmatmul.mubr.msk.f32.vlgmr.msra.gmra.mrb[10].mxu0 %vm195_vm3, %v914_v5 }
0x1340   :  { %2584 = vmatpush3.bf16.msra.mxu0 %v3038_v62  ;;  %2426 = vmatprep.mubr.msk.f32.mxu0 %vm2775_vm2, %v2774_v0 }
0x1341   :  { %2585 = vmatprep.subr.bf16.mxu0 %v2777_v8 }
0x1344   :  { %2587 = vmatpush3.bf16.msra.mxu0 %v3048_v2 }
0x1345   :  { %2588 = vmatprep.subr.bf16.mxu0 %v2777_v8 }
0x1346   :  { %v1035_v6 = vld [vmem:[#allocation2 + $0x30] sm:$0xff] }
0x1347   :  { %2427 = vmatmul.mubr.f32.vlgmr.msra.gmra.mrb[12].mxu0 %v2774_v0  ;;  %2415 = vmatprep.mubr.msk.f32.mxu1 %vm195_vm3, %v1035_v6 }
0x1348   :  { %2590 = vmatpush3.bf16.msra.mxu0 %v3038_v62  ;;  %2437 = vmatprep.mubr.msk.f32.mxu0 %vm2775_vm2, %v2774_v0 }
0x1349   :  { %2591 = vmatprep.subr.bf16.mxu0 %v2777_v8 }
0x134c   :  { %2593 = vmatpush3.bf16.msra.mxu0 %v3048_v2 }
0x134d   :  { %2600 = vmatprep.subr.bf16.mxu0 %v2777_v8 }
0x1412   :  { %v986_v7 = vpop.f32.mrb[10].mxu0 }
0x1413   :  { %v2397_v9 = vpop.f32.mrb[11].mxu0 }
0x141a   :  { %v1238_v11 = vpop.f32.mrb[12].mxu0 }
0x141b   :  { %v1242_v13 = vadd.f32 %v1238_v11, %v1134_v12  ;;  %v2428_v14 = vpop.f32.mrb[13].mxu0 }
0x141c   :  { %v1144_v14 = vadd.f32 %v3072_v10, %v3020_v47 }
0x141d   :  { %2702 = vtanh.f32 %v1242_v13  ;;  %v2175_v18 = vmul.f32 -1.442695, %v1242_v13 }
0x141f   :  { %2704 = vpow2.f32 %v2175_v18 }
0x1427   :  { %v2703_v16 = vpop.eup %2702 }
0x1428   :  { %1252 = vrot.lane.b32.xlu1 %v2703_v16, %s2778_s13 }
0x1429   :  { %v2705_v19 = vpop.eup %2704 }
0x142a   :  { %v1246_v20 = vadd.f32 1.0, %v2705_v19 }
0x142c   :  { %2706 = vrcp.f32 %v1246_v20 }
0x1436   :  { %v2707_v21 = vpop.eup %2706 }
0x1437   :  { %v1250_v24 = vmul.f32 0.0, %v2707_v21 }
0x149a   :  { %v1253_v22 = vpop.permute.xlu1 %1252 }
0x149b   :  { %v1255_v23 = vmul.f32 %v2707_v21, %v1253_v22 }
0x149d   :  { %1257 = vrot.lane.b32.xlu0 %v1255_v23, %s2779_s3 }
0x150f   :  { %v1258_v25 = vpop.permute.xlu0 %1257 }
0x1510   :  { %v3077_v26 = vadd.f32 %v1258_v25, %v1250_v24 }
0x1512   :  { %2708 = vtanh.f32 %v3077_v26 }
0x151c   :  { %v2709_v27 = vpop.eup %2708 }
0x151d   :  { %1263 = vrot.lane.b32.xlu1 %v2709_v27, %s2778_s13 }
0x1521   :  { %173 = vperm.xlu1 %2645, %v134_v28  }
0x158f   :  { %v1264_v29 = vpop.permute.xlu1 %1263 }
0x1590   :  { %v1266_v30 = vmul.f32 %v2707_v21, %v1264_v29 }
0x1592   :  { %1268 = vrot.lane.b32.xlu0 %v1266_v30, %s2779_s3 }
0x15a0   :  { %v174_v31 = vpop.permute.xlu1 %173 }
0x15a1   :  { %v189_v32 = vmul.f32 %v2896_v15, %v174_v31 }
0x15a3   :  { %v917_v33 = vadd.f32 %v189_v32, %v2898_v17 }
0x15a5   :  { %v990_v34 = vadd.f32 %v986_v7, %v917_v33  ;;  %v1149_v33 = vadd.f32 %v3018_v45, %v3072_v10 }
0x15a7   :  { %2710 = vtanh.f32 %v990_v34  ;;  %v2165_v37 = vmul.f32 -1.442695, %v990_v34 }
0x15a9   :  { %2712 = vpow2.f32 %v2165_v37 }
0x15b1   :  { %v2711_v35 = vpop.eup %2710 }
0x15b2   :  { %1000 = vrot.lane.b32.xlu0 %v2711_v35, %s2778_s13 }
0x15b3   :  { %v2713_v15 = vpop.eup %2712 }
0x15b4   :  { %v994_v17 = vadd.f32 1.0, %v2713_v15 }
0x15b6   :  { %2714 = vrcp.f32 %v994_v17 }
0x15c0   :  { %v2715_v38 = vpop.eup %2714 }
0x15c1   :  { %v998_v41 = vmul.f32 %v2715_v38, %v3028_v58 }
0x1604   :  { %v1269_v36 = vpop.permute.xlu0 %1268 }
0x1605   :  { %1271 = vst.msk [vmem:[#allocation2] sm:$0xff] %vm195_vm3, %v1269_v36  ;;  %2438 = vmatmul.mubr.msk.f32.vlgmr.msra.gmra.mrb[14].mxu0 %vm195_vm3, %v1269_v36 }
0x1606   :  { %2602 = vmatpush3.bf16.msra.mxu0 %v3038_v62  ;;  %2459 = vmatprep.mubr.msk.f32.mxu0 %vm2775_vm2, %v2774_v0 }
0x1607   :  { %2603 = vmatprep.subr.bf16.mxu0 %v2777_v8 }
0x160a   :  { %2605 = vmatpush3.bf16.msra.mxu0 %v3048_v2 }
0x160b   :  { %2612 = vmatprep.subr.bf16.mxu0 %v2777_v8 }
0x1624   :  { %v1001_v39 = vpop.permute.xlu0 %1000 }
0x1625   :  { %v1003_v40 = vmul.f32 %v2715_v38, %v1001_v39 }
0x1627   :  { %1005 = vrot.lane.b32.xlu0 %v1003_v40, %s2779_s3 }
0x1699   :  { %v1006_v42 = vpop.permute.xlu0 %1005 }
0x169a   :  { %v1008_v44 = vadd.f32 %v1006_v42, %v998_v41 }
0x169c   :  { %2716 = vtanh.f32 %v1008_v44 }
0x16a6   :  { %v2717_v46 = vpop.eup %2716 }
0x16a7   :  { %1011 = vrot.lane.b32.xlu0 %v2717_v46, %s2778_s13 }
0x16d8   :  { %v1340_v51 = vpop.f32.mrb[14].mxu0 }
0x16d9   :  { %v1344_v52 = vadd.f32 %v1340_v51, %v1139_v50  ;;  %v2439_v53 = vpop.f32.mrb[15].mxu0 }
0x16da   :  { %v1154_v53 = vadd.f32 %v3072_v10, %v3025_v49 }
0x16db   :  { %2718 = vtanh.f32 %v1344_v52  ;;  %v2177_v57 = vmul.f32 -1.442695, %v1344_v52 }
0x16dd   :  { %2720 = vpow2.f32 %v2177_v57 }
0x16e5   :  { %v2719_v54 = vpop.eup %2718 }
0x16e6   :  { %1354 = vrot.lane.b32.xlu1 %v2719_v54, %s2778_s13 }
0x16e7   :  { %v2721_v58 = vpop.eup %2720 }
0x16e8   :  { %v1348_v59 = vadd.f32 1.0, %v2721_v58 }
0x16ea   :  { %2722 = vrcp.f32 %v1348_v59 }
0x16f4   :  { %v2723_v60 = vpop.eup %2722 }
0x16f5   :  { %v1352_v3 = vmul.f32 %v2723_v60, %v3077_v26 }
0x1719   :  { %v1012_v55 = vpop.permute.xlu0 %1011 }
0x171a   :  { %v1014_v56 = vmul.f32 %v2715_v38, %v1012_v55 }
0x171c   :  { %1016 = vrot.lane.b32.xlu0 %v1014_v56, %s2779_s3 }
0x1758   :  { %v1355_v61 = vpop.permute.xlu1 %1354 }
0x1759   :  { %v1357_v63 = vmul.f32 %v2723_v60, %v1355_v61 }
0x175b   :  { %1359 = vrot.lane.b32.xlu1 %v1357_v63, %s2779_s3 }
0x178e   :  { %v1017_v43 = vpop.permute.xlu0 %1016 }
0x178f   :  { %1019 = vst.msk [vmem:[#allocation2 + $0x38] sm:$0xff] %vm195_vm3, %v1017_v43 }
0x1796   :  { %v1036_v1 = vld [vmem:[#allocation2 + $0x38] sm:$0xff] }
0x1797   :  { %2416 = vmatmul.mubr.msk.f32.gmra.mrb[12].mxu1 %vm195_vm3, %v1036_v1 }
0x1798   :  { %2448 = vmatprep.mubr.msk.f32.mxu1 %vm2775_vm2, %v2774_v0 }
0x17cd   :  { %v1360_v4 = vpop.permute.xlu1 %1359 }
0x17ce   :  { %v1362_v5 = vadd.f32 %v1360_v4, %v1352_v3 }
0x17d0   :  { %2724 = vtanh.f32 %v1362_v5 }
0x17da   :  { %v2725_v6 = vpop.eup %2724 }
0x17db   :  { %1365 = vrot.lane.b32.xlu1 %v2725_v6, %s2778_s13 }
0x184d   :  { %v1366_v7 = vpop.permute.xlu1 %1365 }
0x184e   :  { %v1368_v9 = vmul.f32 %v2723_v60, %v1366_v7 }
0x1850   :  { %1370 = vrot.lane.b32.xlu1 %v1368_v9, %s2779_s3  ;;  %v1159_v9 = vadd.f32 %v3023_v48, %v3072_v10 }
0x186a   :  { %v3111_v12 = vpop.f32.mrb[12].mxu1 }
0x186b   :  { %v3113_v11 = vpop.f32.mrb[13].mxu1 }
0x18c2   :  { %v1371_v13 = vpop.permute.xlu1 %1370 }
0x18c3   :  { %1373 = vst.msk [vmem:[#allocation2 + $0x8] sm:$0xff] %vm195_vm3, %v1371_v13  ;;  %2449 = vmatmul.mubr.msk.f32.vlgmr.msra.gmra.mrb[14].mxu1 %vm195_vm3, %v1371_v13 }
0x18c4   :  { %2608 = vmatpush3.bf16.msra.mxu1 %v3038_v62  ;;  %2470 = vmatprep.mubr.msk.f32.mxu1 %vm2775_vm2, %v2774_v0 }
0x18c5   :  { %2609 = vmatprep.subr.bf16.mxu1 %v2777_v8 }
0x18c8   :  { %2611 = vmatpush3.bf16.msra.mxu1 %v3048_v2 }
0x18c9   :  { %2618 = vmatprep.subr.bf16.mxu1 %v2777_v8 }
0x1996   :  { %v1442_v16 = vpop.f32.mrb[14].mxu1 }
0x1997   :  { %v1446_v18 = vadd.f32 %v1442_v16, %v1144_v14  ;;  %v2450_v19 = vpop.f32.mrb[15].mxu1 }
0x1999   :  { %2726 = vtanh.f32 %v1446_v18  ;;  %v2179_v21 = vmul.f32 -1.442695, %v1446_v18 }
0x199b   :  { %2728 = vpow2.f32 %v2179_v21 }
0x19a3   :  { %v2727_v20 = vpop.eup %2726 }
0x19a4   :  { %1456 = vrot.lane.b32.xlu0 %v2727_v20, %s2778_s13 }
0x19a5   :  { %v2729_v22 = vpop.eup %2728 }
0x19a6   :  { %v1450_v23 = vadd.f32 1.0, %v2729_v22 }
0x19a8   :  { %2730 = vrcp.f32 %v1450_v23  ;;  %v1994_v23 = vld [vmem:[%s3264_s9] sm:$0xff] }
0x19b2   :  { %v2731_v24 = vpop.eup %2730 }
0x19b3   :  { %v1454_v27 = vmul.f32 %v2731_v24, %v1362_v5 }
0x1a16   :  { %v1457_v25 = vpop.permute.xlu0 %1456 }
0x1a17   :  { %v1459_v26 = vmul.f32 %v2731_v24, %v1457_v25 }
0x1a19   :  { %1461 = vrot.lane.b32.xlu1 %v1459_v26, %s2779_s3 }
0x1a8b   :  { %v1462_v28 = vpop.permute.xlu1 %1461 }
0x1a8c   :  { %v1464_v47 = vadd.f32 %v1462_v28, %v1454_v27 }
0x1a8e   :  { %2732 = vtanh.f32 %v1464_v47 }
0x1a98   :  { %v2733_v29 = vpop.eup %2732 }
0x1a99   :  { %1467 = vrot.lane.b32.xlu0 %v2733_v29, %s2778_s13  ;;  %v1997_v29 = vld [vmem:[%s3264_s9 + $0x18] sm:$0xff] }
0x1b0b   :  { %v1468_v30 = vpop.permute.xlu0 %1467 }
0x1b0c   :  { %v1470_v31 = vmul.f32 %v2731_v24, %v1468_v30  ;;  %v1995_v24 = vld [vmem:[%s3264_s9 + $0x8] sm:$0xff] }
0x1b0d   :  { %v2630_v25 = vpack.c.bf16 %v1995_v24, %v1994_v23 }
0x1b0e   :  { %1472 = vrot.lane.b32.xlu1 %v1470_v31, %s2779_s3 }
0x1b80   :  { %v1473_v32 = vpop.permute.xlu1 %1472 }
0x1b81   :  { %1475 = vst.msk [vmem:[#allocation2 + $0x10] sm:$0xff] %vm195_vm3, %v1473_v32  ;;  %2460 = vmatmul.mubr.msk.f32.vlgmr.msra.gmra.mrb[16].mxu0 %vm195_vm3, %v1473_v32  ;;  %v1986_v32 = vld [vmem:[#allocation2] sm:$0xff] }
0x1b82   :  { %2614 = vmatpush3.bf16.msra.mxu0 %v3038_v62  ;;  %2481 = vmatprep.mubr.msk.f32.mxu0 %vm2775_vm2, %v2774_v0 }
0x1b83   :  { %2615 = vmatprep.subr.bf16.mxu0 %v2777_v8 }
0x1b86   :  { %2617 = vmatpush3.bf16.msra.mxu0 %v3048_v2 }
0x1b87   :  { %2624 = vmatprep.subr.bf16.mxu0 %v2777_v8 }
0x1c54   :  { %v1544_v34 = vpop.f32.mrb[16].mxu0 }
0x1c55   :  { %v1548_v35 = vadd.f32 %v1544_v34, %v1149_v33  ;;  %v2461_v36 = vpop.f32.mrb[17].mxu0  ;;  %v1987_v33 = vld [vmem:[#allocation2 + $0x8] sm:$0xff]  ;;  %v1988_v34 = vld [vmem:[#allocation2 + $0x10] sm:$0xff] }
0x1c57   :  { %2734 = vtanh.f32 %v1548_v35  ;;  %v2181_v15 = vmul.f32 -1.442695, %v1548_v35 }
0x1c59   :  { %2736 = vpow2.f32 %v2181_v15  ;;  %v16_v15 = vstv %s3265_s10 }
0x1c5a   :  { %17 = vst [vmem:[#allocation3] sm:$0x1] %v16_v15 }
0x1c61   :  { %v2735_v37 = vpop.eup %2734 }
0x1c62   :  { %1558 = vrot.lane.b32.xlu0 %v2735_v37, %s2778_s13 }
0x1c63   :  { %v2737_v17 = vpop.eup %2736 }
0x1c64   :  { %v1552_v38 = vadd.f32 1.0, %v2737_v17  ;;  %v1164_v17 = vadd.f32 %v3072_v10, %v3113_v11 }
0x1c66   :  { %2738 = vrcp.f32 %v1552_v38 }
0x1c70   :  { %v2739_v39 = vpop.eup %2738 }
0x1c71   :  { %v1556_v42 = vmul.f32 %v2739_v39, %v1464_v47  ;;  %v1996_v47 = vld [vmem:[%s3264_s9 + $0x10] sm:$0xff] }
0x1c72   :  { %v2634_v30 = vpack.c.bf16 %v1997_v29, %v1996_v47 }
0x1cd4   :  { %v1559_v40 = vpop.permute.xlu0 %1558 }
0x1cd5   :  { %v1561_v41 = vmul.f32 %v2739_v39, %v1559_v40 }
0x1cd7   :  { %1563 = vrot.lane.b32.xlu1 %v1561_v41, %s2779_s3  ;;  %v3197_v41 = vld [vmem:[#allocation3] ss:$0 sm:$0xff] }
0x1d49   :  { %v1564_v44 = vpop.permute.xlu1 %1563 }
0x1d4a   :  { %v1566_v45 = vadd.f32 %v1564_v44, %v1556_v42 }
0x1d4c   :  { %2740 = vtanh.f32 %v1566_v45 }
0x1d56   :  { %v2741_v46 = vpop.eup %2740 }
0x1d57   :  { %1569 = vrot.lane.b32.xlu0 %v2741_v46, %s2778_s13 }
0x1dc9   :  { %v1570_v50 = vpop.permute.xlu0 %1569 }
0x1dca   :  { %v1572_v51 = vmul.f32 %v2739_v39, %v1570_v50 }
0x1dcc   :  { %1574 = vrot.lane.b32.xlu1 %v1572_v51, %s2779_s3 }
0x1e3e   :  { %v1575_v52 = vpop.permute.xlu1 %1574 }
0x1e3f   :  { %1577 = vst.msk [vmem:[#allocation2 + $0x18] sm:$0xff] %vm195_vm3, %v1575_v52  ;;  %2471 = vmatmul.mubr.msk.f32.vlgmr.msra.gmra.mrb[16].mxu1 %vm195_vm3, %v1575_v52 }
0x1e40   :  { %2620 = vmatpush3.bf16.msra.mxu1 %v3038_v62  ;;  %2492 = vmatprep.mubr.msk.f32.mxu1 %vm2775_vm2, %v2774_v0 }
0x1e41   :  { %2621 = vmatprep.subr.bf16.mxu1 %v2777_v8 }
0x1e44   :  { %2623 = vmatpush3.bf16.msra.mxu1 %v3048_v2 }
0x1e45   :  { %2631 = vmatprep.subr.bf16.mxu1 %v2630_v25 }
0x1e46   :  { %v1989_v35 = vld [vmem:[#allocation2 + $0x18] sm:$0xff] }
0x1f12   :  { %v1646_v54 = vpop.f32.mrb[16].mxu1 }
0x1f13   :  { %v1650_v55 = vadd.f32 %v1646_v54, %v1154_v53  ;;  %v2472_v56 = vpop.f32.mrb[17].mxu1 }
0x1f15   :  { %2742 = vtanh.f32 %v1650_v55  ;;  %v2183_v58 = vmul.f32 -1.442695, %v1650_v55 }
0x1f17   :  { %2744 = vpow2.f32 %v2183_v58 }
0x1f1f   :  { %v2743_v57 = vpop.eup %2742 }
0x1f20   :  { %1660 = vrot.lane.b32.xlu0 %v2743_v57, %s2778_s13 }
0x1f21   :  { %v2745_v59 = vpop.eup %2744 }
0x1f22   :  { %v1654_v60 = vadd.f32 1.0, %v2745_v59 }
0x1f24   :  { %2746 = vrcp.f32 %v1654_v60 }
0x1f2e   :  { %v2747_v61 = vpop.eup %2746 }
0x1f2f   :  { %v1658_v1 = vmul.f32 %v2747_v61, %v1566_v45 }
0x1f92   :  { %v1661_v63 = vpop.permute.xlu0 %1660 }
0x1f93   :  { %v1663_v43 = vmul.f32 %v2747_v61, %v1661_v63 }
0x1f95   :  { %1665 = vrot.lane.b32.xlu1 %v1663_v43, %s2779_s3 }
0x2007   :  { %v1666_v3 = vpop.permute.xlu1 %1665 }
0x2008   :  { %v1668_v49 = vadd.f32 %v1666_v3, %v1658_v1 }
0x200a   :  { %2748 = vtanh.f32 %v1668_v49 }
0x2014   :  { %v2749_v4 = vpop.eup %2748 }
0x2015   :  { %1671 = vrot.lane.b32.xlu0 %v2749_v4, %s2778_s13 }
0x2087   :  { %v1672_v5 = vpop.permute.xlu0 %1671 }
0x2088   :  { %v1674_v6 = vmul.f32 %v2747_v61, %v1672_v5 }
0x208a   :  { %1676 = vrot.lane.b32.xlu1 %v1674_v6, %s2779_s3 }
0x20fc   :  { %v1677_v7 = vpop.permute.xlu1 %1676 }
0x20fd   :  { %1679 = vst.msk [vmem:[#allocation2 + $0x20] sm:$0xff] %vm195_vm3, %v1677_v7  ;;  %2482 = vmatmul.mubr.msk.f32.vlgmr.msra.gmra.mrb[18].mxu0 %vm195_vm3, %v1677_v7 }
0x20fe   :  { %2626 = vmatpush3.bf16.msra.mxu0 %v3038_v62  ;;  %2503 = vmatprep.mubr.msk.f32.mxu0 %vm2775_vm2, %v2774_v0 }
0x20ff   :  { %2627 = vmatprep.subr.bf16.mxu0 %v2777_v8 }
0x2102   :  { %2629 = vmatpush3.bf16.msra.mxu0 %v3048_v2 }
0x2104   :  { %v1990_v36 = vld [vmem:[#allocation2 + $0x20] sm:$0xff] }
0x21d0   :  { %v1748_v13 = vpop.f32.mrb[18].mxu0 }
0x21d1   :  { %v1752_v14 = vadd.f32 %v1748_v13, %v1159_v9  ;;  %v2483_v16 = vpop.f32.mrb[19].mxu0  ;;  %v1169_v13 = vadd.f32 %v3111_v12, %v3072_v10 }
0x21d3   :  { %2750 = vtanh.f32 %v1752_v14  ;;  %v2185_v19 = vmul.f32 -1.442695, %v1752_v14 }
0x21d5   :  { %2752 = vpow2.f32 %v2185_v19 }
0x21dd   :  { %v2751_v18 = vpop.eup %2750 }
0x21de   :  { %1762 = vrot.lane.b32.xlu0 %v2751_v18, %s2778_s13 }
0x21df   :  { %v2753_v62 = vpop.eup %2752 }
0x21e0   :  { %v1756_v20 = vadd.f32 1.0, %v2753_v62 }
0x21e2   :  { %2754 = vrcp.f32 %v1756_v20 }
0x21ec   :  { %v2755_v0 = vpop.eup %2754 }
0x21ed   :  { %v1760_v2 = vmul.f32 %v2755_v0, %v1668_v49 }
0x2250   :  { %v1763_v21 = vpop.permute.xlu0 %1762 }
0x2251   :  { %v1765_v8 = vmul.f32 %v2755_v0, %v1763_v21 }
0x2253   :  { %1767 = vrot.lane.b32.xlu1 %v1765_v8, %s2779_s3 }
0x22c5   :  { %v1768_v22 = vpop.permute.xlu1 %1767 }
0x22c6   :  { %v3167_v48 = vadd.f32 %v1768_v22, %v1760_v2 }
0x22c8   :  { %2756 = vtanh.f32 %v3167_v48 }
0x22d2   :  { %v2757_v26 = vpop.eup %2756 }
0x22d3   :  { %1773 = vrot.lane.b32.xlu0 %v2757_v26, %s2778_s13 }
0x2345   :  { %v1774_v27 = vpop.permute.xlu0 %1773 }
0x2346   :  { %v1776_v28 = vmul.f32 %v2755_v0, %v1774_v27 }
0x2348   :  { %1778 = vrot.lane.b32.xlu1 %v1776_v28, %s2779_s3 }
0x23ba   :  { %v1779_v31 = vpop.permute.xlu1 %1778 }
0x23bb   :  { %1781 = vst.msk [vmem:[#allocation2 + $0x28] sm:$0xff] %vm195_vm3, %v1779_v31  ;;  %2493 = vmatmul.mubr.msk.f32.vlgmr.msra.gmra.mrb[18].mxu1 %vm195_vm3, %v1779_v31 }
0x23bc   :  { %2633 = vmatpush3.bf16.msra.mxu1 %v2630_v25  ;;  %2514 = vmatprep.mubr.msk.f32.mxu1 %vm195_vm3, %v1986_v32 }
0x23bd   :  { %2635 = vmatprep.subr.bf16.mxu1 %v2634_v30 }
0x23c0   :  { %2637 = vmatpush3.bf16.msra.mxu1 %v2634_v30 }
0x23c2   :  { %v1991_v37 = vld [vmem:[#allocation2 + $0x28] sm:$0xff] }
0x23c3   :  { %2515 = vmatmul.mubr.msk.f32.vlgmr.msra.gmra.mrb[20].mxu1 %vm195_vm3, %v1987_v33 }
0x23c4   :  { %2517 = vmatprep.mubr.msk.f32.mxu1 %vm195_vm3, %v1988_v34 }
0x23c7   :  { %2518 = vmatmul.mubr.msk.f32.gmra.mrb[22].mxu1 %vm195_vm3, %v1989_v35 }
0x23c8   :  { %2520 = vmatprep.mubr.msk.f32.mxu1 %vm195_vm3, %v1990_v36 }
0x23cb   :  { %2521 = vmatmul.mubr.msk.f32.gmra.mrb[24].mxu1 %vm195_vm3, %v1991_v37 }
0x248e   :  { %v1850_v38 = vpop.f32.mrb[18].mxu1 }
0x248f   :  { %v1854_v39 = vadd.f32 %v1850_v38, %v1164_v17  ;;  %v2494_v40 = vpop.f32.mrb[19].mxu1 }
0x2491   :  { %2758 = vtanh.f32 %v1854_v39  ;;  %v2187_v58 = vmul.f32 -1.442695, %v1854_v39 }
0x2493   :  { %2760 = vpow2.f32 %v2187_v58 }
0x2496   :  { %v2516_v42 = vpop.f32.mrb[20].mxu1 }
0x2497   :  { %v2101_v44 = vadd.f32 %v2516_v42, %v3197_v41  ;;  %v2095_v45 = vpop.f32.mrb[21].mxu1 }
0x2498   :  { %v2096_v46 = vadd.f32 %v3197_v41, %v2095_v45 }
0x2499   :  { %2136 = vst.msk [vmem:[%s3266_s11 + $0x8] sm:$0xff] %vm2134_vm4, %v2101_v44 }
0x249a   :  { %2135 = vst.msk [vmem:[%s3266_s11] sm:$0xff] %vm2134_vm4, %v2096_v46  ;;  %v2519_v11 = vpop.f32.mrb[22].mxu1 }
0x249b   :  { %v2759_v50 = vpop.eup %2758  ;;  %v2111_v51 = vadd.f32 %v2519_v11, %v3197_v41  ;;  %v2105_v52 = vpop.f32.mrb[23].mxu1 }
0x249c   :  { %v2106_v53 = vadd.f32 %v3197_v41, %v2105_v52  ;;  %1864 = vrot.lane.b32.xlu0 %v2759_v50, %s2778_s13 }
0x249d   :  { %2138 = vst.msk [vmem:[%s3266_s11 + $0x18] sm:$0xff] %vm2134_vm4, %v2111_v51  ;;  %v2761_v59 = vpop.eup %2760 }
0x249e   :  { %2137 = vst.msk [vmem:[%s3266_s11 + $0x10] sm:$0xff] %vm2134_vm4, %v2106_v53  ;;  %v2522_v54 = vpop.f32.mrb[24].mxu1  ;;  %v1858_v60 = vadd.f32 1.0, %v2761_v59 }
0x249f   :  { %v2121_v55 = vadd.f32 %v2522_v54, %v3197_v41  ;;  %v2115_v56 = vpop.f32.mrb[25].mxu1 }
0x24a0   :  { %v2116_v57 = vadd.f32 %v3197_v41, %v2115_v56  ;;  %2762 = vrcp.f32 %v1858_v60 }
0x24a1   :  { %2140 = vst.msk [vmem:[%s3266_s11 + $0x28] sm:$0xff] %vm2134_vm4, %v2121_v55 }
0x24a2   :  { %2139 = vst.msk [vmem:[%s3266_s11 + $0x20] sm:$0xff] %vm2134_vm4, %v2116_v57 }
0x24aa   :  { %v2763_v61 = vpop.eup %2762 }
0x24ab   :  { %v1862_v1 = vmul.f32 %v2763_v61, %v3167_v48 }
0x250e   :  { %v1865_v63 = vpop.permute.xlu0 %1864 }
0x250f   :  { %v1867_v43 = vmul.f32 %v2763_v61, %v1865_v63 }
0x2511   :  { %1869 = vrot.lane.b32.xlu1 %v1867_v43, %s2779_s3 }
0x2583   :  { %v1870_v3 = vpop.permute.xlu1 %1869 }
0x2584   :  { %v1872_v49 = vadd.f32 %v1870_v3, %v1862_v1 }
0x2586   :  { %2764 = vtanh.f32 %v1872_v49 }
0x2590   :  { %v2765_v4 = vpop.eup %2764 }
0x2591   :  { %1875 = vrot.lane.b32.xlu0 %v2765_v4, %s2778_s13 }
0x2603   :  { %v1876_v5 = vpop.permute.xlu0 %1875 }
0x2604   :  { %v1878_v6 = vmul.f32 %v2763_v61, %v1876_v5 }
0x2606   :  { %1880 = vrot.lane.b32.xlu1 %v1878_v6, %s2779_s3 }
0x2678   :  { %v1881_v7 = vpop.permute.xlu1 %1880 }
0x2679   :  { %1883 = vst.msk [vmem:[#allocation2 + $0x30] sm:$0xff] %vm195_vm3, %v1881_v7  ;;  %2504 = vmatmul.mubr.msk.f32.vlgmr.msra.gmra.mrb[20].mxu0 %vm195_vm3, %v1881_v7 }
0x2680   :  { %v1992_v9 = vld [vmem:[#allocation2 + $0x30] sm:$0xff] }
0x2681   :  { %2523 = vmatprep.mubr.msk.f32.mxu1 %vm195_vm3, %v1992_v9 }
0x274c   :  { %v1952_v14 = vpop.f32.mrb[20].mxu0 }
0x274d   :  { %v1956_v16 = vadd.f32 %v1952_v14, %v1169_v13  ;;  %v2505_v18 = vpop.f32.mrb[21].mxu0 }
0x274f   :  { %2766 = vtanh.f32 %v1956_v16  ;;  %v2189_v62 = vmul.f32 -1.442695, %v1956_v16 }
0x2751   :  { %2768 = vpow2.f32 %v2189_v62 }
0x2759   :  { %v2767_v19 = vpop.eup %2766 }
0x275a   :  { %1966 = vrot.lane.b32.xlu0 %v2767_v19, %s2778_s13 }
0x275b   :  { %v2769_v20 = vpop.eup %2768 }
0x275c   :  { %v1960_v0 = vadd.f32 1.0, %v2769_v20 }
0x275e   :  { %2770 = vrcp.f32 %v1960_v0 }
0x2768   :  { %v2771_v21 = vpop.eup %2770 }
0x2769   :  { %v1964_v22 = vmul.f32 %v2771_v21, %v1872_v49 }
0x27cc   :  { %v1967_v8 = vpop.permute.xlu0 %1966 }
0x27cd   :  { %v1969_v2 = vmul.f32 %v2771_v21, %v1967_v8 }
0x27cf   :  { %1971 = vrot.lane.b32.xlu1 %v1969_v2, %s2779_s3 }
0x2841   :  { %v1972_v48 = vpop.permute.xlu1 %1971 }
0x2842   :  { %v1974_v10 = vadd.f32 %v1972_v48, %v1964_v22 }
0x2844   :  { %2772 = vtanh.f32 %v1974_v10 }
0x284e   :  { %v2773_v12 = vpop.eup %2772 }
0x284f   :  { %1977 = vrot.lane.b32.xlu0 %v2773_v12, %s2778_s13 }
0x28c1   :  { %v1978_v23 = vpop.permute.xlu0 %1977 }
0x28c2   :  { %v1980_v24 = vmul.f32 %v2771_v21, %v1978_v23 }
0x28c4   :  { %1982 = vrot.lane.b32.xlu1 %v1980_v24, %s2779_s3 }
0x2936   :  { %v1983_v25 = vpop.permute.xlu1 %1982 }
0x2937   :  { %1985 = vst.msk [vmem:[#allocation2 + $0x38] sm:$0xff] %vm195_vm3, %v1983_v25 }
0x293e   :  { %v1993_v26 = vld [vmem:[#allocation2 + $0x38] sm:$0xff] }
0x293f   :  { %2524 = vmatmul.mubr.msk.f32.gmra.mrb[26].mxu1 %vm195_vm3, %v1993_v26 }
0x2a12   :  { %v2525_v27 = vpop.f32.mrb[26].mxu1 }
0x2a13   :  { %v2131_v28 = vadd.f32 %v2525_v27, %v3197_v41  ;;  %v2125_v47 = vpop.f32.mrb[27].mxu1 }
0x2a14   :  { %v2126_v29 = vadd.f32 %v3197_v41, %v2125_v47 }
0x2a15   :  { %2142 = vst.msk [vmem:[%s3266_s11 + $0x38] sm:$0xff] %vm2134_vm4, %v2131_v28 }
0x2a16   :  { %2141 = vst.msk [vmem:[%s3266_s11 + $0x30] sm:$0xff] %vm2134_vm4, %v2126_v29 }

</bundles_post_ra>
